<compile_context>
chip_gen: v6e
topology: v6e:2x2x1
jax: 0.10.0
libtpu: 0.0.40
codegen_flags: <defaults>
</compile_context>

<pallas_src>
import functools

import jax
import jax.numpy as jnp
from jax.experimental import pallas as pl
from jax.experimental.pallas import tpu as pltpu


# ---- packed-parameter layout (named to avoid magic-number coupling) ----
# square (64,64) weight stack:
IDX_W2, IDX_W3, IDX_W8, IDX_W9L, IDX_W9G, IDX_W10 = range(6)
# bias / vector columns of the (128, N_BIAS_COLS) f32 pack:
COL_W1, COL_B1, COL_B2, COL_B3, COL_B46, COL_B57, COL_B8, COL_B9, COL_B10 = range(9)
N_BIAS_COLS = 16


def _meta_solver_mlp_kernel(x_ref, wsq_ref, w46_ref, w57_ref, wlast_ref,
                            bias_ref, avg_ref, mnode_ref, out_ref, *, n):
    f32, bf16 = jnp.float32, jnp.bfloat16
    x = x_ref[...]                      # (1, bb*n*n) f32, flat lane = b*n*n + i*n + j
    Bv = bias_ref[...]                  # (128, N_BIAS_COLS) f32

    def dense(w_bf16, act, b_col, relu):
        y = jnp.dot(w_bf16, act.astype(bf16), preferred_element_type=f32) + b_col
        return jnp.maximum(y, 0.0) if relu else y

    # -------- l1: per-element MLP (channels on sublanes, boards*positions on lanes) --------
    h = jnp.maximum(Bv[:64, COL_W1:COL_W1 + 1] * x + Bv[:64, COL_B1:COL_B1 + 1], 0.0)  # (64, bb*n*n)
    h = dense(wsq_ref[IDX_W2], h, Bv[:64, COL_B2:COL_B2 + 1], relu=True)
    h = dense(wsq_ref[IDX_W3], h, Bv[:64, COL_B3:COL_B3 + 1], relu=False)

    # -------- mean over dim=-2: one MXU matmul with the block-diagonal averaging matrix --------
    x1 = jnp.dot(h.astype(bf16), avg_ref[...], preferred_element_type=f32)              # (64, bb*n)

    # -------- fused l2/l3 branches: [W4;W6] then blockdiag(W5,W7) --------
    hb = dense(w46_ref[...], x1, Bv[:, COL_B46:COL_B46 + 1], relu=True)                 # (128, bb*n)
    y = dense(w57_ref[...], hb, Bv[:, COL_B57:COL_B57 + 1], relu=False)                 # (128, bb*n)
    x_local = y[:64]                                                                     # l2 output
    g = jnp.maximum(y[64:], 0.0)                                                         # l3 hidden
    g = dense(wsq_ref[IDX_W8], g, Bv[:64, COL_B8:COL_B8 + 1], relu=False)                # (64, bb*n)
    # per-board mean over the n nodes, broadcast back to that board's n lanes (one matmul)
    x_global = jnp.dot(g, mnode_ref[...], preferred_element_type=f32)                    # (64, bb*n)

    # -------- final head: Linear(128,64) split across the concat, then 64->64->1 --------
    hf = (jnp.dot(wsq_ref[IDX_W9L], x_local.astype(bf16), preferred_element_type=f32)
          + jnp.dot(wsq_ref[IDX_W9G], x_global.astype(bf16), preferred_element_type=f32)
          + Bv[:64, COL_B9:COL_B9 + 1])
    hf = jnp.maximum(hf, 0.0)
    hf = dense(wsq_ref[IDX_W10], hf, Bv[:64, COL_B10:COL_B10 + 1], relu=True)            # (64, bb*n)
    # Linear(64,1) as a single MXU dot (row 0 of the zero-padded (8,64) w11).
    # b11 is omitted: softmax is shift-invariant, so it cancels exactly.
    logits = jnp.dot(wlast_ref[...], hf.astype(bf16), preferred_element_type=f32)[0:1]   # (1, bb*n)

    # -------- per-board softmax over groups of n lanes, kept lane-dense --------
    # Block-global max is a valid shift for every board (softmax is per-board shift-invariant).
    m = jnp.max(logits, axis=-1, keepdims=True)
    e = jnp.exp(logits - m)
    denom = jnp.dot(e, mnode_ref[...], preferred_element_type=f32) * float(n)            # per-board sum, broadcast
    out_ref[...] = e * pl.reciprocal(denom, approx=True)


def pack_params(l1_p, l2_p, l3_p, final_p, wdtype=jnp.bfloat16):
    """Pack the 11 Linear layers into bf16 weight stacks + one f32 bias/vector pack."""
    (w1, b1), (w2, b2), (w3, b3) = l1_p
    (w4, b4), (w5, b5) = l2_p
    (w6, b6), (w7, b7), (w8, b8) = l3_p
    (w9, b9), (w10, b10), (w11, b11) = final_p
    del b11  # dropped: softmax is shift-invariant to the final scalar bias

    wsq = jnp.stack([w2, w3, w8, w9[:, :64], w9[:, 64:], w10]).astype(wdtype)     # (6, 64, 64)
    w46 = jnp.concatenate([w4, w6], axis=0).astype(wdtype)                        # (128, 64)
    w57 = (jnp.zeros((128, 128), jnp.float32)
           .at[:64, :64].set(w5).at[64:, 64:].set(w7).astype(wdtype))             # (128, 128) block-diag
    wlast = jnp.zeros((8, 64), jnp.float32).at[0].set(w11[0]).astype(wdtype)      # (8, 64), row 0 = w11

    z64 = jnp.zeros((64,), jnp.float32)
    cols = [
        jnp.concatenate([w1[:, 0], z64]),   # COL_W1  (Linear(1,64) weight as a column)
        jnp.concatenate([b1, z64]),         # COL_B1
        jnp.concatenate([b2, z64]),         # COL_B2
        jnp.concatenate([b3, z64]),         # COL_B3
        jnp.concatenate([b4, b6]),          # COL_B46 (fused branch layer 1)
        jnp.concatenate([b5, b7]),          # COL_B57 (fused branch layer 2)
        jnp.concatenate([b8, z64]),         # COL_B8
        jnp.concatenate([b9, z64]),         # COL_B9
        jnp.concatenate([b10, z64]),        # COL_B10
    ]
    cols += [jnp.zeros((128,), jnp.float32)] * (N_BIAS_COLS - len(cols))
    bias = jnp.stack(cols, axis=1).astype(jnp.float32)                            # (128, N_BIAS_COLS)
    return dict(wsq=wsq, w46=w46, w57=w57, wlast=wlast, bias=bias)


def make_mean_mats(n, block_batch):
    """Host-precomputed block-diagonal averaging matrices (grid-resident constants)."""
    bb = block_batch
    p = jnp.arange(bb * n * n)
    q = jnp.arange(bb * n)
    # mean over j (dim=-2): flat lane p = b*n*n + i*n + j  ->  node lane q = b*n + i
    avg = jnp.where(p[:, None] // n == q[None, :], 1.0 / n, 0.0).astype(jnp.bfloat16)        # (bb*n*n, bb*n)
    # per-board mean over the n nodes, broadcast back to all n lanes of that board
    mnode = jnp.where(q[:, None] // n == q[None, :] // n, 1.0 / n, 0.0).astype(jnp.float32)  # (bb*n, bb*n)
    return dict(avg=avg, mnode=mnode)


def meta_solver_mlp_large_forward(x, packed, consts, *, block_batch=8):
    """x: (1, B, n, n) float32 (the PyTorch module indexes x[0]).  Returns (B, n) policies."""
    _, B, n, n2 = x.shape
    assert n == n2
    bb = block_batch
    P = n * n
    # lane-alignment of the blocked layout (holds for n=16, bb=8)
    assert (bb * n) % 128 == 0 and (bb * P) % 128 == 0, "pick block_batch so lane widths tile by 128"
    assert consts["avg"].shape == (bb * P, bb * n)
    # TODO(synk): for n that does not divide 128, fall back to per-board blocks or pad n.

    b_pad = -(-B // bb) * bb
    x0 = x[0].astype(jnp.float32)
    if b_pad != B:
        x0 = jnp.concatenate([x0, jnp.zeros((b_pad - B, n, n), jnp.float32)], axis=0)
    x_flat = x0.reshape(1, b_pad * P)                 # lane-dense: flat = b*n*n + i*n + j

    def const_spec(shape):
        return pl.BlockSpec(shape, lambda g, _s=len(shape): (0,) * _s)

    kernel = functools.partial(_meta_solver_mlp_kernel, n=n)
    out = pl.pallas_call(
        kernel,
        out_shape=jax.ShapeDtypeStruct((1, b_pad * n), jnp.float32),
        grid_spec=pltpu.PrefetchScalarGridSpec(
            num_scalar_prefetch=0,
            grid=(b_pad // bb,),
            in_specs=[
                pl.BlockSpec((1, bb * P), lambda g: (0, g)),   # boards for this block
                const_spec(packed["wsq"].shape),               # weights: constant block index
                const_spec(packed["w46"].shape),               #   -> DMA'd once, VMEM-resident
                const_spec(packed["w57"].shape),
                const_spec(packed["wlast"].shape),
                const_spec(packed["bias"].shape),
                const_spec(consts["avg"].shape),
                const_spec(consts["mnode"].shape),
            ],
            out_specs=pl.BlockSpec((1, bb * n), lambda g: (0, g)),   # lane-dense policy slab
        ),
        compiler_params=pltpu.CompilerParams(
            dimension_semantics=("parallel",),   # batch blocks shard across v7x's two TCs
        ),
    )(x_flat, packed["wsq"], packed["w46"], packed["w57"], packed["wlast"],
      packed["bias"], consts["avg"], consts["mnode"])
    return out.reshape(b_pad, n)[:B]


# --------------------- pure-JAX reference (for verification) ---------------------
def _mlp_ref(h, params, relu_flags):
    for (w, b), act in zip(params, relu_flags):
        h = h @ w.T + b
        if act:
            h = jax.nn.relu(h)
    return h


def _meta_solver_mlp_ref(x, l1_p, l2_p, l3_p, final_p):
    x0 = x[0]                                                           # (B, n, n)
    h = x0[..., None]                                                   # (B, n, n, 1)
    x1 = _mlp_ref(h, l1_p, (True, True, False)).mean(axis=-2)           # (B, n, 64)
    x_local = _mlp_ref(x1, l2_p, (True, False))                         # (B, n, 64)
    x_global = _mlp_ref(x1, l3_p, (True, True, False)).mean(axis=-2)    # (B, 64)
    x_global = jnp.broadcast_to(x_global[:, None, :], x_local.shape)    # (B, n, 64)
    x_final = jnp.concatenate([x_local, x_global], axis=-1)             # (B, n, 128)
    logits = _mlp_ref(x_final, final_p, (True, True, False))[..., 0]    # (B, n)
    return jax.nn.softmax(logits, axis=-1)


def _init_linear(key, out_dim, in_dim):
    kw, kb = jax.random.split(key)
    bound = 1.0 / jnp.sqrt(float(in_dim))
    w = jax.random.uniform(kw, (out_dim, in_dim), jnp.float32, -bound, bound)
    b = jax.random.uniform(kb, (out_dim,), jnp.float32, -bound, bound)
    return w, b


if __name__ == "__main__":
    n = 16
    B = 12              # boards; wrapper pads to a multiple of block_batch and slices back
    BLOCK_BATCH = 8     # 8 boards/block -> 128 lanes for every post-mean matmul

    key = jax.random.PRNGKey(0)
    k_x, *k_layers = jax.random.split(key, 12)
    x = jax.random.normal(k_x, (1, B, n, n), dtype=jnp.float32)

    l1_p = (_init_linear(k_layers[0], 64, 1),
            _init_linear(k_layers[1], 64, 64),
            _init_linear(k_layers[2], 64, 64))
    l2_p = (_init_linear(k_layers[3], 64, 64),
            _init_linear(k_layers[4], 64, 64))
    l3_p = (_init_linear(k_layers[5], 64, 64),
            _init_linear(k_layers[6], 64, 64),
            _init_linear(k_layers[7], 64, 64))
    final_p = (_init_linear(k_layers[8], 64, 128),
               _init_linear(k_layers[9], 64, 64),
               _init_linear(k_layers[10], 1, 64))

    packed = pack_params(l1_p, l2_p, l3_p, final_p)
    consts = make_mean_mats(n, BLOCK_BATCH)

    fwd = jax.jit(meta_solver_mlp_large_forward, static_argnames=("block_batch",))
    pi = fwd(x, packed, consts, block_batch=BLOCK_BATCH)
    pi = jax.block_until_ready(pi)

    ref = _meta_solver_mlp_ref(x, l1_p, l2_p, l3_p, final_p)

    assert pi.shape == (B, n)
    assert bool(jnp.all(jnp.isfinite(pi)))
    assert bool(jnp.all(jnp.abs(jnp.sum(pi, axis=-1) - 1.0) < 1e-2))
    assert bool(jnp.allclose(pi, ref, rtol=5e-2, atol=5e-3)), (pi, ref)

    print("KERNEL_OK")
</pallas_src>

<mosaic_0001>
module attributes {stable_mosaic.version = 11 : i64} {
  func.func @_meta_solver_mlp_kernel(%arg0: i32, %arg1: memref<1x2048xf32, #tpu.memory_space<vmem>>, %arg2: memref<6x64x64xbf16, #tpu.memory_space<vmem>>, %arg3: memref<128x64xbf16, #tpu.memory_space<vmem>>, %arg4: memref<128x128xbf16, #tpu.memory_space<vmem>>, %arg5: memref<8x64xbf16, #tpu.memory_space<vmem>>, %arg6: memref<128x16xf32, #tpu.memory_space<vmem>>, %arg7: memref<2048x128xbf16, #tpu.memory_space<vmem>>, %arg8: memref<128x128xf32, #tpu.memory_space<vmem>>, %arg9: memref<1x128xf32, #tpu.memory_space<vmem>>) attributes {dimension_semantics = [#tpu.dimension_semantics<parallel>], iteration_bounds = array<i64: 2>, scalar_prefetch = 0 : i64, scratch_operands = 0 : i64, tpu.core_type = #tpu.core_type<tc>, window_params = [{transform_indices = @transform_0, window_bounds = array<i64: 1, 2048>}, {pipeline_mode = #tpu.pipeline_mode<synchronous>, transform_indices = @transform_1, window_bounds = array<i64: 6, 64, 64>}, {pipeline_mode = #tpu.pipeline_mode<synchronous>, transform_indices = @transform_2, window_bounds = array<i64: 128, 64>}, {pipeline_mode = #tpu.pipeline_mode<synchronous>, transform_indices = @transform_3, window_bounds = array<i64: 128, 128>}, {pipeline_mode = #tpu.pipeline_mode<synchronous>, transform_indices = @transform_4, window_bounds = array<i64: 8, 64>}, {pipeline_mode = #tpu.pipeline_mode<synchronous>, transform_indices = @transform_5, window_bounds = array<i64: 128, 16>}, {pipeline_mode = #tpu.pipeline_mode<synchronous>, transform_indices = @transform_6, window_bounds = array<i64: 2048, 128>}, {pipeline_mode = #tpu.pipeline_mode<synchronous>, transform_indices = @transform_7, window_bounds = array<i64: 128, 128>}, {transform_indices = @transform_8, window_bounds = array<i64: 1, 128>}]} {
    %c0 = arith.constant 0 : index
    %c0_0 = arith.constant 0 : index
    %0 = vector.load %arg1[%c0, %c0_0] : memref<1x2048xf32, #tpu.memory_space<vmem>>, vector<1x2048xf32>
    %c0_1 = arith.constant 0 : index
    %c0_2 = arith.constant 0 : index
    %1 = vector.load %arg6[%c0_1, %c0_2] : memref<128x16xf32, #tpu.memory_space<vmem>>, vector<128x16xf32>
    %2 = vector.extract_strided_slice %1 {offsets = [0, 0], sizes = [64, 1], strides = [1, 1]} : vector<128x16xf32> to vector<64x1xf32>
    %3 = vector.broadcast %2 : vector<64x1xf32> to vector<64x2048xf32>
    %4 = vector.broadcast %0 : vector<1x2048xf32> to vector<64x2048xf32>
    %5 = arith.mulf %3, %4 : vector<64x2048xf32>
    %6 = vector.extract_strided_slice %1 {offsets = [0, 1], sizes = [64, 1], strides = [1, 1]} : vector<128x16xf32> to vector<64x1xf32>
    %7 = vector.broadcast %6 : vector<64x1xf32> to vector<64x2048xf32>
    %8 = arith.addf %5, %7 : vector<64x2048xf32>
    %cst = arith.constant 0.000000e+00 : f32
    %9 = vector.broadcast %cst : f32 to vector<64x2048xf32>
    %10 = arith.maximumf %8, %9 : vector<64x2048xf32>
    %c0_3 = arith.constant 0 : index
    %c0_4 = arith.constant 0 : index
    %c0_5 = arith.constant 0 : index
    %11 = vector.load %arg2[%c0_3, %c0_4, %c0_5] : memref<6x64x64xbf16, #tpu.memory_space<vmem>>, vector<1x64x64xbf16>
    %12 = vector.shape_cast %11 : vector<1x64x64xbf16> to vector<64x64xbf16>
    %13 = vector.extract_strided_slice %1 {offsets = [0, 2], sizes = [64, 1], strides = [1, 1]} : vector<128x16xf32> to vector<64x1xf32>
    %14 = arith.truncf %10 : vector<64x2048xf32> to vector<64x2048xbf16>
    %cst_6 = arith.constant dense<0.000000e+00> : vector<64x2048xf32>
    %15 = tpu.matmul %12, %14, %cst_6 {dimension_numbers = #tpu.dot_dimension_numbers<[1], [0], [0], [1], [0, 0, 1, 1], [], []>} : vector<64x64xbf16>, vector<64x2048xbf16>, vector<64x2048xf32> -> vector<64x2048xf32>
    %16 = vector.broadcast %13 : vector<64x1xf32> to vector<64x2048xf32>
    %17 = arith.addf %15, %16 : vector<64x2048xf32>
    %cst_7 = arith.constant 0.000000e+00 : f32
    %18 = vector.broadcast %cst_7 : f32 to vector<64x2048xf32>
    %19 = arith.maximumf %17, %18 : vector<64x2048xf32>
    %c1 = arith.constant 1 : index
    %c0_8 = arith.constant 0 : index
    %c0_9 = arith.constant 0 : index
    %20 = vector.load %arg2[%c1, %c0_8, %c0_9] : memref<6x64x64xbf16, #tpu.memory_space<vmem>>, vector<1x64x64xbf16>
    %21 = vector.shape_cast %20 : vector<1x64x64xbf16> to vector<64x64xbf16>
    %22 = vector.extract_strided_slice %1 {offsets = [0, 3], sizes = [64, 1], strides = [1, 1]} : vector<128x16xf32> to vector<64x1xf32>
    %23 = arith.truncf %19 : vector<64x2048xf32> to vector<64x2048xbf16>
    %cst_10 = arith.constant dense<0.000000e+00> : vector<64x2048xf32>
    %24 = tpu.matmul %21, %23, %cst_10 {dimension_numbers = #tpu.dot_dimension_numbers<[1], [0], [0], [1], [0, 0, 1, 1], [], []>} : vector<64x64xbf16>, vector<64x2048xbf16>, vector<64x2048xf32> -> vector<64x2048xf32>
    %25 = vector.broadcast %22 : vector<64x1xf32> to vector<64x2048xf32>
    %26 = arith.addf %24, %25 : vector<64x2048xf32>
    %27 = arith.truncf %26 : vector<64x2048xf32> to vector<64x2048xbf16>
    %c0_11 = arith.constant 0 : index
    %c0_12 = arith.constant 0 : index
    %28 = vector.load %arg7[%c0_11, %c0_12] : memref<2048x128xbf16, #tpu.memory_space<vmem>>, vector<2048x128xbf16>
    %cst_13 = arith.constant dense<0.000000e+00> : vector<64x128xf32>
    %29 = tpu.matmul %27, %28, %cst_13 {dimension_numbers = #tpu.dot_dimension_numbers<[1], [0], [0], [1], [0, 0, 1, 1], [], []>} : vector<64x2048xbf16>, vector<2048x128xbf16>, vector<64x128xf32> -> vector<64x128xf32>
    %c0_14 = arith.constant 0 : index
    %c0_15 = arith.constant 0 : index
    %30 = vector.load %arg3[%c0_14, %c0_15] : memref<128x64xbf16, #tpu.memory_space<vmem>>, vector<128x64xbf16>
    %31 = vector.extract_strided_slice %1 {offsets = [0, 4], sizes = [128, 1], strides = [1, 1]} : vector<128x16xf32> to vector<128x1xf32>
    %32 = arith.truncf %29 : vector<64x128xf32> to vector<64x128xbf16>
    %cst_16 = arith.constant dense<0.000000e+00> : vector<128x128xf32>
    %33 = tpu.matmul %30, %32, %cst_16 {dimension_numbers = #tpu.dot_dimension_numbers<[1], [0], [0], [1], [0, 0, 1, 1], [], []>} : vector<128x64xbf16>, vector<64x128xbf16>, vector<128x128xf32> -> vector<128x128xf32>
    %34 = vector.broadcast %31 : vector<128x1xf32> to vector<128x128xf32>
    %35 = arith.addf %33, %34 : vector<128x128xf32>
    %cst_17 = arith.constant 0.000000e+00 : f32
    %36 = vector.broadcast %cst_17 : f32 to vector<128x128xf32>
    %37 = arith.maximumf %35, %36 : vector<128x128xf32>
    %c0_18 = arith.constant 0 : index
    %c0_19 = arith.constant 0 : index
    %38 = vector.load %arg4[%c0_18, %c0_19] : memref<128x128xbf16, #tpu.memory_space<vmem>>, vector<128x128xbf16>
    %39 = vector.extract_strided_slice %1 {offsets = [0, 5], sizes = [128, 1], strides = [1, 1]} : vector<128x16xf32> to vector<128x1xf32>
    %40 = arith.truncf %37 : vector<128x128xf32> to vector<128x128xbf16>
    %cst_20 = arith.constant dense<0.000000e+00> : vector<128x128xf32>
    %41 = tpu.matmul %38, %40, %cst_20 {dimension_numbers = #tpu.dot_dimension_numbers<[1], [0], [0], [1], [0, 0, 1, 1], [], []>} : vector<128x128xbf16>, vector<128x128xbf16>, vector<128x128xf32> -> vector<128x128xf32>
    %42 = vector.broadcast %39 : vector<128x1xf32> to vector<128x128xf32>
    %43 = arith.addf %41, %42 : vector<128x128xf32>
    %44 = vector.extract_strided_slice %43 {offsets = [0, 0], sizes = [64, 128], strides = [1, 1]} : vector<128x128xf32> to vector<64x128xf32>
    %45 = vector.extract_strided_slice %43 {offsets = [64, 0], sizes = [64, 128], strides = [1, 1]} : vector<128x128xf32> to vector<64x128xf32>
    %cst_21 = arith.constant 0.000000e+00 : f32
    %46 = vector.broadcast %cst_21 : f32 to vector<64x128xf32>
    %47 = arith.maximumf %45, %46 : vector<64x128xf32>
    %c2 = arith.constant 2 : index
    %c0_22 = arith.constant 0 : index
    %c0_23 = arith.constant 0 : index
    %48 = vector.load %arg2[%c2, %c0_22, %c0_23] : memref<6x64x64xbf16, #tpu.memory_space<vmem>>, vector<1x64x64xbf16>
    %49 = vector.shape_cast %48 : vector<1x64x64xbf16> to vector<64x64xbf16>
    %50 = vector.extract_strided_slice %1 {offsets = [0, 6], sizes = [64, 1], strides = [1, 1]} : vector<128x16xf32> to vector<64x1xf32>
    %51 = arith.truncf %47 : vector<64x128xf32> to vector<64x128xbf16>
    %cst_24 = arith.constant dense<0.000000e+00> : vector<64x128xf32>
    %52 = tpu.matmul %49, %51, %cst_24 {dimension_numbers = #tpu.dot_dimension_numbers<[1], [0], [0], [1], [0, 0, 1, 1], [], []>} : vector<64x64xbf16>, vector<64x128xbf16>, vector<64x128xf32> -> vector<64x128xf32>
    %53 = vector.broadcast %50 : vector<64x1xf32> to vector<64x128xf32>
    %54 = arith.addf %52, %53 : vector<64x128xf32>
    %c0_25 = arith.constant 0 : index
    %c0_26 = arith.constant 0 : index
    %55 = vector.load %arg8[%c0_25, %c0_26] : memref<128x128xf32, #tpu.memory_space<vmem>>, vector<128x128xf32>
    %cst_27 = arith.constant dense<0.000000e+00> : vector<64x128xf32>
    %56 = tpu.matmul %54, %55, %cst_27 {dimension_numbers = #tpu.dot_dimension_numbers<[1], [0], [0], [1], [0, 0, 1, 1], [], []>} : vector<64x128xf32>, vector<128x128xf32>, vector<64x128xf32> -> vector<64x128xf32>
    %c3 = arith.constant 3 : index
    %c0_28 = arith.constant 0 : index
    %c0_29 = arith.constant 0 : index
    %57 = vector.load %arg2[%c3, %c0_28, %c0_29] : memref<6x64x64xbf16, #tpu.memory_space<vmem>>, vector<1x64x64xbf16>
    %58 = vector.shape_cast %57 : vector<1x64x64xbf16> to vector<64x64xbf16>
    %59 = arith.truncf %44 : vector<64x128xf32> to vector<64x128xbf16>
    %cst_30 = arith.constant dense<0.000000e+00> : vector<64x128xf32>
    %60 = tpu.matmul %58, %59, %cst_30 {dimension_numbers = #tpu.dot_dimension_numbers<[1], [0], [0], [1], [0, 0, 1, 1], [], []>} : vector<64x64xbf16>, vector<64x128xbf16>, vector<64x128xf32> -> vector<64x128xf32>
    %c4 = arith.constant 4 : index
    %c0_31 = arith.constant 0 : index
    %c0_32 = arith.constant 0 : index
    %61 = vector.load %arg2[%c4, %c0_31, %c0_32] : memref<6x64x64xbf16, #tpu.memory_space<vmem>>, vector<1x64x64xbf16>
    %62 = vector.shape_cast %61 : vector<1x64x64xbf16> to vector<64x64xbf16>
    %63 = arith.truncf %56 : vector<64x128xf32> to vector<64x128xbf16>
    %cst_33 = arith.constant dense<0.000000e+00> : vector<64x128xf32>
    %64 = tpu.matmul %62, %63, %cst_33 {dimension_numbers = #tpu.dot_dimension_numbers<[1], [0], [0], [1], [0, 0, 1, 1], [], []>} : vector<64x64xbf16>, vector<64x128xbf16>, vector<64x128xf32> -> vector<64x128xf32>
    %65 = arith.addf %60, %64 : vector<64x128xf32>
    %66 = vector.extract_strided_slice %1 {offsets = [0, 7], sizes = [64, 1], strides = [1, 1]} : vector<128x16xf32> to vector<64x1xf32>
    %67 = vector.broadcast %66 : vector<64x1xf32> to vector<64x128xf32>
    %68 = arith.addf %65, %67 : vector<64x128xf32>
    %cst_34 = arith.constant 0.000000e+00 : f32
    %69 = vector.broadcast %cst_34 : f32 to vector<64x128xf32>
    %70 = arith.maximumf %68, %69 : vector<64x128xf32>
    %c5 = arith.constant 5 : index
    %c0_35 = arith.constant 0 : index
    %c0_36 = arith.constant 0 : index
    %71 = vector.load %arg2[%c5, %c0_35, %c0_36] : memref<6x64x64xbf16, #tpu.memory_space<vmem>>, vector<1x64x64xbf16>
    %72 = vector.shape_cast %71 : vector<1x64x64xbf16> to vector<64x64xbf16>
    %73 = vector.extract_strided_slice %1 {offsets = [0, 8], sizes = [64, 1], strides = [1, 1]} : vector<128x16xf32> to vector<64x1xf32>
    %74 = arith.truncf %70 : vector<64x128xf32> to vector<64x128xbf16>
    %cst_37 = arith.constant dense<0.000000e+00> : vector<64x128xf32>
    %75 = tpu.matmul %72, %74, %cst_37 {dimension_numbers = #tpu.dot_dimension_numbers<[1], [0], [0], [1], [0, 0, 1, 1], [], []>} : vector<64x64xbf16>, vector<64x128xbf16>, vector<64x128xf32> -> vector<64x128xf32>
    %76 = vector.broadcast %73 : vector<64x1xf32> to vector<64x128xf32>
    %77 = arith.addf %75, %76 : vector<64x128xf32>
    %cst_38 = arith.constant 0.000000e+00 : f32
    %78 = vector.broadcast %cst_38 : f32 to vector<64x128xf32>
    %79 = arith.maximumf %77, %78 : vector<64x128xf32>
    %c0_39 = arith.constant 0 : index
    %c0_40 = arith.constant 0 : index
    %80 = vector.load %arg5[%c0_39, %c0_40] : memref<8x64xbf16, #tpu.memory_space<vmem>>, vector<8x64xbf16>
    %81 = arith.truncf %79 : vector<64x128xf32> to vector<64x128xbf16>
    %cst_41 = arith.constant dense<0.000000e+00> : vector<8x128xf32>
    %82 = tpu.matmul %80, %81, %cst_41 {dimension_numbers = #tpu.dot_dimension_numbers<[1], [0], [0], [1], [0, 0, 1, 1], [], []>} : vector<8x64xbf16>, vector<64x128xbf16>, vector<8x128xf32> -> vector<8x128xf32>
    %83 = vector.extract_strided_slice %82 {offsets = [0, 0], sizes = [1, 128], strides = [1, 1]} : vector<8x128xf32> to vector<1x128xf32>
    %cst_42 = arith.constant dense<0xFF800000> : vector<1xf32>
    %84 = vector.multi_reduction <maximumf>, %83, %cst_42 [1] : vector<1x128xf32> to vector<1xf32>
    %85 = vector.shape_cast %84 : vector<1xf32> to vector<1x1xf32>
    %86 = vector.broadcast %85 : vector<1x1xf32> to vector<1x128xf32>
    %87 = arith.subf %83, %86 : vector<1x128xf32>
    %88 = math.exp %87 : vector<1x128xf32>
    %c0_43 = arith.constant 0 : index
    %c0_44 = arith.constant 0 : index
    %89 = vector.load %arg8[%c0_43, %c0_44] : memref<128x128xf32, #tpu.memory_space<vmem>>, vector<128x128xf32>
    %cst_45 = arith.constant dense<0.000000e+00> : vector<1x128xf32>
    %90 = tpu.matmul %88, %89, %cst_45 {dimension_numbers = #tpu.dot_dimension_numbers<[1], [0], [0], [1], [0, 0, 1, 1], [], []>} : vector<1x128xf32>, vector<128x128xf32>, vector<1x128xf32> -> vector<1x128xf32>
    %cst_46 = arith.constant 1.600000e+01 : f32
    %91 = vector.broadcast %cst_46 : f32 to vector<1x128xf32>
    %92 = arith.mulf %90, %91 : vector<1x128xf32>
    %93 = tpu.reciprocal %92 {approx = true} : vector<1x128xf32> -> vector<1x128xf32>
    %94 = arith.mulf %88, %93 : vector<1x128xf32>
    %c0_47 = arith.constant 0 : index
    %c0_48 = arith.constant 0 : index
    %95 = vector.load %arg9[%c0_47, %c0_48] : memref<1x128xf32, #tpu.memory_space<vmem>>, vector<1x128xf32>
    tpu.vector_store %arg9[%c0_47, %c0_48], %94 {strides = array<i32>} : memref<1x128xf32, #tpu.memory_space<vmem>>, vector<1x128xf32>,
    return
  }
  func.func @transform_0(%arg0: i32) -> (i32, i32) {
    %c0_i32 = arith.constant 0 : i32
    %c0_i32_0 = arith.constant 0 : i32
    return %c0_i32, %arg0 : i32, i32
  }
  func.func @transform_1(%arg0: i32) -> (i32, i32, i32) {
    %c0_i32 = arith.constant 0 : i32
    %c0_i32_0 = arith.constant 0 : i32
    %c0_i32_1 = arith.constant 0 : i32
    %c0_i32_2 = arith.constant 0 : i32
    return %c0_i32, %c0_i32_0, %c0_i32_1 : i32, i32, i32
  }
  func.func @transform_2(%arg0: i32) -> (i32, i32) {
    %c0_i32 = arith.constant 0 : i32
    %c0_i32_0 = arith.constant 0 : i32
    %c0_i32_1 = arith.constant 0 : i32
    return %c0_i32, %c0_i32_0 : i32, i32
  }
  func.func @transform_3(%arg0: i32) -> (i32, i32) {
    %c0_i32 = arith.constant 0 : i32
    %c0_i32_0 = arith.constant 0 : i32
    %c0_i32_1 = arith.constant 0 : i32
    return %c0_i32, %c0_i32_0 : i32, i32
  }
  func.func @transform_4(%arg0: i32) -> (i32, i32) {
    %c0_i32 = arith.constant 0 : i32
    %c0_i32_0 = arith.constant 0 : i32
    %c0_i32_1 = arith.constant 0 : i32
    return %c0_i32, %c0_i32_0 : i32, i32
  }
  func.func @transform_5(%arg0: i32) -> (i32, i32) {
    %c0_i32 = arith.constant 0 : i32
    %c0_i32_0 = arith.constant 0 : i32
    %c0_i32_1 = arith.constant 0 : i32
    return %c0_i32, %c0_i32_0 : i32, i32
  }
  func.func @transform_6(%arg0: i32) -> (i32, i32) {
    %c0_i32 = arith.constant 0 : i32
    %c0_i32_0 = arith.constant 0 : i32
    %c0_i32_1 = arith.constant 0 : i32
    return %c0_i32, %c0_i32_0 : i32, i32
  }
  func.func @transform_7(%arg0: i32) -> (i32, i32) {
    %c0_i32 = arith.constant 0 : i32
    %c0_i32_0 = arith.constant 0 : i32
    %c0_i32_1 = arith.constant 0 : i32
    return %c0_i32, %c0_i32_0 : i32, i32
  }
  func.func @transform_8(%arg0: i32) -> (i32, i32) {
    %c0_i32 = arith.constant 0 : i32
    %c0_i32_0 = arith.constant 0 : i32
    return %c0_i32, %arg0 : i32, i32
  }
}

</mosaic_0001>

<bundles_post_ra>
// kernel: meta_solver_mlp_large_forward.1
= control target key start
LH: loop header
LB: loop body
LE: loop exit
PB: predicated region body
PF: predicated region fallthrough
CT: control target
= control target key end

     0   :  { %13 = vsyncpa [#allocation3], 0  ;;  %s6726_s27 = smov 0   ;;  %s8676_s0 = inlined_call_operand.vmem [shape: f32[1,4096], index: 0, kind: input, shape index: {}]   ;;  %s8677_s1 = inlined_call_operand.vmem [shape: bf16[6,64,64], index: 1, kind: input, shape index: {}]   ;;  %s8678_s2 = inlined_call_operand.vmem [shape: bf16[128,64], index: 2, kind: input, shape index: {}]   ;;  %s8679_s3 = inlined_call_operand.vmem [shape: bf16[128,128], index: 3, kind: input, shape index: {}]   ;;  %s8680_s4 = inlined_call_operand.vmem [shape: bf16[8,64], index: 4, kind: input, shape index: {}]   ;;  %s8681_s5 = inlined_call_operand.vmem [shape: f32[128,16], index: 5, kind: input, shape index: {}]   ;;  %s8682_s6 = inlined_call_operand.hbm [shape: bf16[2048,128], index: 6, kind: input, shape index: {}]   ;;  %s8683_s7 = inlined_call_operand.vmem [shape: f32[128,128], index: 7, kind: input, shape index: {}]   ;;  %s8684_s8 = inlined_call_operand.vmem [shape: f32[1,256], index: 8, kind: output, shape index: {}]  }
   0x1 LB: > { %s6732_s28 = sadd.s32 4294967295, %s6665_s27   ;;  %p5429_p0 = scmp.ge.s32.totalorder %s6665_s27, 1  ;;  %s6665_s27 = sphi %s6726_s27, %s19_s27  }
   0x2   : > { %p223_p1 = scmp.lt.s32.totalorder %s6665_s27, 3  ;;  %s6667_s29 = smov [#allocation2]  }
   0x3   : > { %s250_s30 = sshll.u32 %s6667_s29, 4  ;;  %p6387_p3 = scmp.eq.s32.totalorder %s6732_s28, 0  ;;  %s251_s30 = int_to_ptr.vmem [resolvable:$true] %s250_s30 }
   0x4   : > { %p6736_p2 = pnand %p5429_p0, %p223_p1  ;;  %s6640_s10 = scalar_lea.vmem %s251_s30, 16384 }
   0x5   : > { %p6641_p7 = scmp.ne.s32.totalorder %s251_s30, %s6640_s10  ;;  %p6648_p10 = scmp.lt.s32.totalorder %s251_s30, %s251_s30 }
   0x6   : > { %p6383_p4 = pneg %p6736_p2  ;;  %p6649_p11 = scmp.lt.s32.totalorder %s6640_s10, %s6640_s10 }
   0x8   : > { %p6384_p5 = pnand %p6387_p3, %p6383_p4  ;;  %p6650_p12 = por %p6649_p11, %p6648_p10 }
   0xa   : > { %p6631_p6 = pneg %p6384_p5 }
   0xc   : > { %p6643_p8 = pnand %p6641_p7, %p6631_p6 }
   0xe   : > { %p6644_p9 = pneg %p6643_p8 }
  0x10   : > { %p6651_p13 = pnand %p6650_p12, %p6644_p9 }
  0x12   : > { %6654 = shalt.err (!%p6651_p13)
}
  0x13   : > { %s6668_s11 = smov 64   ;;  %s6669_s12 = smov 4  }
  0x14   : > { %6386 = dma.hbm_to_vmem [thread:$0]  (!%p6384_p5), %s8682_s6, 16384, %s251_s30, [#allocation3], %s6668_s11, %s6668_s11, %s6669_s12  }
  0x15   : > { %277 = sbr.rel (%p6736_p2) target bundleno = 2954 (0xb8a), region = 52 }
  0x1a   : > { %6660 = dma.done.wait (%p6387_p3), [#allocation3], 16384  }
  0x1b   : > { %6662 = vsyncadd (%p6387_p3), [#allocation3], 4294950912  ;;  %v6670_v0 = vmov 1   ;;  %v8686_v1 = vmov 0   ;;  %v325_v2 = vld [vmem:[%s8681_s5 + $0x30] sm:$0xff]  ;;  %v326_v3 = vld [vmem:[%s8681_s5 + $0x38] sm:$0xff]  ;;  %v377_v10 = vlaneseq }
  0x1c   : > { %6412 = vset.pattern.permute.xlu1 %v6670_v0  ;;  %6411 = vset.pattern.permute.xlu0 %v8686_v1  ;;  %v323_v4 = vld [vmem:[%s8681_s5 + $0x20] sm:$0xff]  ;;  %v324_v5 = vld [vmem:[%s8681_s5 + $0x28] sm:$0xff]  ;;  %v322_v6 = vld [vmem:[%s8681_s5 + $0x18] sm:$0xff]  ;;  %s5434_s9 = sshll.u32 %s6732_s28, 4  ;;  %v6672_v14 = vmov 2   ;;  %vm997_vm0 = vcmask 523264  }
  0x1d   : > { %1042 = vmatprep.mubr.bf16.mxu0 %v8686_v1  ;;  %1062 = vmatprep.mubr.bf16.mxu1 %v8686_v1  ;;  %v321_v7 = vld [vmem:[%s8681_s5 + $0x10] sm:$0xff]  ;;  %v319_v8 = vld [vmem:[%s8681_s5] sm:$0xff]  ;;  %v320_v9 = vld [vmem:[%s8681_s5 + $0x8] sm:$0xff]  ;;  %p309_p0 = scmp.lt.s32.totalorder %s5434_s9, 31  ;;  %v6786_v11 = vshrl.u32 %v377_v10, 7  ;;  %vm6680_vm1 = vmmov 0  }
  0x1e   : > { %610 = vperm.xlu1 %6412, %v325_v2   ;;  %367 = vperm.xlu0 %6411, %v325_v2   ;;  %vm5290_vm2 = vcmask 1040384   ;;  %p313_p1 = scmp.lt.s32.totalorder %s6732_s28, 1 }
  0x1f   : > { %8729 = vst [vmem:[#allocation5_spill] sm:$0xff] %v6786_v11  ;;  %s8806_s9 = smov (!%p309_p0, %s5434_s9), 31  ;;  %v383_v12 = vsub.s32 1, %v6786_v11  ;;  %v379_v13 = vsub.s32 0, %v6786_v11  ;;  %v391_v15 = vsub.s32 3, %v6786_v11  ;;  %v399_v16 = vsub.s32 5, %v6786_v11 }
  0x20   : > { %s311_s14 = scalar_lea.vmem %s8676_s0, %s8806_s9  ;;  %v387_v18 = vsub.s32 2, %v6786_v11  ;;  %v395_v19 = vsub.s32 4, %v6786_v11  ;;  %v8685_v20 = vsub.s32 7, %v6786_v11  ;;  %v403_v22 = vsub.s32 6, %v6786_v11  ;;  %s8808_s28 = smov (!%p313_p1, %s6732_s28), 1 }
  0x21   : > { %v317_v17 = vld [vmem:[%s311_s14] sm:$0xff]  ;;  %v6798_v21 = vld [vmem:[%s311_s14 + $0x8] sm:$0xff]  ;;  %s315_s25 = scalar_lea.vmem %s8684_s8, %s8808_s28 }
  0x22   : > { %614 = vperm.xlu1 %6412, %v326_v3   ;;  %6414 = vset.pattern.permute.xlu0 %v6670_v0  ;;  %8730 = vst [vmem:[#allocation6_spill] sm:$0xff] %v6798_v21  ;;  %v6801_v23 = vrot.slane %v317_v17, %v383_v12  ;;  %v6803_v24 = vrot.slane %v317_v17, %v379_v13 }
  0x23   : > { %602 = vperm.xlu0 %6414, %v323_v4   ;;  %v6805_v25 = vrot.slane %v317_v17, %v391_v15  ;;  %v6807_v26 = vrot.slane %v317_v17, %v399_v16  ;;  %v6809_v27 = vrot.slane %v317_v17, %v387_v18  ;;  %v6811_v28 = vrot.slane %v317_v17, %v395_v19 }
  0x24   : > { %v6815_v29 = vrot.slane %v317_v17, %v8685_v20  ;;  %v6818_v30 = vrot.slane %v6798_v21, %v383_v12  ;;  %v6825_v33 = vrot.slane %v6798_v21, %v379_v13  ;;  %v6827_v34 = vrot.slane %v317_v17, %v403_v22 }
  0x25   : > { %v6830_v35 = vrot.slane %v6798_v21, %v391_v15  ;;  %v6833_v36 = vrot.slane %v6798_v21, %v399_v16  ;;  %v6868_v52 = vrot.slane %v6798_v21, %v387_v18  ;;  %v6871_v53 = vrot.slane %v6798_v21, %v403_v22 }
  0x26   : > { %6413 = vset.pattern.permute.xlu1 %v8686_v1  ;;  %v6882_v57 = vrot.slane %v6798_v21, %v395_v19 }
  0x27   : > { %362 = vperm.xlu1 %6413, %v324_v5   ;;  %6415 = vset.pattern.permute.xlu0 %v8686_v1  ;;  %8733 = vst [vmem:[#allocation9_spill] sm:$0xff] %v6868_v52  ;;  %8734 = vst [vmem:[#allocation10_spill] sm:$0xff] %v6871_v53 }
  0x28   : > { %372 = vperm.xlu0 %6415, %v326_v3   ;;  %8735 = vst [vmem:[#allocation11_spill] sm:$0xff] %v6882_v57 }
  0x2b   : > { %6416 = vset.pattern.permute.xlu1 %v6670_v0 }
  0x2c   : > { %606 = vperm.xlu1 %6416, %v324_v5   ;;  %357 = vperm.xlu0 %6415, %v323_v4  }
  0x30   : > { %6417 = vset.pattern.permute.xlu1 %v8686_v1  ;;  %352 = vperm.xlu0 %6415, %v322_v6  }
  0x31   : > { %347 = vperm.xlu1 %6417, %v321_v7  }
  0x34   : > { %337 = vperm.xlu0 %6415, %v319_v8  }
  0x35   : > { %6418 = vset.pattern.permute.xlu1 %v6670_v0 }
  0x36   : > { %594 = vperm.xlu1 %6418, %v321_v7  }
  0x38   : > { %6420 = vset.pattern.permute.xlu0 %v6670_v0 }
  0x39   : > { %586 = vperm.xlu0 %6420, %v319_v8  }
  0x3a   : > { %598 = vperm.xlu1 %6418, %v322_v6  }
  0x3d   : > { %6423 = vset.pattern.permute.xlu0 %v6672_v14 }
  0x3e   : > { %6419 = vset.pattern.permute.xlu1 %v8686_v1  ;;  %974 = vperm.xlu0 %6423, %v326_v3  }
  0x3f   : > { %342 = vperm.xlu1 %6419, %v320_v9  }
  0x42   : > { %954 = vperm.xlu0 %6423, %v321_v7  }
  0x43   : > { %6421 = vset.pattern.permute.xlu1 %v6670_v0 }
  0x44   : > { %590 = vperm.xlu1 %6421, %v320_v9  }
  0x46   : > { %946 = vperm.xlu0 %6423, %v319_v8  }
  0x48   : > { %6422 = vset.pattern.permute.xlu1 %v6672_v14 }
  0x49   : > { %970 = vperm.xlu1 %6422, %v325_v2  }
  0x4d   : > { %962 = vperm.xlu1 %6422, %v323_v4  }
  0x51   : > { %966 = vperm.xlu1 %6422, %v324_v5  }
  0x55   : > { %958 = vperm.xlu1 %6422, %v322_v6  }
  0x59   : > { %950 = vperm.xlu1 %6422, %v320_v9  }
  0x99   : > { %v6820_v31 = vpop.permute.xlu1 %610  ;;  %v6822_v32 = vpop.permute.xlu0 %367 }
  0x9a   : > { %8731 = vst [vmem:[#allocation7_spill] sm:$0xff] %v6820_v31  ;;  %8732 = vst [vmem:[#allocation8_spill] sm:$0xff] %v6822_v32  ;;  %v554_v37 = vmul.f32 %v6801_v23, %v6822_v32  ;;  %v553_v38 = vmul.f32 %v6803_v24, %v6822_v32  ;;  %v556_v39 = vmul.f32 %v6805_v25, %v6822_v32 }
  0x9b   : > { %v558_v40 = vmul.f32 %v6807_v26, %v6822_v32  ;;  %v555_v41 = vmul.f32 %v6809_v27, %v6822_v32  ;;  %v557_v42 = vmul.f32 %v6811_v28, %v6822_v32  ;;  %v560_v43 = vmul.f32 %v6815_v29, %v6822_v32 }
  0x9c   : > { %v562_v44 = vmul.f32 %v6818_v30, %v6822_v32  ;;  %v714_v45 = vadd.f32 %v6820_v31, %v554_v37  ;;  %v713_v46 = vadd.f32 %v6820_v31, %v553_v38  ;;  %v6854_v47 = vadd.f32 %v6820_v31, %v556_v39 }
  0x9d   : > { %v6857_v48 = vadd.f32 %v6820_v31, %v558_v40  ;;  %v6859_v49 = vpop.permute.xlu1 %614  ;;  %v6862_v50 = vadd.f32 %v6820_v31, %v555_v41  ;;  %v6865_v51 = vadd.f32 %v6820_v31, %v557_v42  ;;  %v6876_v55 = vadd.f32 %v6820_v31, %v560_v43 }
  0x9e   : > { %v6873_v54 = vpop.permute.xlu0 %602  ;;  %v6879_v56 = vadd.f32 %v6820_v31, %v562_v44  ;;  %v842_v58 = vmax.f32 %v714_v45, 0.0  ;;  %v841_v59 = vmax.f32 %v713_v46, 0.0  ;;  %v844_v60 = vmax.f32 %v6854_v47, 0.0 }
  0x9f   : > { %v846_v61 = vmax.f32 %v6857_v48, 0.0  ;;  %v559_v62 = vmul.f32 %v6827_v34, %v6822_v32  ;;  %v561_v63 = vmul.f32 %v6825_v33, %v6822_v32  ;;  %v564_v0 = vmul.f32 %v6830_v35, %v6822_v32 }
  0xa0   : > { %v566_v2 = vmul.f32 %v6833_v36, %v6822_v32  ;;  %v6898_v5 = vmul.f32 %v6868_v52, %v6822_v32  ;;  %v6902_v6 = vmul.f32 %v6871_v53, %v6822_v32 }
  0xa1   : > { %v6907_v8 = vadd.f32 %v6820_v31, %v559_v62  ;;  %v6910_v9 = vadd.f32 %v6820_v31, %v561_v63  ;;  %v6913_v10 = vadd.f32 %v6820_v31, %v564_v0 }
  0xa2   : > { %8736 = vst [vmem:[#allocation12_spill] sm:$0xff] %v6898_v5  ;;  %8737 = vst [vmem:[#allocation13_spill] sm:$0xff] %v6902_v6  ;;  %v6904_v7 = vpop.permute.xlu1 %362  ;;  %v6916_v12 = vadd.f32 %v6820_v31, %v566_v2 }
  0xa3   : > { %8738 = vst [vmem:[#allocation14_spill] sm:$0xff] %v6913_v10  ;;  %v6918_v13 = vpop.permute.xlu0 %372  ;;  %v538_v14 = vmul.f32 %v6801_v23, %v6904_v7  ;;  %v537_v15 = vmul.f32 %v6803_v24, %v6904_v7  ;;  %v540_v16 = vmul.f32 %v6805_v25, %v6904_v7  ;;  %v542_v17 = vmul.f32 %v6807_v26, %v6904_v7 }
  0xa4   : > { %8739 = vst [vmem:[#allocation15_spill] sm:$0xff] %v6916_v12  ;;  %v570_v18 = vmul.f32 %v6801_v23, %v6918_v13  ;;  %v569_v19 = vmul.f32 %v6803_v24, %v6918_v13  ;;  %v572_v22 = vmul.f32 %v6805_v25, %v6918_v13  ;;  %v574_v37 = vmul.f32 %v6807_v26, %v6918_v13 }
  0xa5   : > { %v571_v38 = vmul.f32 %v6809_v27, %v6918_v13  ;;  %v573_v39 = vmul.f32 %v6811_v28, %v6918_v13  ;;  %v539_v40 = vmul.f32 %v6809_v27, %v6904_v7  ;;  %v6944_v41 = vmul.f32 %v6811_v28, %v6904_v7 }
  0xa6   : > { %v730_v42 = vadd.f32 %v6859_v49, %v570_v18  ;;  %v729_v43 = vadd.f32 %v6859_v49, %v569_v19  ;;  %v732_v44 = vadd.f32 %v6859_v49, %v572_v22  ;;  %v734_v45 = vadd.f32 %v6859_v49, %v574_v37 }
  0xa7   : > { %v6950_v46 = vpop.permute.xlu1 %606  ;;  %v6952_v47 = vpop.permute.xlu0 %357  ;;  %v731_v48 = vadd.f32 %v6859_v49, %v571_v38  ;;  %v733_v62 = vadd.f32 %v6859_v49, %v573_v39  ;;  %v6958_v63 = vmul.f32 %v6815_v29, %v6918_v13  ;;  %v6962_v0 = vmul.f32 %v6818_v30, %v6918_v13 }
  0xa8   : > { %v858_v2 = vmax.f32 %v730_v42, 0.0  ;;  %v857_v18 = vmax.f32 %v729_v43, 0.0  ;;  %v522_v19 = vmul.f32 %v6801_v23, %v6952_v47  ;;  %v698_v22 = vadd.f32 %v6950_v46, %v538_v14 }
  0xa9   : > { %v521_v37 = vmul.f32 %v6803_v24, %v6952_v47  ;;  %v697_v38 = vadd.f32 %v6950_v46, %v537_v15  ;;  %v860_v39 = vmax.f32 %v732_v44, 0.0  ;;  %v862_v20 = vmax.f32 %v734_v45, 0.0 }
  0xaa   : > { %v930_v1 = vpack.c.bf16 %v858_v2, %v842_v58  ;;  %v929_v4 = vpack.c.bf16 %v857_v18, %v841_v59  ;;  %v682_v3 = vadd.f32 %v6873_v54, %v522_v19  ;;  %v826_v6 = vmax.f32 %v698_v22, 0.0 }
  0xab   : > { %v6971_v53 = vpop.permute.xlu0 %352  ;;  %v681_v42 = vadd.f32 %v6873_v54, %v521_v37  ;;  %v825_v43 = vmax.f32 %v697_v38, 0.0  ;;  %v6974_v21 = vpack.c.bf16 %v860_v39, %v844_v60  ;;  %v6976_v14 = vpack.c.bf16 %v862_v20, %v846_v61 }
  0xac   : > { %v6978_v11 = vpop.permute.xlu1 %347  ;;  %1018 = vmatprep.subr.bf16.mxu0 %v930_v1  ;;  %6371 = vmatprep.subr.bf16.mxu1 %v930_v1  ;;  %v810_v15 = vmax.f32 %v682_v3, 0.0  ;;  %v506_v58 = vmul.f32 %v6801_v23, %v6971_v53  ;;  %v505_v59 = vmul.f32 %v6803_v24, %v6971_v53  ;;  %v859_v44 = vmax.f32 %v731_v48, 0.0 }
  0xad   : > { %1019 = vmatpush1.bf16.msra.mxu0 %v929_v4  ;;  %6375 = vmatpush1.bf16.msra.mxu1 %v929_v4  ;;  %v809_v45 = vmax.f32 %v681_v42, 0.0  ;;  %v490_v60 = vmul.f32 %v6801_v23, %v6978_v11  ;;  %v489_v20 = vmul.f32 %v6803_v24, %v6978_v11  ;;  %v861_v61 = vmax.f32 %v733_v62, 0.0 }
  0xae   : > { %v914_v2 = vpack.c.bf16 %v826_v6, %v810_v15  ;;  %v8740_v1 = vmax.f32 %v6862_v50, 0.0  ;;  %v524_v18 = vmul.f32 %v6805_v25, %v6952_v47  ;;  %v700_v48 = vadd.f32 %v6950_v46, %v540_v16 }
  0xaf   : > { %v6995_v19 = vpop.permute.xlu0 %337  ;;  %v913_v4 = vpack.c.bf16 %v825_v43, %v809_v45  ;;  %v8741_v22 = vmax.f32 %v6865_v51, 0.0  ;;  %v526_v62 = vmul.f32 %v6807_v26, %v6952_v47  ;;  %v702_v6 = vadd.f32 %v6950_v46, %v542_v17 }
  0xb0   : > { %v6990_v3 = vpack.c.bf16 %v859_v44, %v8740_v1  ;;  %1020 = vmatprep.subr.bf16.mxu0 %v914_v2  ;;  %6372 = vmatprep.subr.bf16.mxu1 %v914_v2  ;;  %v458_v50 = vmul.f32 %v6801_v23, %v6995_v19  ;;  %v457_v16 = vmul.f32 %v6803_v24, %v6995_v19  ;;  %v828_v1 = vmax.f32 %v700_v48, 0.0 }
  0xb1   : > { %v6999_v37 = vpack.c.bf16 %v861_v61, %v8741_v22  ;;  %v684_v38 = vadd.f32 %v6873_v54, %v524_v18  ;;  %v7010_v51 = vpop.permute.xlu1 %594  ;;  %1021 = vmatpush1.bf16.msra.mxu0 %v913_v4  ;;  %6376 = vmatpush1.bf16.msra.mxu1 %v913_v4  ;;  %v686_v42 = vadd.f32 %v6873_v54, %v526_v62  ;;  %v830_v39 = vmax.f32 %v702_v6, 0.0 }
  0xb2   : > { %v523_v17 = vmul.f32 %v6809_v27, %v6952_v47  ;;  %v699_v43 = vadd.f32 %v6950_v46, %v539_v40  ;;  %v650_v44 = vadd.f32 %v7010_v51, %v490_v60  ;;  %v649_v45 = vadd.f32 %v7010_v51, %v489_v20 }
  0xb3   : > { %v812_v61 = vmax.f32 %v684_v38, 0.0  ;;  %v525_v2 = vmul.f32 %v6811_v28, %v6952_v47  ;;  %v814_v18 = vmax.f32 %v686_v42, 0.0  ;;  %v701_v22 = vadd.f32 %v6950_v46, %v6944_v41 }
  0xb4   : > { %v683_v4 = vadd.f32 %v6873_v54, %v523_v17  ;;  %v7024_v62 = vpop.permute.xlu0 %586  ;;  %v778_v40 = vmax.f32 %v650_v44, 0.0  ;;  %v827_v15 = vmax.f32 %v699_v43, 0.0  ;;  %v777_v20 = vmax.f32 %v649_v45, 0.0 }
  0xb5   : > { %v685_v60 = vadd.f32 %v6873_v54, %v525_v2  ;;  %v7027_v32 = vpop.permute.xlu1 %598  ;;  %v7030_v38 = vadd.f32 %v7024_v62, %v458_v50  ;;  %v7033_v48 = vadd.f32 %v7024_v62, %v457_v16  ;;  %v7035_v42 = vpack.c.bf16 %v828_v1, %v812_v61 }
  0xb6   : > { %v666_v41 = vadd.f32 %v7027_v32, %v506_v58  ;;  %v665_v17 = vadd.f32 %v7027_v32, %v505_v59  ;;  %v7039_v44 = vpack.c.bf16 %v830_v39, %v814_v18  ;;  %v811_v6 = vmax.f32 %v683_v4, 0.0 }
  0xb7   : > { %v746_v43 = vmax.f32 %v7030_v38, 0.0  ;;  %v813_v2 = vmax.f32 %v685_v60, 0.0  ;;  %v829_v31 = vmax.f32 %v701_v22, 0.0  ;;  %v492_v50 = vmul.f32 %v6805_v25, %v6978_v11 }
  0xb8   : > { %v794_v45 = vmax.f32 %v666_v41, 0.0  ;;  %v793_v5 = vmax.f32 %v665_v17, 0.0  ;;  %v745_v16 = vmax.f32 %v7033_v48, 0.0  ;;  %v508_v61 = vmul.f32 %v6805_v25, %v6971_v53 }
  0xb9   : > { %v652_v58 = vadd.f32 %v7010_v51, %v492_v50  ;;  %v494_v59 = vmul.f32 %v6807_v26, %v6978_v11  ;;  %v510_v39 = vmul.f32 %v6807_v26, %v6971_v53  ;;  %v491_v1 = vmul.f32 %v6809_v27, %v6978_v11 }
  0xba   : > { %v7054_v18 = vpop.permute.xlu1 %342  ;;  %v898_v4 = vpack.c.bf16 %v794_v45, %v778_v40  ;;  %v897_v22 = vpack.c.bf16 %v793_v5, %v777_v20  ;;  %v668_v60 = vadd.f32 %v7027_v32, %v508_v61  ;;  %v507_v38 = vmul.f32 %v6809_v27, %v6971_v53 }
  0xbb   : > { %v474_v48 = vmul.f32 %v6801_v23, %v7054_v18  ;;  %v473_v41 = vmul.f32 %v6803_v24, %v7054_v18  ;;  %v7063_v17 = vpack.c.bf16 %v827_v15, %v811_v6  ;;  %v654_v50 = vadd.f32 %v7010_v51, %v494_v59 }
  0xbc   : > { %1022 = vmatprep.subr.bf16.mxu0 %v898_v4  ;;  %6373 = vmatprep.subr.bf16.mxu1 %v898_v4  ;;  %v796_v57 = vmax.f32 %v668_v60, 0.0  ;;  %v670_v5 = vadd.f32 %v7027_v32, %v510_v39  ;;  %v651_v40 = vadd.f32 %v7010_v51, %v491_v1  ;;  %v667_v20 = vadd.f32 %v7027_v32, %v507_v38 }
  0xbd   : > { %1023 = vmatpush1.bf16.msra.mxu0 %v897_v22  ;;  %6377 = vmatpush1.bf16.msra.mxu1 %v897_v22  ;;  %v780_v45 = vmax.f32 %v652_v58, 0.0  ;;  %v493_v23 = vmul.f32 %v6811_v28, %v6978_v11  ;;  %v509_v24 = vmul.f32 %v6811_v28, %v6971_v53  ;;  %v460_v15 = vmul.f32 %v6805_v25, %v6995_v19 }
  0xbe   : > { %v782_v6 = vmax.f32 %v654_v50, 0.0  ;;  %v798_v61 = vmax.f32 %v670_v5, 0.0  ;;  %v779_v59 = vmax.f32 %v651_v40, 0.0  ;;  %v795_v39 = vmax.f32 %v667_v20, 0.0 }
  0xbf   : > { %v7075_v4 = vpop.permute.xlu1 %590  ;;  %v653_v1 = vadd.f32 %v7010_v51, %v493_v23  ;;  %v669_v58 = vadd.f32 %v7027_v32, %v509_v24  ;;  %v476_v22 = vmul.f32 %v6805_v25, %v7054_v18  ;;  %v620_v60 = vadd.f32 %v7024_v62, %v460_v15 }
  0xc0   : > { %v634_v38 = vadd.f32 %v7075_v4, %v474_v48  ;;  %v633_v12 = vadd.f32 %v7075_v4, %v473_v41  ;;  %v7084_v50 = vpack.c.bf16 %v829_v31, %v813_v2  ;;  %v7086_v5 = vpack.c.bf16 %v796_v57, %v780_v45 }
  0xc1   : > { %v7088_v40 = vpack.c.bf16 %v798_v61, %v782_v6  ;;  %v7090_v20 = vpack.c.bf16 %v795_v39, %v779_v59  ;;  %v781_v23 = vmax.f32 %v653_v1, 0.0  ;;  %v636_v24 = vadd.f32 %v7075_v4, %v476_v22 }
  0xc2   : > { %v762_v10 = vmax.f32 %v634_v38, 0.0  ;;  %v761_v52 = vmax.f32 %v633_v12, 0.0  ;;  %v462_v25 = vmul.f32 %v6807_v26, %v6995_v19  ;;  %v478_v48 = vmul.f32 %v6807_v26, %v7054_v18 }
  0xc3   : > { %v797_v41 = vmax.f32 %v669_v58, 0.0  ;;  %v748_v31 = vmax.f32 %v620_v60, 0.0  ;;  %v459_v57 = vmul.f32 %v6809_v27, %v6995_v19  ;;  %v475_v2 = vmul.f32 %v6809_v27, %v7054_v18  ;;  %v7110_v27 = vld [vmem:[%s8677_s1] sm:$0xff]  }
  0xc4   : > { %v882_v45 = vpack.c.bf16 %v762_v10, %v746_v43  ;;  %v881_v15 = vpack.c.bf16 %v761_v52, %v745_v16  ;;  %v622_v6 = vadd.f32 %v7024_v62, %v462_v25  ;;  %v638_v12 = vadd.f32 %v7075_v4, %v478_v48  ;;  %v7115_v52 = vld [vmem:[%s8677_s1 + $0x10] sm:$0xff]  }
  0xc5   : > { %v764_v61 = vmax.f32 %v636_v24, 0.0  ;;  %v619_v59 = vadd.f32 %v7024_v62, %v459_v57  ;;  %v635_v39 = vadd.f32 %v7075_v4, %v475_v2  ;;  %v461_v26 = vmul.f32 %v6811_v28, %v6995_v19 }
  0xc6   : > { %1024 = vmatprep.subr.bf16.mxu0 %v882_v45  ;;  %6374 = vmatprep.subr.bf16.mxu1 %v882_v45  ;;  %v750_v10 = vmax.f32 %v622_v6, 0.0  ;;  %v766_v43 = vmax.f32 %v638_v12, 0.0  ;;  %v477_v16 = vmul.f32 %v6811_v28, %v7054_v18  ;;  %v736_v1 = vadd.f32 %v6859_v49, %v6958_v63 }
  0xc7   : > { %1025 = vmatpush1.bf16.msra.mxu0 %v881_v15  ;;  %6378 = vmatpush1.bf16.msra.mxu1 %v881_v15  ;;  %v747_v58 = vmax.f32 %v619_v59, 0.0  ;;  %v763_v22 = vmax.f32 %v635_v39, 0.0  ;;  %v621_v60 = vadd.f32 %v7024_v62, %v461_v26  ;;  %v738_v38 = vadd.f32 %v6859_v49, %v6962_v0  ;;  %v7168_v26 = vld [vmem:[%s8677_s1 + $0x8] sm:$0xff]  }
  0xc8   : > { %1091 = vmatprep.subr.bf16.mxu1 %v6974_v21  ;;  %1164 = vmatprep.subr.bf16.mxu0 %v6976_v14  ;;  %v901_v24 = vpack.c.bf16 %v797_v41, %v781_v23  ;;  %v637_v25 = vadd.f32 %v7075_v4, %v477_v16  ;;  %v864_v28 = vmax.f32 %v736_v1, 0.0  ;;  %v575_v63 = vmul.f32 %v6827_v34, %v6918_v13 }
  0xc9   : > { %v884_v48 = vpack.c.bf16 %v764_v61, %v748_v31  ;;  %v886_v57 = vpack.c.bf16 %v766_v43, %v750_v10  ;;  %v7129_v2 = vpack.c.bf16 %v763_v22, %v747_v58  ;;  %v866_v45 = vmax.f32 %v738_v38, 0.0  ;;  %v7173_v10 = vld [vmem:[%s8677_s1 + $0x18] sm:$0xff]  }
  0xca   : > { %5439 = vmatmul.mubr.msk.bf16.vlgmr.msra.gmra.mxu0 %vm997_vm0, %v7110_v27  ;;  %5441 = vmatmul.mubr.msk.bf16.vlgmr.msra.gmra.mxu1 %vm997_vm0, %v7115_v52  ;;  %v749_v21 = vmax.f32 %v621_v60, 0.0  ;;  %v765_v0 = vmax.f32 %v637_v25, 0.0  ;;  %v735_v14 = vadd.f32 %v6859_v49, %v575_v63  ;;  %v577_v23 = vmul.f32 %v6825_v33, %v6918_v13 }
  0xcb   : > { %1092 = vmatpush1.bf16.msra.mxu1 %v6990_v3  ;;  %1165 = vmatpush1.bf16.msra.mxu0 %v6999_v37  ;;  %v8742_v41 = vmax.f32 %v6876_v55, 0.0  ;;  %v847_v15 = vmax.f32 %v6907_v8, 0.0  ;;  %v528_v6 = vmul.f32 %v6815_v29, %v6952_v47  ;;  %v544_v12 = vmul.f32 %v6815_v29, %v6904_v7 }
  0xcc   : > { %1093 = vmatprep.subr.bf16.mxu1 %v7035_v42  ;;  %1166 = vmatprep.subr.bf16.mxu0 %v7039_v44  ;;  %v8743_v3 = vmax.f32 %v6879_v56, 0.0  ;;  %v863_v37 = vmax.f32 %v735_v14, 0.0  ;;  %v737_v55 = vadd.f32 %v6859_v49, %v577_v23  ;;  %v530_v8 = vmul.f32 %v6818_v30, %v6952_v47 }
  0xcd   : > { %v7142_v31 = vpack.c.bf16 %v864_v28, %v8742_v41  ;;  %v8744_v59 = vmov 0   ;;  %v849_v39 = vmax.f32 %v6910_v9, 0.0  ;;  %v688_v42 = vadd.f32 %v6873_v54, %v528_v6 }
  0xce   : > { %v7153_v61 = vpack.c.bf16 %v866_v45, %v8743_v3  ;;  %1052 = vmatprep.mubr.bf16.mxu0 %v8744_v59  ;;  %1072 = vmatprep.mubr.bf16.mxu1 %v8744_v59  ;;  %v704_v44 = vadd.f32 %v6950_v46, %v544_v12  ;;  %v546_v56 = vmul.f32 %v6818_v30, %v6904_v7  ;;  %v865_v16 = vmax.f32 %v737_v55, 0.0 }
  0xcf   : > { %v885_v43 = vpack.c.bf16 %v765_v0, %v749_v21  ;;  %v690_v9 = vadd.f32 %v6873_v54, %v530_v8  ;;  %v527_v1 = vmul.f32 %v6827_v34, %v6952_v47  ;;  %1094 = vmatpush1.bf16.msra.mxu1 %v7063_v17  ;;  %1167 = vmatpush1.bf16.msra.mxu0 %v7084_v50  ;;  %v816_v58 = vmax.f32 %v688_v42, 0.0 }
  0xd0   : > { %v832_v22 = vmax.f32 %v704_v44, 0.0  ;;  %v706_v60 = vadd.f32 %v6950_v46, %v546_v56  ;;  %v543_v38 = vmul.f32 %v6827_v34, %v6904_v7  ;;  %1095 = vmatprep.subr.bf16.mxu1 %v7086_v5  ;;  %1168 = vmatprep.subr.bf16.mxu0 %v7088_v40  ;;  %v935_v25 = vpack.c.bf16 %v863_v37, %v847_v15 }
  0xd1   : > { %v687_v28 = vadd.f32 %v6873_v54, %v527_v1  ;;  %v529_v63 = vmul.f32 %v6825_v33, %v6952_v47  ;;  %v937_v17 = vpack.c.bf16 %v865_v16, %v849_v39  ;;  %v545_v21 = vmul.f32 %v6825_v33, %v6904_v7 }
  0xd2   : > { %v920_v45 = vpack.c.bf16 %v832_v22, %v816_v58  ;;  %v703_v50 = vadd.f32 %v6950_v46, %v543_v38  ;;  %5440 = vmatmul.mubr.msk.bf16.gmra.mxu0 %vm997_vm0, %v7168_v26  ;;  %5442 = vmatmul.mubr.msk.bf16.gmra.mxu1 %vm997_vm0, %v7173_v10  ;;  %v818_v5 = vmax.f32 %v690_v9, 0.0  ;;  %v496_v0 = vmul.f32 %v6815_v29, %v6978_v11 }
  0xd3   : > { %v689_v40 = vadd.f32 %v6873_v54, %v529_v63  ;;  %v512_v14 = vmul.f32 %v6815_v29, %v6971_v53  ;;  %1096 = vmatpush1.bf16.msra.mxu1 %v7090_v20  ;;  %1169 = vmatpush1.bf16.msra.mxu0 %v901_v24  ;;  %v834_v23 = vmax.f32 %v706_v60, 0.0  ;;  %v815_v41 = vmax.f32 %v687_v28, 0.0 }
  0xd4   : > { %v705_v15 = vadd.f32 %v6950_v46, %v545_v21  ;;  %v498_v6 = vmul.f32 %v6818_v30, %v6978_v11  ;;  %1097 = vmatprep.subr.bf16.mxu1 %v884_v48  ;;  %1170 = vmatprep.subr.bf16.mxu0 %v886_v57  ;;  %v656_v3 = vadd.f32 %v7010_v51, %v496_v0  ;;  %v831_v20 = vmax.f32 %v703_v50, 0.0 }
  0xd5   : > { %v817_v12 = vmax.f32 %v689_v40, 0.0  ;;  %v672_v37 = vadd.f32 %v7027_v32, %v512_v14  ;;  %v514_v55 = vmul.f32 %v6818_v30, %v6971_v53  ;;  %1115 = vmatprep.mubr.bf16.mxu1 %v8744_v59  ;;  %1188 = vmatprep.mubr.bf16.mxu0 %v8744_v59  ;;  %v495_v48 = vmul.f32 %v6827_v34, %v6978_v11 }
  0xd6   : > { %v833_v24 = vmax.f32 %v705_v15, 0.0  ;;  %v658_v8 = vadd.f32 %v7010_v51, %v498_v6  ;;  %v922_v57 = vpack.c.bf16 %v834_v23, %v818_v5  ;;  %v511_v44 = vmul.f32 %v6827_v34, %v6971_v53 }
  0xd7   : > { %v800_v39 = vmax.f32 %v672_v37, 0.0  ;;  %v674_v42 = vadd.f32 %v7027_v32, %v514_v55  ;;  %1098 = vmatpush1.bf16.msra.mxu1 %v7129_v2  ;;  %1171 = vmatpush1.bf16.msra.mxu0 %v885_v43  ;;  %v919_v56 = vpack.c.bf16 %v831_v20, %v815_v41  ;;  %v784_v9 = vmax.f32 %v656_v3, 0.0 }
  0xd8   : > { %v921_v16 = vpack.c.bf16 %v833_v24, %v817_v12  ;;  %v655_v1 = vadd.f32 %v7010_v51, %v495_v48  ;;  %1237 = vmatprep.subr.bf16.mxu1 %v7142_v31  ;;  %1310 = vmatprep.subr.bf16.mxu0 %v7153_v61  ;;  %v671_v22 = vadd.f32 %v7027_v32, %v511_v44  ;;  %v786_v43 = vmax.f32 %v658_v8, 0.0 }
  0xd9   : > { %v802_v58 = vmax.f32 %v674_v42, 0.0  ;;  %v497_v60 = vmul.f32 %v6825_v33, %v6978_v11  ;;  %v513_v38 = vmul.f32 %v6825_v33, %v6971_v53  ;;  %v904_v2 = vpack.c.bf16 %v800_v39, %v784_v9 }
  0xda   : > { %v464_v28 = vmul.f32 %v6815_v29, %v6995_v19  ;;  %v480_v63 = vmul.f32 %v6815_v29, %v7054_v18  ;;  %5443 = vmatmul.mubr.msk.bf16.vlgmr.msra.gmra.mxu1 %vm997_vm0, %v7110_v27  ;;  %5447 = vmatmul.mubr.msk.bf16.vlgmr.msra.gmra.mxu0 %vm997_vm0, %v7110_v27  ;;  %v799_v31 = vmax.f32 %v671_v22, 0.0  ;;  %v466_v21 = vmul.f32 %v6818_v30, %v6995_v19 }
  0xdb   : > { %v657_v61 = vadd.f32 %v7010_v51, %v497_v60  ;;  %v673_v50 = vadd.f32 %v7027_v32, %v513_v38  ;;  %1238 = vmatpush1.bf16.msra.mxu1 %v935_v25  ;;  %1311 = vmatpush1.bf16.msra.mxu0 %v937_v17  ;;  %v482_v40 = vmul.f32 %v6818_v30, %v7054_v18  ;;  %v783_v14 = vmax.f32 %v655_v1, 0.0  ;;  %v8745_v60 = vld [vmem:[#allocation9_spill] sm:$0xff] }
  0xdc   : > { %v624_v5 = vadd.f32 %v7024_v62, %v464_v28  ;;  %v640_v29 = vadd.f32 %v7075_v4, %v480_v63  ;;  %1239 = vmatprep.subr.bf16.mxu1 %v920_v45  ;;  %1312 = vmatprep.subr.bf16.mxu0 %v922_v57  ;;  %v906_v0 = vpack.c.bf16 %v802_v58, %v786_v43  ;;  %v8747_v63 = vld [vmem:[#allocation15_spill] sm:$0xff] }
  0xdd   : > { %v801_v23 = vmax.f32 %v673_v50, 0.0  ;;  %v626_v41 = vadd.f32 %v7024_v62, %v466_v21  ;;  %1125 = vmatprep.mubr.bf16.mxu1 %v8744_v59  ;;  %1198 = vmatprep.mubr.bf16.mxu0 %v8744_v59  ;;  %v642_v17 = vadd.f32 %v7075_v4, %v482_v40  ;;  %v463_v15 = vmul.f32 %v6827_v34, %v6995_v19 }
  0xde   : > { %v768_v25 = vmax.f32 %v640_v29, 0.0  ;;  %v479_v30 = vmul.f32 %v6827_v34, %v7054_v18  ;;  %v903_v45 = vpack.c.bf16 %v799_v31, %v783_v14  ;;  %v785_v6 = vmax.f32 %v657_v61, 0.0  ;;  %v8749_v14 = vld [vmem:[#allocation12_spill] sm:$0xff] }
  0xdf   : > { %v752_v12 = vmax.f32 %v624_v5, 0.0  ;;  %v465_v3 = vmul.f32 %v6825_v33, %v6995_v19  ;;  %1240 = vmatpush1.bf16.msra.mxu1 %v919_v56  ;;  %1313 = vmatpush1.bf16.msra.mxu0 %v921_v16  ;;  %v770_v37 = vmax.f32 %v642_v17, 0.0  ;;  %v623_v55 = vadd.f32 %v7024_v62, %v463_v15  ;;  %v8748_v5 = vld [vmem:[#allocation11_spill] sm:$0xff]  ;;  %v8751_v17 = vld [vmem:[#allocation8_spill] sm:$0xff] }
  0xe0   : > { %v639_v20 = vadd.f32 %v7075_v4, %v479_v30  ;;  %v481_v24 = vmul.f32 %v6825_v33, %v7054_v18  ;;  %1241 = vmatprep.subr.bf16.mxu1 %v904_v2  ;;  %1314 = vmatprep.subr.bf16.mxu0 %v906_v0  ;;  %v754_v8 = vmax.f32 %v626_v41, 0.0  ;;  %v580_v48 = vmul.f32 %v6830_v35, %v6918_v13  ;;  %v8746_v2 = vld [vmem:[#allocation14_spill] sm:$0xff] }
  0xe1   : > { %v625_v34 = vadd.f32 %v7024_v62, %v465_v3  ;;  %v582_v57 = vmul.f32 %v6833_v36, %v6918_v13  ;;  %v905_v39 = vpack.c.bf16 %v801_v23, %v785_v6  ;;  %v888_v42 = vpack.c.bf16 %v768_v25, %v752_v12  ;;  %v8750_v23 = vld [vmem:[#allocation7_spill] sm:$0xff]  ;;  %v8752_v3 = vld [vmem:[#allocation5_spill] sm:$0xff] }
  0xe2   : > { %v767_v44 = vmax.f32 %v639_v20, 0.0  ;;  %v641_v56 = vadd.f32 %v7075_v4, %v481_v24  ;;  %5444 = vmatmul.mubr.msk.bf16.gmra.mxu1 %vm997_vm0, %v7168_v26  ;;  %5448 = vmatmul.mubr.msk.bf16.gmra.mxu0 %vm997_vm0, %v7168_v26  ;;  %v890_v33 = vpack.c.bf16 %v770_v37, %v754_v8  ;;  %v740_v16 = vadd.f32 %v6859_v49, %v580_v48 }
  0xe3   : > { %v742_v9 = vadd.f32 %v6859_v49, %v582_v57  ;;  %1242 = vmatpush1.bf16.msra.mxu1 %v903_v45  ;;  %1315 = vmatpush1.bf16.msra.mxu0 %v905_v39  ;;  %v751_v1 = vmax.f32 %v623_v55, 0.0  ;;  %v753_v58 = vmax.f32 %v625_v34, 0.0  ;;  %v579_v38 = vmul.f32 %v8745_v60, %v6918_v13  ;;  %v8754_v55 = vld [vmem:[#allocation6_spill] sm:$0xff] }
  0xe4   : > { %v769_v22 = vmax.f32 %v641_v56, 0.0  ;;  %1243 = vmatprep.subr.bf16.mxu1 %v888_v42  ;;  %1316 = vmatprep.subr.bf16.mxu0 %v890_v33  ;;  %v852_v43 = vmax.f32 %v8746_v2, 0.0  ;;  %v868_v28 = vmax.f32 %v740_v16, 0.0  ;;  %v854_v31 = vmax.f32 %v8747_v63, 0.0 }
  0xe5   : > { %v870_v61 = vmax.f32 %v742_v9, 0.0  ;;  %v887_v50 = vpack.c.bf16 %v767_v44, %v751_v1  ;;  %1135 = vmatprep.mubr.bf16.mxu1 %v8744_v59  ;;  %1208 = vmatprep.mubr.bf16.mxu0 %v8744_v59  ;;  %v581_v29 = vmul.f32 %v8748_v5, %v6918_v13  ;;  %v723_v41 = vadd.f32 %v8750_v23, %v8749_v14 }
  0xe6   : > { %v889_v21 = vpack.c.bf16 %v769_v22, %v753_v58  ;;  %v940_v40 = vpack.c.bf16 %v868_v28, %v852_v43  ;;  %v739_v25 = vadd.f32 %v6859_v49, %v579_v38  ;;  %v565_v15 = vmul.f32 %v8748_v5, %v8751_v17 }
  0xe7   : > { %v942_v0 = vpack.c.bf16 %v870_v61, %v854_v31  ;;  %1244 = vmatpush1.bf16.msra.mxu1 %v887_v50  ;;  %v532_v30 = vmul.f32 %v6830_v35, %v6952_v47  ;;  %v534_v45 = vmul.f32 %v6833_v36, %v6952_v47  ;;  %v741_v6 = vadd.f32 %v6859_v49, %v581_v29 }
  0xe8   : > { %1317 = vmatpush1.bf16.msra.mxu0 %v889_v21  ;;  %1383 = vmatprep.subr.bf16.mxu1 %v940_v40  ;;  %v531_v12 = vmul.f32 %v8745_v60, %v6952_v47  ;;  %v8753_v37 = vsub.s32 7, %v8752_v3  ;;  %v851_v24 = vmax.f32 %v723_v41, 0.0  ;;  %v867_v8 = vmax.f32 %v739_v25, 0.0 }
  0xe9   : > { %1456 = vmatprep.subr.bf16.mxu0 %v942_v0  ;;  %v725_v34 = vadd.f32 %v8750_v23, %v565_v15  ;;  %v533_v48 = vmul.f32 %v8748_v5, %v6952_v47  ;;  %v548_v57 = vmul.f32 %v6830_v35, %v6904_v7  ;;  %v692_v39 = vadd.f32 %v6873_v54, %v532_v30 }
  0xea   : > { %5445 = vmatmul.mubr.msk.bf16.gmra.mxu1 %vm997_vm0, %v7115_v52  ;;  %5449 = vmatmul.mubr.msk.bf16.gmra.mxu0 %vm997_vm0, %v7115_v52  ;;  %v7294_v20 = vrot.slane %v8754_v55, %v8753_v37  ;;  %v550_v42 = vmul.f32 %v6833_v36, %v6904_v7  ;;  %v694_v44 = vadd.f32 %v6873_v54, %v534_v45  ;;  %v869_v56 = vmax.f32 %v741_v6, 0.0 }
  0xeb   : > { %1145 = vmatprep.mubr.bf16.mxu1 %v8744_v59  ;;  %1218 = vmatprep.mubr.bf16.mxu0 %v8744_v59  ;;  %v547_v33 = vmul.f32 %v8745_v60, %v6904_v7  ;;  %v691_v16 = vadd.f32 %v6873_v54, %v531_v12  ;;  %v516_v9 = vmul.f32 %v6830_v35, %v6971_v53  ;;  %v820_v31 = vmax.f32 %v692_v39, 0.0 }
  0xec   : > { %v708_v1 = vadd.f32 %v6950_v46, %v548_v57  ;;  %v710_v58 = vadd.f32 %v6950_v46, %v550_v42  ;;  %v549_v22 = vmul.f32 %v8748_v5, %v6904_v7  ;;  %v693_v38 = vadd.f32 %v6873_v54, %v533_v48 }
  0xed   : > { %v707_v2 = vadd.f32 %v6950_v46, %v547_v33  ;;  %v500_v43 = vmul.f32 %v6830_v35, %v6978_v11  ;;  %v676_v28 = vadd.f32 %v7027_v32, %v516_v9  ;;  %v518_v63 = vmul.f32 %v6833_v36, %v6971_v53 }
  0xee   : > { %v822_v61 = vmax.f32 %v694_v44, 0.0  ;;  %v709_v50 = vadd.f32 %v6950_v46, %v549_v22  ;;  %v502_v21 = vmul.f32 %v6833_v36, %v6978_v11  ;;  %v853_v29 = vmax.f32 %v725_v34, 0.0 }
  0xef   : > { %v819_v40 = vmax.f32 %v691_v16, 0.0  ;;  %v660_v0 = vadd.f32 %v7010_v51, %v500_v43  ;;  %v678_v14 = vadd.f32 %v7027_v32, %v518_v63  ;;  %v836_v41 = vmax.f32 %v708_v1, 0.0 }
  0xf0   : > { %v838_v25 = vmax.f32 %v710_v58, 0.0  ;;  %v821_v15 = vmax.f32 %v693_v38, 0.0  ;;  %v662_v30 = vadd.f32 %v7010_v51, %v502_v21  ;;  %v939_v45 = vpack.c.bf16 %v867_v8, %v851_v24 }
  0xf1   : > { %v835_v6 = vmax.f32 %v707_v2, 0.0  ;;  %v804_v12 = vmax.f32 %v676_v28, 0.0  ;;  %v568_v3 = vmul.f32 %v7294_v20, %v8751_v17  ;;  %v941_v37 = vpack.c.bf16 %v869_v56, %v853_v29 }
  0xf2   : > { %5446 = vmatmul.mubr.msk.bf16.gmra.mxu1 %vm997_vm0, %v7173_v10  ;;  %5450 = vmatmul.mubr.msk.bf16.gmra.mxu0 %vm997_vm0, %v7173_v10  ;;  %v924_v55 = vpack.c.bf16 %v836_v41, %v820_v31  ;;  %v926_v34 = vpack.c.bf16 %v838_v25, %v822_v61  ;;  %v837_v48 = vmax.f32 %v709_v50, 0.0  ;;  %v788_v39 = vmax.f32 %v660_v0, 0.0  ;;  %v8755_v25 = vld [vmem:[#allocation10_spill] sm:$0xff] }
  0xf3   : > { %1261 = vmatprep.mubr.bf16.mxu1 %v8744_v59  ;;  %1334 = vmatprep.mubr.bf16.mxu0 %v8744_v59  ;;  %v923_v57 = vpack.c.bf16 %v835_v6, %v819_v40  ;;  %v806_v42 = vmax.f32 %v678_v14, 0.0  ;;  %v499_v44 = vmul.f32 %v8745_v60, %v6978_v11  ;;  %v790_v16 = vmax.f32 %v662_v30, 0.0 }
  0xf4   : > { %v925_v33 = vpack.c.bf16 %v837_v48, %v821_v15  ;;  %v515_v24 = vmul.f32 %v8745_v60, %v6971_v53  ;;  %v501_v8 = vmul.f32 %v8748_v5, %v6978_v11  ;;  %v908_v9 = vpack.c.bf16 %v804_v12, %v788_v39  ;;  %v8756_v12 = vld [vmem:[#allocation13_spill] sm:$0xff] }
  0xf5   : > { %v659_v17 = vadd.f32 %v7010_v51, %v499_v44  ;;  %v517_v56 = vmul.f32 %v8748_v5, %v6971_v53  ;;  %v468_v1 = vmul.f32 %v6830_v35, %v6995_v19  ;;  %v484_v38 = vmul.f32 %v6830_v35, %v7054_v18 }
  0xf6   : > { %v675_v58 = vadd.f32 %v7027_v32, %v515_v24  ;;  %v661_v22 = vadd.f32 %v7010_v51, %v501_v8  ;;  %v486_v2 = vmul.f32 %v6833_v36, %v7054_v18  ;;  %v910_v43 = vpack.c.bf16 %v806_v42, %v790_v16 }
  0xf7   : > { %v677_v28 = vadd.f32 %v7027_v32, %v517_v56  ;;  %v628_v63 = vadd.f32 %v7024_v62, %v468_v1  ;;  %v470_v31 = vmul.f32 %v6833_v36, %v6995_v19  ;;  %v644_v61 = vadd.f32 %v7075_v4, %v484_v38 }
  0xf8   : > { %v646_v35 = vadd.f32 %v7075_v4, %v486_v2  ;;  %v584_v50 = vmul.f32 %v7294_v20, %v6918_v13  ;;  %v787_v21 = vmax.f32 %v659_v17, 0.0  ;;  %v483_v36 = vmul.f32 %v8745_v60, %v7054_v18 }
  0xf9   : > { %v630_v29 = vadd.f32 %v7024_v62, %v470_v31  ;;  %v485_v40 = vmul.f32 %v8748_v5, %v7054_v18  ;;  %v803_v0 = vmax.f32 %v675_v58, 0.0  ;;  %v467_v14 = vmul.f32 %v8745_v60, %v6995_v19 }
  0xfa   : > { %5451 = vmatmul.mubr.msk.bf16.vlgmr.msra.gmra.mxu1 %vm997_vm0, %v7110_v27  ;;  %5455 = vmatmul.mubr.msk.bf16.vlgmr.msra.gmra.mxu0 %vm997_vm0, %v7110_v27  ;;  %v469_v41 = vmul.f32 %v8748_v5, %v6995_v19  ;;  %v583_v15 = vmul.f32 %v8755_v25, %v6918_v13  ;;  %v805_v30 = vmax.f32 %v677_v28, 0.0  ;;  %v774_v60 = vmax.f32 %v646_v35, 0.0 }
  0xfb   : > { %1384 = vmatpush1.bf16.msra.mxu1 %v939_v45  ;;  %1457 = vmatpush1.bf16.msra.mxu0 %v941_v37  ;;  %v643_v45 = vadd.f32 %v7075_v4, %v483_v36  ;;  %v645_v6 = vadd.f32 %v7075_v4, %v485_v40  ;;  %v727_v37 = vadd.f32 %v8750_v23, %v8756_v12  ;;  %v789_v13 = vmax.f32 %v661_v22, 0.0 }
  0xfc   : > { %1385 = vmatprep.subr.bf16.mxu1 %v924_v55  ;;  %1458 = vmatprep.subr.bf16.mxu0 %v926_v34  ;;  %v772_v55 = vmax.f32 %v644_v61, 0.0  ;;  %v744_v34 = vadd.f32 %v6859_v49, %v584_v50  ;;  %v743_v5 = vadd.f32 %v6859_v49, %v583_v15  ;;  %v756_v48 = vmax.f32 %v628_v63, 0.0 }
  0xfd   : > { %1271 = vmatprep.mubr.bf16.mxu1 %v8744_v59  ;;  %1344 = vmatprep.mubr.bf16.mxu0 %v8744_v59  ;;  %v627_v39 = vadd.f32 %v7024_v62, %v467_v14  ;;  %v629_v42 = vadd.f32 %v7024_v62, %v469_v41  ;;  %v758_v44 = vmax.f32 %v630_v29, 0.0  ;;  %v728_v16 = vadd.f32 %v8750_v23, %v568_v3 }
  0xfe   : > { %v855_v24 = vmax.f32 %v727_v37, 0.0  ;;  %v871_v8 = vmax.f32 %v743_v5, 0.0  ;;  %v907_v17 = vpack.c.bf16 %v803_v0, %v787_v21  ;;  %v909_v56 = vpack.c.bf16 %v805_v30, %v789_v13 }
  0xff   : > { %1386 = vmatpush1.bf16.msra.mxu1 %v923_v57  ;;  %1459 = vmatpush1.bf16.msra.mxu0 %v925_v33  ;;  %v771_v1 = vmax.f32 %v643_v45, 0.0  ;;  %v773_v58 = vmax.f32 %v645_v6, 0.0  ;;  %v892_v49 = vpack.c.bf16 %v772_v55, %v756_v48  ;;  %v894_v57 = vpack.c.bf16 %v774_v60, %v758_v44 }
 0x100   : > { %1387 = vmatprep.subr.bf16.mxu1 %v908_v9  ;;  %1460 = vmatprep.subr.bf16.mxu0 %v910_v43  ;;  %v872_v33 = vmax.f32 %v744_v34, 0.0  ;;  %v943_v9 = vpack.c.bf16 %v871_v8, %v855_v24  ;;  %v755_v22 = vmax.f32 %v627_v39, 0.0  ;;  %v757_v23 = vmax.f32 %v629_v42, 0.0  ;;  %v6615_v8 = vld [vmem:[%s8681_s5 + $0x28] sm:$0xff] }
 0x101   : > { %v856_v3 = vmax.f32 %v728_v16, 0.0  ;;  %v536_v28 = vmul.f32 %v7294_v20, %v6952_v47  ;;  %v535_v63 = vmul.f32 %v8755_v25, %v6952_v47  ;;  %v552_v31 = vmul.f32 %v7294_v20, %v6904_v7 }
 0x102   : > { %5452 = vmatmul.mubr.msk.bf16.gmra.mxu1 %vm997_vm0, %v7168_v26  ;;  %5456 = vmatmul.mubr.msk.bf16.gmra.mxu0 %vm997_vm0, %v7168_v26  ;;  %v891_v38 = vpack.c.bf16 %v771_v1, %v755_v22  ;;  %v893_v2 = vpack.c.bf16 %v773_v58, %v757_v23  ;;  %v520_v47 = vmul.f32 %v7294_v20, %v6971_v53  ;;  %v6617_v1 = vld [vmem:[%s8681_s5 + $0x38] sm:$0xff] }
 0x103   : > { %1388 = vmatpush1.bf16.msra.mxu1 %v907_v17  ;;  %1461 = vmatpush1.bf16.msra.mxu0 %v909_v56  ;;  %v944_v43 = vpack.c.bf16 %v872_v33, %v856_v3  ;;  %v696_v61 = vadd.f32 %v6873_v54, %v536_v28  ;;  %v712_v35 = vadd.f32 %v6950_v46, %v552_v31  ;;  %v7496_v17 = vpop.permute.xlu1 %970  ;;  %v6616_v56 = vld [vmem:[%s8681_s5 + $0x30] sm:$0xff]  ;;  %v7506_v3 = vpop.permute.xlu0 %974 }
 0x104   : > { %1389 = vmatprep.subr.bf16.mxu1 %v892_v49  ;;  %1462 = vmatprep.subr.bf16.mxu0 %v894_v57  ;;  %v551_v50 = vmul.f32 %v8755_v25, %v6904_v7  ;;  %v695_v21 = vadd.f32 %v6873_v54, %v535_v63  ;;  %v504_v36 = vmul.f32 %v7294_v20, %v6978_v11 }
 0x105   : > { %1281 = vmatprep.mubr.bf16.mxu1 %v8744_v59  ;;  %1354 = vmatprep.mubr.bf16.mxu0 %v8744_v59  ;;  %v824_v29 = vmax.f32 %v696_v61, 0.0  ;;  %v680_v40 = vadd.f32 %v7027_v32, %v520_v47  ;;  %v519_v14 = vmul.f32 %v8755_v25, %v6971_v53  ;;  %v840_v41 = vmax.f32 %v712_v35, 0.0 }
 0x106   : > { %v711_v0 = vadd.f32 %v6950_v46, %v551_v50  ;;  %v664_v15 = vadd.f32 %v7010_v51, %v504_v36  ;;  %v488_v30 = vmul.f32 %v7294_v20, %v7054_v18  ;;  %v823_v7 = vmax.f32 %v695_v21, 0.0 }
 0x107   : > { %1390 = vmatpush1.bf16.msra.mxu1 %v891_v38  ;;  %1463 = vmatpush1.bf16.msra.mxu0 %v893_v2  ;;  %v503_v54 = vmul.f32 %v8755_v25, %v6978_v11  ;;  %v679_v45 = vadd.f32 %v7027_v32, %v519_v14  ;;  %v928_v46 = vpack.c.bf16 %v840_v41, %v824_v29  ;;  %v808_v53 = vmax.f32 %v680_v40, 0.0  ;;  %v7510_v35 = vpop.permute.xlu0 %954 }
 0x108   : > { %1529 = vmatprep.subr.bf16.mxu1 %v944_v43  ;;  %v472_v6 = vmul.f32 %v7294_v20, %v6995_v19  ;;  %v648_v12 = vadd.f32 %v7075_v4, %v488_v30  ;;  %v839_v37 = vmax.f32 %v711_v0, 0.0  ;;  %v487_v32 = vmul.f32 %v8755_v25, %v7054_v18 }
 0x109   : > { %v663_v11 = vadd.f32 %v7010_v51, %v503_v54  ;;  %v792_v55 = vmax.f32 %v664_v15, 0.0  ;;  %v807_v5 = vmax.f32 %v679_v45, 0.0  ;;  %v471_v20 = vmul.f32 %v8755_v25, %v6995_v19  ;;  %v6614_v25 = vld [vmem:[%s8681_s5 + $0x20] sm:$0xff] }
 0x10a   : > { %5453 = vmatmul.mubr.msk.bf16.gmra.mxu1 %vm997_vm0, %v7115_v52  ;;  %5457 = vmatmul.mubr.msk.bf16.gmra.mxu0 %vm997_vm0, %v7115_v52  ;;  %v632_v60 = vadd.f32 %v7024_v62, %v472_v6  ;;  %v927_v34 = vpack.c.bf16 %v839_v37, %v823_v7  ;;  %v647_v13 = vadd.f32 %v7075_v4, %v487_v32  ;;  %v776_v39 = vmax.f32 %v648_v12, 0.0 }
 0x10b   : > { %1291 = vmatprep.mubr.bf16.mxu1 %v8744_v59  ;;  %1364 = vmatprep.mubr.bf16.mxu0 %v8744_v59  ;;  %v912_v48 = vpack.c.bf16 %v808_v53, %v792_v55  ;;  %v791_v51 = vmax.f32 %v663_v11, 0.0  ;;  %v631_v42 = vadd.f32 %v7024_v62, %v471_v20  ;;  %v6673_v62 = vmov 3   ;;  %v7527_v37 = vpop.permute.xlu0 %946 }
 0x10c   : > { %v760_v18 = vmax.f32 %v632_v60, 0.0  ;;  %v775_v16 = vmax.f32 %v647_v13, 0.0  ;;  %6425 = vset.pattern.permute.xlu1 %v6673_v62  ;;  %6424 = vset.pattern.permute.xlu0 %v6673_v62 }
 0x10d   : > { %v911_v44 = vpack.c.bf16 %v807_v5, %v791_v51  ;;  %v759_v19 = vmax.f32 %v631_v42, 0.0 }
 0x10e   : > { %v896_v24 = vpack.c.bf16 %v776_v39, %v760_v18 }
 0x10f   : > { %v895_v4 = vpack.c.bf16 %v775_v16, %v759_v19 }
 0x112   : > { %5454 = vmatmul.mubr.msk.bf16.gmra.mxu1 %vm997_vm0, %v7173_v10  ;;  %5458 = vmatmul.mubr.msk.bf16.gmra.mxu0 %vm997_vm0, %v7173_v10 }
 0x113   : > { %1407 = vmatprep.mubr.bf16.mxu1 %v8744_v59  ;;  %1480 = vmatprep.mubr.bf16.mxu0 %v8744_v59 }
 0x11a   : > { %5459 = vmatmul.mubr.msk.bf16.vlgmr.msra.gmra.mxu1 %vm997_vm0, %v7110_v27  ;;  %5463 = vmatmul.mubr.msk.bf16.vlgmr.msra.gmra.mxu0 %vm997_vm0, %v7110_v27 }
 0x11b   : > { %1530 = vmatpush1.bf16.msra.mxu1 %v943_v9  ;;  %1417 = vmatprep.mubr.bf16.mxu1 %v8744_v59  ;;  %v7504_v9 = vpop.permute.xlu1 %962 }
 0x11c   : > { %1531 = vmatprep.subr.bf16.mxu1 %v928_v46  ;;  %1490 = vmatprep.mubr.bf16.mxu0 %v8744_v59 }
 0x11f   : > { %1532 = vmatpush1.bf16.msra.mxu1 %v927_v34  ;;  %v7508_v63 = vpop.permute.xlu1 %966 }
 0x120   : > { %1533 = vmatprep.subr.bf16.mxu1 %v912_v48 }
 0x122   : > { %5460 = vmatmul.mubr.msk.bf16.gmra.mxu1 %vm997_vm0, %v7168_v26  ;;  %5464 = vmatmul.mubr.msk.bf16.gmra.mxu0 %vm997_vm0, %v7168_v26 }
 0x123   : > { %1534 = vmatpush1.bf16.msra.mxu1 %v911_v44  ;;  %1427 = vmatprep.mubr.bf16.mxu1 %v8744_v59  ;;  %v7513_v29 = vpop.permute.xlu1 %958 }
 0x124   : > { %1535 = vmatprep.subr.bf16.mxu1 %v896_v24  ;;  %1500 = vmatprep.mubr.bf16.mxu0 %v8744_v59 }
 0x127   : > { %1536 = vmatpush1.bf16.msra.mxu1 %v895_v4  ;;  %v7533_v48 = vpop.permute.xlu1 %950 }
 0x12a   : > { %5461 = vmatmul.mubr.msk.bf16.gmra.mxu1 %vm997_vm0, %v7115_v52  ;;  %5465 = vmatmul.mubr.msk.bf16.gmra.mxu0 %vm997_vm0, %v7115_v52 }
 0x12b   : > { %1437 = vmatprep.mubr.bf16.mxu1 %v8744_v59  ;;  %1510 = vmatprep.mubr.bf16.mxu0 %v8744_v59 }
 0x132   : > { %5462 = vmatmul.mubr.msk.bf16.gmra.mxu1 %vm997_vm0, %v7173_v10  ;;  %5466 = vmatmul.mubr.msk.bf16.gmra.mxu0 %vm997_vm0, %v7173_v10 }
 0x133   : > { %1553 = vmatprep.mubr.bf16.mxu1 %v8744_v59  ;;  %1891 = vmatprep.mubr.bf16.mxu0 %v8744_v59 }
 0x13a   : > { %5467 = vmatmul.mubr.msk.bf16.vlgmr.msra.gmra.mxu1 %vm997_vm0, %v7110_v27  ;;  %v6610_v27 = vld [vmem:[%s8681_s5 + $0x8] sm:$0xff] }
 0x13b   : > { %1563 = vmatprep.mubr.bf16.mxu1 %v8744_v59  ;;  %1800 = vperm.xlu1 %6425, %v6610_v27  }
 0x142   : > { %5468 = vmatmul.mubr.msk.bf16.gmra.mxu1 %vm997_vm0, %v7168_v26  ;;  %v6611_v26 = vld [vmem:[%s8681_s5] sm:$0xff] }
 0x143   : > { %1573 = vmatprep.mubr.bf16.mxu1 %v8744_v59  ;;  %1796 = vperm.xlu0 %6424, %v6611_v26  }
 0x14a   : > { %5469 = vmatmul.mubr.msk.bf16.gmra.mxu1 %vm997_vm0, %v7115_v52  ;;  %v6612_v52 = vld [vmem:[%s8681_s5 + $0x10] sm:$0xff] }
 0x14b   : > { %1583 = vmatprep.mubr.bf16.mxu1 %v8744_v59  ;;  %1804 = vperm.xlu1 %6425, %v6612_v52  }
 0x14f   : > { %1812 = vperm.xlu1 %6425, %v6614_v25  }
 0x152   : > { %5470 = vmatmul.mubr.msk.bf16.gmra.mxu1 %vm997_vm0, %v7173_v10  ;;  %v6613_v10 = vld [vmem:[%s8681_s5 + $0x18] sm:$0xff] }
 0x153   : > { %1964 = vmatprep.mubr.bf16.mxu1 %v8744_v59  ;;  %1808 = vperm.xlu0 %6424, %v6613_v10  }
 0x154   : > { %1820 = vperm.xlu1 %6425, %v6616_v56  }
 0x157   : > { %1816 = vperm.xlu0 %6424, %v6615_v8  }
 0x15b   : > { %1824 = vperm.xlu0 %6424, %v6617_v1  }
 0x18a   : > { %v1044_v58 = vpop.f32.mrf.mxu0  ;;  %v1064_v49 = vpop.f32.mrf.mxu1 }
 0x18b   : > { %v1065_v11 = vadd.f32 %v1064_v49, %v7504_v9  ;;  %v1045_v10 = vadd.f32 %v1044_v58, %v7527_v37 }
 0x18c   : > { %v1046_v57 = vpop.f32.mrf.mxu0  ;;  %v1066_v33 = vpop.f32.mrf.mxu1 }
 0x18d   : > { %v1067_v41 = vadd.f32 %v1066_v33, %v7504_v9  ;;  %v1047_v5 = vadd.f32 %v1046_v57, %v7527_v37  ;;  %v1658_v25 = vmax.f32 %v1065_v11, 0.0 }
 0x18e   : > { %v1048_v22 = vpop.f32.mrf.mxu0  ;;  %v1068_v23 = vpop.f32.mrf.mxu1 }
 0x18f   : > { %v1069_v53 = vadd.f32 %v1068_v23, %v7508_v63  ;;  %v1659_v20 = vmax.f32 %v1067_v41, 0.0  ;;  %v1049_v1 = vadd.f32 %v1048_v22, %v7533_v48  ;;  %v1595_v23 = vmax.f32 %v1047_v5, 0.0 }
 0x190   : > { %v1050_v38 = vpop.f32.mrf.mxu0  ;;  %v1070_v2 = vpop.f32.mrf.mxu1 }
 0x191   : > { %v1071_v36 = vadd.f32 %v1070_v2, %v7508_v63  ;;  %v1051_v19 = vadd.f32 %v1050_v38, %v7533_v48  ;;  %v1674_v4 = vmax.f32 %v1069_v53, 0.0 }
 0x192   : > { %v1054_v43 = vpop.f32.mrf.mxu0  ;;  %v1074_v28 = vpop.f32.mrf.mxu1 }
 0x193   : > { %v1075_v15 = vadd.f32 %v1074_v28, %v7496_v17  ;;  %v1675_v32 = vmax.f32 %v1071_v36, 0.0  ;;  %v1055_v39 = vadd.f32 %v1054_v43, %v7510_v35  ;;  %v1611_v38 = vmax.f32 %v1051_v19, 0.0 }
 0x194   : > { %v1056_v31 = vpop.f32.mrf.mxu0  ;;  %v1076_v61 = vpop.f32.mrf.mxu1  ;;  %v1763_v2 = vpack.c.bf16 %v1674_v4, %v1658_v25 }
 0x195   : > { %v1077_v40 = vadd.f32 %v1076_v61, %v7496_v17  ;;  %v1057_v45 = vadd.f32 %v1056_v31, %v7510_v35  ;;  %v1690_v13 = vmax.f32 %v1075_v15, 0.0  ;;  %v1764_v52 = vpack.c.bf16 %v1675_v32, %v1659_v20 }
 0x196   : > { %v1058_v47 = vpop.f32.mrf.mxu0  ;;  %v1078_v50 = vpop.f32.mrf.mxu1  ;;  %v1626_v8 = vmax.f32 %v1055_v39, 0.0  ;;  %v1594_v61 = vmax.f32 %v1045_v10, 0.0 }
 0x197   : > { %v1079_v21 = vadd.f32 %v1078_v50, %v7506_v3  ;;  %v1691_v55 = vmax.f32 %v1077_v40, 0.0  ;;  %v1059_v51 = vadd.f32 %v1058_v47, %v7513_v29  ;;  %v1627_v16 = vmax.f32 %v1057_v45, 0.0 }
 0x198   : > { %v1060_v0 = vpop.f32.mrf.mxu0  ;;  %v1080_v14 = vpop.f32.mrf.mxu1  ;;  %v1610_v47 = vmax.f32 %v1049_v1, 0.0 }
 0x199   : > { %v1081_v30 = vadd.f32 %v1080_v14, %v7506_v3  ;;  %v1061_v46 = vadd.f32 %v1060_v0, %v7513_v29  ;;  %v1706_v6 = vmax.f32 %v1079_v21, 0.0  ;;  %v1642_v56 = vmax.f32 %v1059_v51, 0.0 }
 0x19a   : > { %v7520_v7 = vpop.f32.mrf.mxu1  ;;  %v7522_v54 = vpop.f32.mrf.mxu0  ;;  %v1732_v21 = vpack.c.bf16 %v1611_v38, %v1595_v23  ;;  %v1731_v40 = vpack.c.bf16 %v1610_v47, %v1594_v61 }
 0x19b   : > { %v1707_v12 = vmax.f32 %v1081_v30, 0.0  ;;  %v1643_v24 = vmax.f32 %v1061_v46, 0.0  ;;  %v1779_v62 = vpack.c.bf16 %v1706_v6, %v1690_v13  ;;  %v1747_v31 = vpack.c.bf16 %v1642_v56, %v1626_v8  ;;  %v7549_v30 = vld [vmem:[%s8677_s1 + $0x20] sm:$0xff]  }
 0x19c   : > { %v7530_v60 = vpop.f32.mrf.mxu1  ;;  %v1192_v34 = vpop.f32.mrf.mxu0  ;;  %v7556_v32 = vadd.f32 %v7520_v7, %v7527_v37 }
 0x19d   : > { %v1780_v44 = vpack.c.bf16 %v1707_v12, %v1691_v55  ;;  %v1748_v33 = vpack.c.bf16 %v1643_v24, %v1627_v16  ;;  %v7559_v55 = vadd.f32 %v1192_v34, %v7527_v37 }
 0x19e   : > { %v7537_v42 = vpop.f32.mrf.mxu1  ;;  %v7539_v18 = vpop.f32.mrf.mxu0 }
 0x19f   : > { %1867 = vmatprep.subr.bf16.mxu0 %v1780_v44  ;;  %v7573_v44 = vld [vmem:[%s8677_s1 + $0x28] sm:$0xff]  }
 0x1a0   : > { %v1123_v27 = vpop.f32.mrf.mxu1  ;;  %v1196_v26 = vpop.f32.mrf.mxu0  ;;  %1868 = vmatpush1.bf16.msra.mxu0 %v1779_v62 }
 0x1a1   : > { %1869 = vmatprep.subr.bf16.mxu0 %v1764_v52  ;;  %v7562_v5 = vadd.f32 %v1123_v27, %v7533_v48  ;;  %v7565_v20 = vadd.f32 %v1196_v26, %v7533_v48 }
 0x1a2   : > { %v1127_v49 = vpop.f32.mrf.mxu1  ;;  %v1200_v57 = vpop.f32.mrf.mxu0 }
 0x1a3   : > { %v7568_v13 = vadd.f32 %v1127_v49, %v7510_v35  ;;  %v7576_v7 = vadd.f32 %v1200_v57, %v7510_v35 }
 0x1a4   : > { %v1129_v43 = vpop.f32.mrf.mxu1  ;;  %v1202_v28 = vpop.f32.mrf.mxu0  ;;  %1870 = vmatpush1.bf16.msra.mxu0 %v1763_v2 }
 0x1a5   : > { %1871 = vmatprep.subr.bf16.mxu0 %v1748_v33  ;;  %v7579_v34 = vadd.f32 %v1129_v43, %v7510_v35  ;;  %v7582_v16 = vadd.f32 %v1202_v28, %v7510_v35 }
 0x1a6   : > { %v1131_v58 = vpop.f32.mrf.mxu1  ;;  %v7544_v50 = vpop.f32.mrf.mxu0 }
 0x1a7   : > { %v7585_v24 = vadd.f32 %v1131_v58, %v7513_v29 }
 0x1a8   : > { %v1133_v36 = vpop.f32.mrf.mxu1  ;;  %v1206_v22 = vpop.f32.mrf.mxu0  ;;  %1872 = vmatpush1.bf16.msra.mxu0 %v1747_v31 }
 0x1a9   : > { %1873 = vmatprep.subr.bf16.mxu0 %v1732_v21  ;;  %v7588_v19 = vadd.f32 %v1133_v36, %v7513_v29  ;;  %v7591_v4 = vadd.f32 %v1206_v22, %v7513_v29 }
 0x1aa   : > { %v1137_v0 = vpop.f32.mrf.mxu1  ;;  %v1210_v14 = vpop.f32.mrf.mxu0 }
 0x1ab   : > { %v7596_v10 = vadd.f32 %v1210_v14, %v7504_v9 }
 0x1ac   : > { %v1139_v41 = vpop.f32.mrf.mxu1  ;;  %v1212_v15 = vpop.f32.mrf.mxu0  ;;  %1874 = vmatpush1.bf16.msra.mxu0 %v1731_v40 }
 0x1ad   : > { %v1140_v1 = vadd.f32 %v1139_v41, %v7504_v9  ;;  %v1213_v49 = vadd.f32 %v1212_v15, %v7504_v9 }
 0x1ae   : > { %v1141_v45 = vpop.f32.mrf.mxu1  ;;  %v1214_v46 = vpop.f32.mrf.mxu0 }
 0x1af   : > { %5483 = vmatmul.mubr.msk.bf16.vlgmr.msra.gmra.mxu0 %vm997_vm0, %v7549_v30  ;;  %v1142_v2 = vadd.f32 %v1141_v45, %v7508_v63  ;;  %v1215_v61 = vadd.f32 %v1214_v46, %v7508_v63  ;;  %v1138_v45 = vadd.f32 %v1137_v0, %v7504_v9  ;;  %v7625_v46 = vld [vmem:[%s8677_s1 + $0x30] sm:$0xff]   ;;  %v1645_v0 = vmax.f32 %v7588_v19, 0.0 }
 0x1b0   : > { %v1143_v53 = vpop.f32.mrf.mxu1  ;;  %v1216_v6 = vpop.f32.mrf.mxu0  ;;  %1901 = vmatprep.mubr.bf16.mxu0 %v8744_v59 }
 0x1b1   : > { %v1144_v62 = vadd.f32 %v1143_v53, %v7508_v63  ;;  %v1217_v57 = vadd.f32 %v1216_v6, %v7508_v63  ;;  %v1663_v53 = vmax.f32 %v1213_v49, 0.0 }
 0x1b2   : > { %v1147_v12 = vpop.f32.mrf.mxu1  ;;  %v1220_v11 = vpop.f32.mrf.mxu0 }
 0x1b3   : > { %v1148_v33 = vadd.f32 %v1147_v12, %v7496_v17  ;;  %v1221_v43 = vadd.f32 %v1220_v11, %v7496_v17  ;;  %v1677_v47 = vmax.f32 %v1144_v62, 0.0  ;;  %v1679_v6 = vmax.f32 %v1217_v57, 0.0 }
 0x1b4   : > { %v1149_v39 = vpop.f32.mrf.mxu1  ;;  %v1222_v51 = vpop.f32.mrf.mxu0  ;;  %v1662_v57 = vmax.f32 %v7596_v10, 0.0  ;;  %v1191_v10 = vadd.f32 %v7522_v54, %v7527_v37 }
 0x1b5   : > { %v1150_v27 = vadd.f32 %v1149_v39, %v7496_v17  ;;  %v1223_v25 = vadd.f32 %v1222_v51, %v7496_v17  ;;  %v1692_v12 = vmax.f32 %v1148_v33, 0.0  ;;  %v1661_v51 = vmax.f32 %v1140_v1, 0.0 }
 0x1b6   : > { %v1151_v26 = vpop.f32.mrf.mxu1  ;;  %v1224_v52 = vpop.f32.mrf.mxu0  ;;  %v1694_v62 = vmax.f32 %v1221_v43, 0.0  ;;  %v1678_v33 = vmax.f32 %v1215_v61, 0.0  ;;  %v1647_v43 = vmax.f32 %v7591_v4, 0.0  ;;  %v1629_v4 = vmax.f32 %v7579_v34, 0.0 }
 0x1b7   : > { %v1152_v8 = vadd.f32 %v1151_v26, %v7506_v3  ;;  %v1225_v56 = vadd.f32 %v1224_v52, %v7506_v3  ;;  %5484 = vmatmul.mubr.msk.bf16.gmra.mxu0 %vm997_vm0, %v7573_v44  ;;  %v1693_v58 = vmax.f32 %v1150_v27, 0.0  ;;  %v1695_v40 = vmax.f32 %v1223_v25, 0.0 }
 0x1b8   : > { %v1153_v23 = vpop.f32.mrf.mxu1  ;;  %v1226_v38 = vpop.f32.mrf.mxu0  ;;  %1911 = vmatprep.mubr.bf16.mxu0 %v8744_v59  ;;  %v1205_v52 = vadd.f32 %v7544_v50, %v7513_v29  ;;  %v1676_v25 = vmax.f32 %v1142_v2, 0.0  ;;  %v1766_v1 = vpack.c.bf16 %v1677_v47, %v1661_v51  ;;  %v1660_v50 = vmax.f32 %v1138_v45, 0.0 }
 0x1b9   : > { %v1154_v28 = vadd.f32 %v1153_v23, %v7506_v3  ;;  %v1227_v31 = vadd.f32 %v1226_v38, %v7506_v3  ;;  %v1708_v21 = vmax.f32 %v1152_v8, 0.0  ;;  %v1710_v14 = vmax.f32 %v1225_v56, 0.0 }
 0x1ba   : > { %v7613_v36 = vpop.f32.mrf.mxu1  ;;  %v7615_v22 = vpop.f32.mrf.mxu0  ;;  %v1631_v38 = vmax.f32 %v7582_v16, 0.0  ;;  %v1122_v16 = vadd.f32 %v7537_v42, %v7533_v48  ;;  %v1195_v61 = vadd.f32 %v7539_v18, %v7533_v48  ;;  %v1613_v47 = vmax.f32 %v7562_v5, 0.0 }
 0x1bb   : > { %v1709_v41 = vmax.f32 %v1154_v28, 0.0  ;;  %v1711_v15 = vmax.f32 %v1227_v31, 0.0  ;;  %v1781_v8 = vpack.c.bf16 %v1708_v21, %v1692_v12  ;;  %v1783_v23 = vpack.c.bf16 %v1710_v14, %v1694_v62 }
 0x1bc   : > { %v7618_v11 = vpop.f32.mrf.mxu1  ;;  %v7620_v39 = vpop.f32.mrf.mxu0  ;;  %v1768_v28 = vpack.c.bf16 %v1679_v6, %v1663_v53  ;;  %v1120_v31 = vadd.f32 %v7530_v60, %v7527_v37  ;;  %v1765_v21 = vpack.c.bf16 %v1676_v25, %v1660_v50  ;;  %v1630_v60 = vmax.f32 %v7576_v7, 0.0  ;;  %v7666_v53 = vld [vmem:[%s8677_s1 + $0x38] sm:$0xff]  }
 0x1bd   : > { %v1782_v27 = vpack.c.bf16 %v1709_v41, %v1693_v58  ;;  %v1784_v26 = vpack.c.bf16 %v1711_v15, %v1695_v40  ;;  %v1644_v58 = vmax.f32 %v7585_v24, 0.0  ;;  %v1646_v42 = vmax.f32 %v1205_v52, 0.0 }
 0x1be   : > { %v7630_v56 = vpop.f32.mrf.mxu1  ;;  %v7632_v49 = vpop.f32.mrf.mxu0  ;;  %v1767_v34 = vpack.c.bf16 %v1678_v33, %v1662_v57  ;;  %v1750_v14 = vpack.c.bf16 %v1645_v0, %v1629_v4  ;;  %v1599_v41 = vmax.f32 %v7559_v55, 0.0  ;;  %v1615_v18 = vmax.f32 %v7565_v20, 0.0 }
 0x1bf   : > { %1940 = vmatprep.subr.bf16.mxu1 %v1782_v27  ;;  %2013 = vmatprep.subr.bf16.mxu0 %v1784_v26  ;;  %v1628_v5 = vmax.f32 %v7568_v13, 0.0  ;;  %v1752_v45 = vpack.c.bf16 %v1647_v43, %v1631_v38  ;;  %v1597_v6 = vmax.f32 %v1120_v31, 0.0  ;;  %v1612_v7 = vmax.f32 %v1122_v16, 0.0 }
 0x1c0   : > { %5485 = vmatmul.mubr.msk.bf16.gmra.mxu0 %vm997_vm0, %v7625_v46  ;;  %v7639_v19 = vpop.f32.mrf.mxu1  ;;  %v7641_v2 = vpop.f32.mrf.mxu0  ;;  %1941 = vmatpush1.bf16.msra.mxu1 %v1781_v8  ;;  %v1598_v13 = vmax.f32 %v1191_v10, 0.0  ;;  %v1614_v51 = vmax.f32 %v1195_v61, 0.0  ;;  %v1751_v62 = vpack.c.bf16 %v1646_v42, %v1630_v60  ;;  %v1596_v26 = vmax.f32 %v7556_v32, 0.0 }
 0x1c1   : > { %2014 = vmatpush1.bf16.msra.mxu0 %v1783_v23  ;;  %1942 = vmatprep.subr.bf16.mxu1 %v1766_v1  ;;  %v1749_v12 = vpack.c.bf16 %v1644_v58, %v1628_v5  ;;  %v1734_v27 = vpack.c.bf16 %v1613_v47, %v1597_v6  ;;  %v1736_v25 = vpack.c.bf16 %v1615_v18, %v1599_v41 }
 0x1c2   : > { %2015 = vmatprep.subr.bf16.mxu0 %v1768_v28  ;;  %v7654_v54 = vpop.f32.mrf.mxu1  ;;  %v7656_v40 = vpop.f32.mrf.mxu0  ;;  %1921 = vmatprep.mubr.bf16.mxu0 %v8744_v59  ;;  %v1733_v8 = vpack.c.bf16 %v1612_v7, %v1596_v26  ;;  %v1735_v23 = vpack.c.bf16 %v1614_v51, %v1598_v13  ;;  %v7684_v16 = vadd.f32 %v7618_v11, %v7527_v37 }
 0x1c3   : > { %v7688_v47 = vadd.f32 %v7620_v39, %v7527_v37  ;;  %v7692_v58 = vadd.f32 %v7639_v19, %v7533_v48 }
 0x1c4   : > { %v1275_v24 = vpop.f32.mrf.mxu1  ;;  %v1348_v15 = vpop.f32.mrf.mxu0  ;;  %1943 = vmatpush1.bf16.msra.mxu1 %v1765_v21  ;;  %v7696_v21 = vadd.f32 %v7641_v2, %v7533_v48 }
 0x1c5   : > { %2016 = vmatpush1.bf16.msra.mxu0 %v1767_v34  ;;  %1944 = vmatprep.subr.bf16.mxu1 %v1750_v14  ;;  %v7699_v60 = vadd.f32 %v1275_v24, %v7510_v35  ;;  %v7702_v11 = vadd.f32 %v1348_v15, %v7510_v35 }
 0x1c6   : > { %2017 = vmatprep.subr.bf16.mxu0 %v1752_v45  ;;  %v7668_v55 = vpop.f32.mrf.mxu1  ;;  %v7670_v20 = vpop.f32.mrf.mxu0 }
 0x1c8   : > { %5486 = vmatmul.mubr.msk.bf16.gmra.mxu0 %vm997_vm0, %v7666_v53  ;;  %v1279_v52 = vpop.f32.mrf.mxu1  ;;  %v1352_v0 = vpop.f32.mrf.mxu0  ;;  %1945 = vmatpush1.bf16.msra.mxu1 %v1749_v12 }
 0x1c9   : > { %2018 = vmatpush1.bf16.msra.mxu0 %v1751_v62  ;;  %1946 = vmatprep.subr.bf16.mxu1 %v1734_v27  ;;  %v7705_v42 = vadd.f32 %v1279_v52, %v7513_v29  ;;  %v7710_v41 = vadd.f32 %v1352_v0, %v7513_v29 }
 0x1ca   : > { %2019 = vmatprep.subr.bf16.mxu0 %v1736_v25  ;;  %v1283_v57 = vpop.f32.mrf.mxu1  ;;  %v1356_v33 = vpop.f32.mrf.mxu0  ;;  %2037 = vmatprep.mubr.bf16.mxu0 %v8744_v59 }
 0x1cc   : > { %v1285_v1 = vpop.f32.mrf.mxu1  ;;  %v1358_v38 = vpop.f32.mrf.mxu0  ;;  %1947 = vmatpush1.bf16.msra.mxu1 %v1733_v8 }
 0x1cd   : > { %2020 = vmatpush1.bf16.msra.mxu0 %v1735_v23  ;;  %v1286_v2 = vadd.f32 %v1285_v1, %v7504_v9  ;;  %v1359_v24 = vadd.f32 %v1358_v38, %v7504_v9 }
 0x1ce   : > { %v1287_v32 = vpop.f32.mrf.mxu1  ;;  %v1360_v43 = vpop.f32.mrf.mxu0 }
 0x1cf   : > { %5487 = vmatmul.mubr.msk.bf16.vlgmr.msra.gmra.mxu1 %vm997_vm0, %v7549_v30  ;;  %v1288_v27 = vadd.f32 %v1287_v32, %v7508_v63  ;;  %v1361_v26 = vadd.f32 %v1360_v43, %v7508_v63 }
 0x1d0   : > { %5491 = vmatmul.mubr.msk.bf16.vlgmr.msra.gmra.mxu0 %vm997_vm0, %v7549_v30  ;;  %v1289_v50 = vpop.f32.mrf.mxu1  ;;  %v1362_v28 = vpop.f32.mrf.mxu0  ;;  %1974 = vmatprep.mubr.bf16.mxu1 %v8744_v59 }
 0x1d1   : > { %2047 = vmatprep.mubr.bf16.mxu0 %v8744_v59  ;;  %v1290_v15 = vadd.f32 %v1289_v50, %v7508_v63  ;;  %v1363_v45 = vadd.f32 %v1362_v28, %v7508_v63  ;;  %v1284_v28 = vadd.f32 %v1283_v57, %v7504_v9  ;;  %v1667_v57 = vmax.f32 %v1359_v24, 0.0 }
 0x1d2   : > { %v1293_v10 = vpop.f32.mrf.mxu1  ;;  %v1366_v31 = vpop.f32.mrf.mxu0 }
 0x1d3   : > { %v1294_v12 = vadd.f32 %v1293_v10, %v7496_v17  ;;  %v1367_v13 = vadd.f32 %v1366_v31, %v7496_v17  ;;  %v1357_v10 = vadd.f32 %v1356_v33, %v7504_v9  ;;  %v1681_v31 = vmax.f32 %v1290_v15, 0.0 }
 0x1d4   : > { %v1295_v4 = vpop.f32.mrf.mxu1  ;;  %v1368_v61 = vpop.f32.mrf.mxu0  ;;  %v1680_v15 = vmax.f32 %v1288_v27, 0.0  ;;  %v1347_v27 = vadd.f32 %v7656_v40, %v7510_v35 }
 0x1d5   : > { %v1296_v39 = vadd.f32 %v1295_v4, %v7496_v17  ;;  %v1369_v34 = vadd.f32 %v1368_v61, %v7496_v17  ;;  %v1683_v4 = vmax.f32 %v1363_v45, 0.0  ;;  %v1696_v43 = vmax.f32 %v1294_v12, 0.0 }
 0x1d6   : > { %v1297_v14 = vpop.f32.mrf.mxu1  ;;  %v1370_v19 = vpop.f32.mrf.mxu0  ;;  %v1682_v45 = vmax.f32 %v1361_v26, 0.0  ;;  %v1649_v12 = vmax.f32 %v7705_v42, 0.0  ;;  %v1664_v26 = vmax.f32 %v1284_v28, 0.0  ;;  %v1666_v42 = vmax.f32 %v1357_v10, 0.0 }
 0x1d7   : > { %v1298_v18 = vadd.f32 %v1297_v14, %v7506_v3  ;;  %v1371_v5 = vadd.f32 %v1370_v19, %v7506_v3  ;;  %5488 = vmatmul.mubr.msk.bf16.gmra.mxu1 %vm997_vm0, %v7573_v44  ;;  %v1697_v52 = vmax.f32 %v1296_v39, 0.0  ;;  %v1699_v0 = vmax.f32 %v1369_v34, 0.0 }
 0x1d8   : > { %5492 = vmatmul.mubr.msk.bf16.gmra.mxu0 %vm997_vm0, %v7573_v44  ;;  %v1299_v6 = vpop.f32.mrf.mxu1  ;;  %v1372_v7 = vpop.f32.mrf.mxu0  ;;  %1984 = vmatprep.mubr.bf16.mxu1 %v8744_v59  ;;  %v1698_v39 = vmax.f32 %v1367_v13, 0.0  ;;  %v1278_v19 = vadd.f32 %v7668_v55, %v7513_v29  ;;  %v1651_v55 = vmax.f32 %v7710_v41, 0.0  ;;  %v1772_v13 = vpack.c.bf16 %v1683_v4, %v1667_v57 }
 0x1d9   : > { %v1300_v51 = vadd.f32 %v1299_v6, %v7506_v3  ;;  %v1373_v62 = vadd.f32 %v1372_v7, %v7506_v3  ;;  %2057 = vmatprep.mubr.bf16.mxu0 %v8744_v59  ;;  %v1712_v23 = vmax.f32 %v1298_v18, 0.0  ;;  %v1714_v1 = vmax.f32 %v1371_v5, 0.0 }
 0x1da   : > { %v7730_v25 = vpop.f32.mrf.mxu1  ;;  %v7732_v8 = vpop.f32.mrf.mxu0  ;;  %v1351_v18 = vadd.f32 %v7670_v20, %v7513_v29  ;;  %v1665_v5 = vmax.f32 %v1286_v2, 0.0  ;;  %v1268_v41 = vadd.f32 %v7630_v56, %v7533_v48  ;;  %v1648_v40 = vmax.f32 %v1278_v19, 0.0 }
 0x1db   : > { %v1713_v38 = vmax.f32 %v1300_v51, 0.0  ;;  %v1715_v50 = vmax.f32 %v1373_v62, 0.0  ;;  %v1785_v7 = vpack.c.bf16 %v1712_v23, %v1696_v43  ;;  %v1787_v51 = vpack.c.bf16 %v1714_v1, %v1698_v39 }
 0x1dc   : > { %v7736_v61 = vpop.f32.mrf.mxu1  ;;  %v7738_v32 = vpop.f32.mrf.mxu0  ;;  %v1770_v24 = vpack.c.bf16 %v1681_v31, %v1665_v5  ;;  %v1274_v62 = vadd.f32 %v7654_v54, %v7510_v35  ;;  %v1635_v23 = vmax.f32 %v7702_v11, 0.0  ;;  %v1771_v28 = vpack.c.bf16 %v1682_v45, %v1666_v42 }
 0x1dd   : > { %v1786_v34 = vpack.c.bf16 %v1713_v38, %v1697_v52  ;;  %v1788_v14 = vpack.c.bf16 %v1715_v50, %v1699_v0  ;;  %v1341_v52 = vadd.f32 %v7632_v49, %v7533_v48  ;;  %v1633_v0 = vmax.f32 %v7699_v60, 0.0 }
 0x1de   : > { %v7744_v6 = vpop.f32.mrf.mxu1  ;;  %v7746_v33 = vpop.f32.mrf.mxu0  ;;  %v1650_v38 = vmax.f32 %v1351_v18, 0.0  ;;  %v1769_v50 = vpack.c.bf16 %v1680_v15, %v1664_v26  ;;  %v1617_v56 = vmax.f32 %v7692_v58, 0.0  ;;  %v1619_v49 = vmax.f32 %v7696_v21, 0.0 }
 0x1df   : > { %5489 = vmatmul.mubr.msk.bf16.gmra.mxu1 %vm997_vm0, %v7625_v46  ;;  %2086 = vmatprep.subr.bf16.mxu1 %v1786_v34  ;;  %v1754_v10 = vpack.c.bf16 %v1649_v12, %v1633_v0  ;;  %v1756_v31 = vpack.c.bf16 %v1651_v55, %v1635_v23  ;;  %v1264_v4 = vadd.f32 %v7613_v36, %v7527_v37  ;;  %v1632_v39 = vmax.f32 %v1274_v62, 0.0 }
 0x1e0   : > { %5493 = vmatmul.mubr.msk.bf16.gmra.mxu0 %vm997_vm0, %v7625_v46  ;;  %2159 = vmatprep.subr.bf16.mxu0 %v1788_v14  ;;  %v7754_v20 = vpop.f32.mrf.mxu1  ;;  %v7756_v2 = vpop.f32.mrf.mxu0  ;;  %v1337_v43 = vadd.f32 %v7615_v22, %v7527_v37  ;;  %v1634_v34 = vmax.f32 %v1347_v27, 0.0  ;;  %v1601_v14 = vmax.f32 %v7684_v16, 0.0  ;;  %v1603_v58 = vmax.f32 %v7688_v47, 0.0 }
 0x1e1   : > { %2087 = vmatpush1.bf16.msra.mxu1 %v1785_v7  ;;  %2160 = vmatpush1.bf16.msra.mxu0 %v1787_v51  ;;  %v1616_v18 = vmax.f32 %v1268_v41, 0.0  ;;  %v1618_v5 = vmax.f32 %v1341_v52, 0.0  ;;  %v1753_v36 = vpack.c.bf16 %v1648_v40, %v1632_v39  ;;  %v1600_v45 = vmax.f32 %v1264_v4, 0.0 }
 0x1e2   : > { %2088 = vmatprep.subr.bf16.mxu1 %v1770_v24  ;;  %2161 = vmatprep.subr.bf16.mxu0 %v1772_v13  ;;  %v7768_v54 = vpop.f32.mrf.mxu1  ;;  %v7770_v1 = vpop.f32.mrf.mxu0  ;;  %v1755_v57 = vpack.c.bf16 %v1650_v38, %v1634_v34  ;;  %v1738_v15 = vpack.c.bf16 %v1617_v56, %v1601_v14  ;;  %v1740_v47 = vpack.c.bf16 %v1619_v49, %v1603_v58  ;;  %v1602_v7 = vmax.f32 %v1337_v43, 0.0 }
 0x1e3   : > { %1994 = vmatprep.mubr.bf16.mxu1 %v8744_v59  ;;  %2067 = vmatprep.mubr.bf16.mxu0 %v8744_v59  ;;  %v1737_v55 = vpack.c.bf16 %v1616_v18, %v1600_v45  ;;  %v7800_v23 = vadd.f32 %v7736_v61, %v7527_v37  ;;  %v7804_v40 = vadd.f32 %v7738_v32, %v7527_v37 }
 0x1e4   : > { %v1421_v60 = vpop.f32.mrf.mxu1  ;;  %v1494_v11 = vpop.f32.mrf.mxu0  ;;  %v1739_v24 = vpack.c.bf16 %v1618_v5, %v1602_v7  ;;  %v7812_v56 = vadd.f32 %v7756_v2, %v7533_v48 }
 0x1e5   : > { %2089 = vmatpush1.bf16.msra.mxu1 %v1769_v50  ;;  %2162 = vmatpush1.bf16.msra.mxu0 %v1771_v28  ;;  %v7808_v28 = vadd.f32 %v7754_v20, %v7533_v48  ;;  %v7815_v49 = vadd.f32 %v1421_v60, %v7510_v35  ;;  %v7818_v61 = vadd.f32 %v1494_v11, %v7510_v35 }
 0x1e6   : > { %2090 = vmatprep.subr.bf16.mxu1 %v1754_v10  ;;  %2163 = vmatprep.subr.bf16.mxu0 %v1756_v31  ;;  %v7782_v21 = vpop.f32.mrf.mxu1  ;;  %v7784_v19 = vpop.f32.mrf.mxu0 }
 0x1e7   : > { %5490 = vmatmul.mubr.msk.bf16.gmra.mxu1 %vm997_vm0, %v7666_v53 }
 0x1e8   : > { %5494 = vmatmul.mubr.msk.bf16.gmra.mxu0 %vm997_vm0, %v7666_v53  ;;  %v1425_v22 = vpop.f32.mrf.mxu1  ;;  %v1498_v16 = vpop.f32.mrf.mxu0  ;;  %2110 = vmatprep.mubr.bf16.mxu1 %v8744_v59 }
 0x1e9   : > { %2091 = vmatpush1.bf16.msra.mxu1 %v1753_v36  ;;  %2164 = vmatpush1.bf16.msra.mxu0 %v1755_v57  ;;  %v7821_v10 = vadd.f32 %v1425_v22, %v7513_v29  ;;  %v7824_v32 = vadd.f32 %v1498_v16, %v7513_v29 }
 0x1ea   : > { %2092 = vmatprep.subr.bf16.mxu1 %v1738_v15  ;;  %2165 = vmatprep.subr.bf16.mxu0 %v1740_v47  ;;  %v1429_v51 = vpop.f32.mrf.mxu1  ;;  %v1502_v12 = vpop.f32.mrf.mxu0 }
 0x1eb   : > { %2183 = vmatprep.mubr.bf16.mxu0 %v8744_v59 }
 0x1ec   : > { %v1431_v13 = vpop.f32.mrf.mxu1  ;;  %v1504_v62 = vpop.f32.mrf.mxu0 }
 0x1ed   : > { %2093 = vmatpush1.bf16.msra.mxu1 %v1737_v55  ;;  %2166 = vmatpush1.bf16.msra.mxu0 %v1739_v24  ;;  %v1432_v2 = vadd.f32 %v1431_v13, %v7504_v9  ;;  %v1505_v60 = vadd.f32 %v1504_v62, %v7504_v9 }
 0x1ee   : > { %v1433_v27 = vpop.f32.mrf.mxu1  ;;  %v1506_v26 = vpop.f32.mrf.mxu0 }
 0x1ef   : > { %v1434_v16 = vadd.f32 %v1433_v27, %v7508_v63  ;;  %v1507_v15 = vadd.f32 %v1506_v26, %v7508_v63 }
 0x1f0   : > { %5495 = vmatmul.mubr.msk.bf16.vlgmr.msra.gmra.mxu1 %vm997_vm0, %v7549_v30  ;;  %5499 = vmatmul.mubr.msk.bf16.vlgmr.msra.gmra.mxu0 %vm997_vm0, %v7549_v30  ;;  %v1435_v42 = vpop.f32.mrf.mxu1  ;;  %v1508_v41 = vpop.f32.mrf.mxu0 }
 0x1f1   : > { %2120 = vmatprep.mubr.bf16.mxu1 %v8744_v59  ;;  %2193 = vmatprep.mubr.bf16.mxu0 %v8744_v59  ;;  %v1436_v34 = vadd.f32 %v1435_v42, %v7508_v63  ;;  %v1509_v14 = vadd.f32 %v1508_v41, %v7508_v63  ;;  %v1430_v42 = vadd.f32 %v1429_v51, %v7504_v9  ;;  %v1684_v51 = vmax.f32 %v1434_v16, 0.0 }
 0x1f2   : > { %v1439_v52 = vpop.f32.mrf.mxu1  ;;  %v1512_v0 = vpop.f32.mrf.mxu0  ;;  %v1503_v41 = vadd.f32 %v1502_v12, %v7504_v9  ;;  %v1686_v12 = vmax.f32 %v1507_v15, 0.0  ;;  %v1639_v16 = vmax.f32 %v7818_v61, 0.0 }
 0x1f3   : > { %v1440_v58 = vadd.f32 %v1439_v52, %v7496_v17  ;;  %v1513_v36 = vadd.f32 %v1512_v0, %v7496_v17  ;;  %v1685_v52 = vmax.f32 %v1436_v34, 0.0  ;;  %v1687_v0 = vmax.f32 %v1509_v14, 0.0 }
 0x1f4   : > { %v1441_v38 = vpop.f32.mrf.mxu1  ;;  %v1514_v50 = vpop.f32.mrf.mxu0 }
 0x1f5   : > { %v1442_v31 = vadd.f32 %v1441_v38, %v7496_v17  ;;  %v1515_v20 = vadd.f32 %v1514_v50, %v7496_v17  ;;  %v1700_v50 = vmax.f32 %v1440_v58, 0.0  ;;  %v1702_v27 = vmax.f32 %v1513_v36, 0.0 }
 0x1f6   : > { %v1443_v4 = vpop.f32.mrf.mxu1  ;;  %v1516_v43 = vpop.f32.mrf.mxu0  ;;  %v1653_v58 = vmax.f32 %v7821_v10, 0.0  ;;  %v1668_v36 = vmax.f32 %v1430_v42, 0.0  ;;  %v1670_v10 = vmax.f32 %v1503_v41, 0.0  ;;  %v1605_v41 = vmax.f32 %v7800_v23, 0.0 }
 0x1f7   : > { %v1444_v39 = vadd.f32 %v1443_v4, %v7506_v3  ;;  %v1517_v11 = vadd.f32 %v1516_v43, %v7506_v3  ;;  %v1701_v47 = vmax.f32 %v1442_v31, 0.0  ;;  %v1703_v45 = vmax.f32 %v1515_v20, 0.0 }
 0x1f8   : > { %5496 = vmatmul.mubr.msk.bf16.gmra.mxu1 %vm997_vm0, %v7573_v44  ;;  %5500 = vmatmul.mubr.msk.bf16.gmra.mxu0 %vm997_vm0, %v7573_v44  ;;  %v1445_v18 = vpop.f32.mrf.mxu1  ;;  %v1518_v5 = vpop.f32.mrf.mxu0  ;;  %v1424_v31 = vadd.f32 %v7782_v21, %v7513_v29  ;;  %v1497_v20 = vadd.f32 %v7784_v19, %v7513_v29  ;;  %v1669_v43 = vmax.f32 %v1432_v2, 0.0 }
 0x1f9   : > { %v1446_v57 = vadd.f32 %v1445_v18, %v7506_v3  ;;  %v1519_v22 = vadd.f32 %v1518_v5, %v7506_v3  ;;  %2130 = vmatprep.mubr.bf16.mxu1 %v8744_v59  ;;  %2203 = vmatprep.mubr.bf16.mxu0 %v8744_v59  ;;  %v1716_v55 = vmax.f32 %v1444_v39, 0.0  ;;  %v1718_v24 = vmax.f32 %v1517_v11, 0.0 }
 0x1fa   : > { %v7846_v7 = vpop.f32.mrf.mxu1  ;;  %v1671_v39 = vmax.f32 %v1505_v60, 0.0  ;;  %v1655_v18 = vmax.f32 %v7824_v32, 0.0  ;;  %v1774_v19 = vpack.c.bf16 %v1685_v52, %v1669_v43  ;;  %v1420_v60 = vadd.f32 %v7768_v54, %v7510_v35 }
 0x1fb   : > { %v1717_v13 = vmax.f32 %v1446_v57, 0.0  ;;  %v1719_v62 = vmax.f32 %v1519_v22, 0.0  ;;  %v1789_v34 = vpack.c.bf16 %v1716_v55, %v1700_v50  ;;  %v1791_v14 = vpack.c.bf16 %v1718_v24, %v1702_v27 }
 0x1fc   : > { %v7850_v38 = vpop.f32.mrf.mxu1  ;;  %v1776_v2 = vpack.c.bf16 %v1687_v0, %v1671_v39  ;;  %v1493_v5 = vadd.f32 %v7770_v1, %v7510_v35  ;;  %v1414_v32 = vadd.f32 %v7744_v6, %v7533_v48  ;;  %v1487_v57 = vadd.f32 %v7746_v33, %v7533_v48 }
 0x1fd   : > { %v1790_v4 = vpack.c.bf16 %v1717_v13, %v1701_v47  ;;  %v1792_v26 = vpack.c.bf16 %v1719_v62, %v1703_v45  ;;  %v1637_v22 = vmax.f32 %v7815_v49, 0.0  ;;  %v1652_v15 = vmax.f32 %v1424_v31, 0.0  ;;  %v6446_v31 = vld [vmem:[#allocation2 + $0x78] sm:$0xff]  }
 0x1fe   : > { %v7856_v11 = vpop.f32.mrf.mxu1  ;;  %v1654_v1 = vmax.f32 %v1497_v20, 0.0  ;;  %v1773_v47 = vpack.c.bf16 %v1684_v51, %v1668_v36  ;;  %v1775_v45 = vpack.c.bf16 %v1686_v12, %v1670_v10  ;;  %v1621_v6 = vmax.f32 %v7808_v28, 0.0  ;;  %v6447_v12 = vld [vmem:[#allocation2 + $0x38] sm:$0xff]  }
 0x1ff   : > { %2232 = vmatprep.subr.bf16.mxu1 %v1790_v4  ;;  %2305 = vmatprep.subr.bf16.mxu0 %v1792_v26  ;;  %v1623_v33 = vmax.f32 %v7812_v56, 0.0  ;;  %v1758_v49 = vpack.c.bf16 %v1653_v58, %v1637_v22  ;;  %v1760_v61 = vpack.c.bf16 %v1655_v18, %v1639_v16  ;;  %v1410_v24 = vadd.f32 %v7730_v25, %v7527_v37  ;;  %v6449_v18 = vld [vmem:[#allocation2 + $0x30] sm:$0xff]  }
 0x200   : > { %5497 = vmatmul.mubr.msk.bf16.gmra.mxu1 %vm997_vm0, %v7625_v46  ;;  %5501 = vmatmul.mubr.msk.bf16.gmra.mxu0 %vm997_vm0, %v7625_v46  ;;  %v7864_v21 = vpop.f32.mrf.mxu1  ;;  %v1483_v13 = vadd.f32 %v7732_v8, %v7527_v37  ;;  %v1636_v62 = vmax.f32 %v1420_v60, 0.0  ;;  %v1638_v42 = vmax.f32 %v1493_v5, 0.0  ;;  %v1607_v28 = vmax.f32 %v7804_v40, 0.0  ;;  %v6451_v5 = vld [vmem:[#allocation2 + $0x28] sm:$0xff]  }
 0x201   : > { %2233 = vmatpush1.bf16.msra.mxu1 %v1789_v34  ;;  %2306 = vmatpush1.bf16.msra.mxu0 %v1791_v14  ;;  %v1620_v52 = vmax.f32 %v1414_v32, 0.0  ;;  %v1622_v0 = vmax.f32 %v1487_v57, 0.0  ;;  %v1742_v8 = vpack.c.bf16 %v1621_v6, %v1605_v41  ;;  %v1604_v23 = vmax.f32 %v1410_v24, 0.0  ;;  %v6448_v34 = vld [vmem:[#allocation2 + $0x70] sm:$0xff]  }
 0x202   : > { %2234 = vmatprep.subr.bf16.mxu1 %v1774_v19  ;;  %2307 = vmatprep.subr.bf16.mxu0 %v1776_v2  ;;  %v7876_v54 = vpop.f32.mrf.mxu1  ;;  %v1757_v50 = vpack.c.bf16 %v1652_v15, %v1636_v62  ;;  %v1759_v27 = vpack.c.bf16 %v1654_v1, %v1638_v42  ;;  %v1744_v4 = vpack.c.bf16 %v1623_v33, %v1607_v28  ;;  %v1606_v26 = vmax.f32 %v1483_v13, 0.0  ;;  %v6450_v19 = vld [vmem:[#allocation2 + $0x68] sm:$0xff]   ;;  %v6453_v1 = vld [vmem:[#allocation2 + $0x20] sm:$0xff]   ;;  %v6455_v28 = vld [vmem:[#allocation2 + $0x18] sm:$0xff]  }
 0x203   : > { %2140 = vmatprep.mubr.bf16.mxu1 %v8744_v59  ;;  %2213 = vmatprep.mubr.bf16.mxu0 %v8744_v59  ;;  %v1741_v20 = vpack.c.bf16 %v1620_v52, %v1604_v23  ;;  %v1562_v52 = vadd.f32 %v7864_v21, %v7533_v48 }
 0x204   : > { %v7882_v55 = vpop.f32.mrf.mxu1  ;;  %v1743_v43 = vpack.c.bf16 %v1622_v0, %v1606_v26 }
 0x205   : > { %2235 = vmatpush1.bf16.msra.mxu1 %v1773_v47  ;;  %2308 = vmatpush1.bf16.msra.mxu0 %v1775_v45  ;;  %v1568_v13 = vadd.f32 %v7882_v55, %v7510_v35  ;;  %v6456_v55 = vld [vmem:[#allocation2 + $0x50] sm:$0xff]   ;;  %v1625_v23 = vmax.f32 %v1562_v52, 0.0 }
 0x206   : > { %2236 = vmatprep.subr.bf16.mxu1 %v1758_v49  ;;  %2309 = vmatprep.subr.bf16.mxu0 %v1760_v61  ;;  %v7890_v56 = vpop.f32.mrf.mxu1 }
 0x207   : > { %v1641_v21 = vmax.f32 %v1568_v13, 0.0 }
 0x208   : > { %5498 = vmatmul.mubr.msk.bf16.gmra.mxu1 %vm997_vm0, %v7666_v53  ;;  %5502 = vmatmul.mubr.msk.bf16.gmra.mxu0 %vm997_vm0, %v7666_v53  ;;  %v1571_v25 = vpop.f32.mrf.mxu1 }
 0x209   : > { %2237 = vmatpush1.bf16.msra.mxu1 %v1757_v50  ;;  %2310 = vmatpush1.bf16.msra.mxu0 %v1759_v27  ;;  %v1572_v49 = vadd.f32 %v1571_v25, %v7513_v29  ;;  %v1558_v50 = vadd.f32 %v7850_v38, %v7527_v37  ;;  %v1560_v27 = vadd.f32 %v7856_v11, %v7533_v48  ;;  %v6460_v11 = vld [vmem:[#allocation2 + $0x40] sm:$0xff]  }
 0x20a   : > { %2238 = vmatprep.subr.bf16.mxu1 %v1742_v8  ;;  %2311 = vmatprep.subr.bf16.mxu0 %v1744_v4  ;;  %v1575_v40 = vpop.f32.mrf.mxu1  ;;  %v6457_v4 = vld [vmem:[#allocation2 + $0x10] sm:$0xff]  }
 0x20b   : > { %2256 = vmatprep.mubr.bf16.mxu1 %v8744_v59  ;;  %2329 = vmatprep.mubr.bf16.mxu0 %v8744_v59  ;;  %v1657_v0 = vmax.f32 %v1572_v49, 0.0  ;;  %v1609_v38 = vmax.f32 %v1558_v50, 0.0  ;;  %v6471_v50 = vld [vmem:[#allocation2 + $0x168] sm:$0xff]  }
 0x20c   : > { %v1577_v39 = vpop.f32.mrf.mxu1 }
 0x20d   : > { %2239 = vmatpush1.bf16.msra.mxu1 %v1741_v20  ;;  %2312 = vmatpush1.bf16.msra.mxu0 %v1743_v43  ;;  %v1578_v15 = vadd.f32 %v1577_v39, %v7504_v9  ;;  %v6459_v43 = vld [vmem:[#allocation2 + $0x8] sm:$0xff]   ;;  %v1746_v48 = vpack.c.bf16 %v1625_v23, %v1609_v38 }
 0x20e   : > { %v1579_v51 = vpop.f32.mrf.mxu1  ;;  %5734 = vmatprep.subr.bf16.mxu0 %v6446_v31  ;;  %v1624_v31 = vmax.f32 %v1560_v27, 0.0 }
 0x20f   : > { %v1580_v47 = vadd.f32 %v1579_v51, %v7508_v63  ;;  %v1673_v62 = vmax.f32 %v1578_v15, 0.0  ;;  %v6461_v51 = vld [vmem:[#allocation2] sm:$0xff]  }
 0x210   : > { %5503 = vmatmul.mubr.msk.bf16.vlgmr.msra.gmra.mxu1 %vm997_vm0, %v7549_v30  ;;  %5507 = vmatmul.mubr.msk.bf16.vlgmr.msra.gmra.mxu0 %vm997_vm0, %v7549_v30  ;;  %v1581_v14 = vpop.f32.mrf.mxu1  ;;  %v6452_v30 = vld [vmem:[#allocation2 + $0x60] sm:$0xff]  }
 0x211   : > { %2266 = vmatprep.mubr.bf16.mxu1 %v8744_v59  ;;  %2339 = vmatprep.mubr.bf16.mxu0 %v8744_v59  ;;  %v1582_v32 = vadd.f32 %v1581_v14, %v7508_v63  ;;  %v1570_v63 = vadd.f32 %v7890_v56, %v7513_v29  ;;  %v1688_v42 = vmax.f32 %v1580_v47, 0.0  ;;  %v1566_v29 = vadd.f32 %v7876_v54, %v7510_v35  ;;  %v6466_v14 = vld [vmem:[#allocation2 + $0xf0] sm:$0xff]   ;;  %v6490_v15 = vld [vmem:[#allocation2 + $0xc0] sm:$0xff]   ;;  %v6494_v47 = vld [vmem:[#allocation2 + $0x1f8] sm:$0xff]  }
 0x212   : > { %v1585_v58 = vpop.f32.mrf.mxu1  ;;  %5735 = vmatpush3.bf16.msra.mxu0 %v6447_v12  ;;  %v1762_v35 = vpack.c.bf16 %v1657_v0, %v1641_v21  ;;  %v1556_v54 = vadd.f32 %v7846_v7, %v7527_v37  ;;  %v6462_v37 = vld [vmem:[#allocation2 + $0xf8] sm:$0xff]  }
 0x213   : > { %5736 = vmatprep.subr.bf16.mxu0 %v6448_v34  ;;  %v1586_v22 = vadd.f32 %v1585_v58, %v7496_v17  ;;  %v1656_v25 = vmax.f32 %v1570_v63, 0.0  ;;  %v1640_v26 = vmax.f32 %v1566_v29, 0.0  ;;  %v6463_v12 = vld [vmem:[#allocation2 + $0x178] sm:$0xff]   ;;  %v6618_v58 = vld [vmem:[%s8677_s1 + $0x20] sm:$0xff]  }
 0x214   : > { %v1587_v2 = vpop.f32.mrf.mxu1  ;;  %v1608_v39 = vmax.f32 %v1556_v54, 0.0  ;;  %v6464_v34 = vld [vmem:[#allocation2 + $0xb8] sm:$0xff]  }
 0x215   : > { %v1588_v36 = vadd.f32 %v1587_v2, %v7496_v17  ;;  %v1689_v17 = vmax.f32 %v1582_v32, 0.0  ;;  %v1704_v61 = vmax.f32 %v1586_v22, 0.0  ;;  %v1761_v20 = vpack.c.bf16 %v1656_v25, %v1640_v26  ;;  %v6472_v2 = vld [vmem:[#allocation2 + $0xa8] sm:$0xff]   ;;  %v6482_v32 = vld [vmem:[#allocation2 + $0xd0] sm:$0xff]   ;;  %v6475_v26 = vld [vmem:[#allocation2 + $0x160] sm:$0xff]  }
 0x216   : > { %v1589_v60 = vpop.f32.mrf.mxu1  ;;  %5737 = vmatpush3.bf16.msra.mxu0 %v6449_v18  ;;  %v1745_v7 = vpack.c.bf16 %v1624_v31, %v1608_v39  ;;  %v6468_v18 = vld [vmem:[#allocation2 + $0xb0] sm:$0xff]   ;;  %v6486_v22 = vld [vmem:[#allocation2 + $0xc8] sm:$0xff]  }
 0x217   : > { %v1590_v10 = vadd.f32 %v1589_v60, %v7506_v3  ;;  %5738 = vmatprep.subr.bf16.mxu0 %v6450_v19  ;;  %v1705_v45 = vmax.f32 %v1588_v36, 0.0  ;;  %v6470_v19 = vld [vmem:[#allocation2 + $0xe8] sm:$0xff]   ;;  %v6474_v60 = vld [vmem:[#allocation2 + $0xe0] sm:$0xff]  }
 0x218   : > { %5504 = vmatmul.mubr.msk.bf16.gmra.mxu1 %vm997_vm0, %v7573_v44  ;;  %5508 = vmatmul.mubr.msk.bf16.gmra.mxu0 %vm997_vm0, %v7573_v44  ;;  %v1591_v57 = vpop.f32.mrf.mxu1  ;;  %v6454_v44 = vld [vmem:[#allocation2 + $0x58] sm:$0xff]   ;;  %v6476_v36 = vld [vmem:[#allocation2 + $0xa0] sm:$0xff]  }
 0x219   : > { %v1592_v16 = vadd.f32 %v1591_v57, %v7506_v3  ;;  %2276 = vmatprep.mubr.bf16.mxu1 %v8744_v59  ;;  %2349 = vmatprep.mubr.bf16.mxu0 %v8744_v59  ;;  %v1720_v6 = vmax.f32 %v1590_v10, 0.0  ;;  %v1576_v3 = vadd.f32 %v1575_v40, %v7504_v9  ;;  %v1778_v9 = vpack.c.bf16 %v1689_v17, %v1673_v62  ;;  %v6458_v40 = vld [vmem:[#allocation2 + $0x48] sm:$0xff]   ;;  %v6478_v10 = vld [vmem:[#allocation2 + $0xd8] sm:$0xff]   ;;  %v6484_v57 = vld [vmem:[#allocation2 + $0x90] sm:$0xff]  }
 0x21a   : > { %5739 = vmatpush3.bf16.msra.mxu0 %v6451_v5  ;;  %v6619_v5 = vld [vmem:[%s8677_s1 + $0x28] sm:$0xff]   ;;  %v6465_v62 = vld [vmem:[#allocation2 + $0x138] sm:$0xff]  }
 0x21b   : > { %v1721_v33 = vmax.f32 %v1592_v16, 0.0  ;;  %5740 = vmatprep.subr.bf16.mxu0 %v6452_v30  ;;  %v1793_v41 = vpack.c.bf16 %v1720_v6, %v1704_v61  ;;  %v1672_v56 = vmax.f32 %v1576_v3, 0.0  ;;  %v6480_v30 = vld [vmem:[#allocation2 + $0x98] sm:$0xff]   ;;  %v6488_v16 = vld [vmem:[#allocation2 + $0x88] sm:$0xff]   ;;  %v7961_v6 = vpop.permute.xlu1 %1800 }
 0x21d   : > { %v1794_v24 = vpack.c.bf16 %v1721_v33, %v1705_v45  ;;  %v1777_v8 = vpack.c.bf16 %v1688_v42, %v1672_v56  ;;  %v7959_v45 = vpop.permute.xlu0 %1796 }
 0x21e   : > { %5741 = vmatpush3.bf16.msra.mxu0 %v6453_v1  ;;  %v6492_v1 = vld [vmem:[#allocation2 + $0x80] sm:$0xff]  }
 0x21f   : > { %2378 = vmatprep.subr.bf16.mxu1 %v1794_v24  ;;  %5742 = vmatprep.subr.bf16.mxu0 %v6454_v44  ;;  %v7967_v63 = vpop.permute.xlu1 %1804 }
 0x220   : > { %5505 = vmatmul.mubr.msk.bf16.gmra.mxu1 %vm997_vm0, %v7625_v46  ;;  %5509 = vmatmul.mubr.msk.bf16.gmra.mxu0 %vm997_vm0, %v7625_v46 }
 0x221   : > { %2379 = vmatpush1.bf16.msra.mxu1 %v1793_v41  ;;  %2286 = vmatprep.mubr.bf16.mxu1 %v8744_v59  ;;  %v7969_v41 = vpop.permute.xlu0 %1808 }
 0x222   : > { %2380 = vmatprep.subr.bf16.mxu1 %v1778_v9  ;;  %2359 = vmatprep.mubr.bf16.mxu0 %v8744_v59 }
 0x223   : > { %5743 = vmatpush3.bf16.msra.mxu0 %v6455_v28  ;;  %v6467_v28 = vld [vmem:[#allocation2 + $0x170] sm:$0xff]   ;;  %v7975_v23 = vpop.permute.xlu1 %1812 }
 0x224   : > { %5744 = vmatprep.subr.bf16.mxu0 %v6456_v55  ;;  %v6469_v55 = vld [vmem:[#allocation2 + $0x130] sm:$0xff]  }
 0x225   : > { %2381 = vmatpush1.bf16.msra.mxu1 %v1777_v8  ;;  %v7977_v54 = vpop.permute.xlu0 %1816 }
 0x226   : > { %2382 = vmatprep.subr.bf16.mxu1 %v1762_v35 }
 0x227   : > { %5745 = vmatpush3.bf16.msra.mxu0 %v6457_v4  ;;  %v6473_v4 = vld [vmem:[#allocation2 + $0x128] sm:$0xff]  }
 0x228   : > { %5506 = vmatmul.mubr.msk.bf16.gmra.mxu1 %vm997_vm0, %v7666_v53  ;;  %5510 = vmatmul.mubr.msk.bf16.gmra.mxu0 %vm997_vm0, %v7666_v53 }
 0x229   : > { %2383 = vmatpush1.bf16.msra.mxu1 %v1761_v20  ;;  %2402 = vmatprep.mubr.bf16.mxu1 %v8744_v59  ;;  %v6477_v20 = vld [vmem:[#allocation2 + $0x120] sm:$0xff]  }
 0x22a   : > { %2384 = vmatprep.subr.bf16.mxu1 %v1746_v48  ;;  %5746 = vmatprep.subr.bf16.mxu0 %v6458_v40 }
 0x22b   : > { %5747 = vmatpush3.bf16.msra.mxu0 %v6459_v43 }
 0x22c   : > { %5748 = vmatprep.subr.bf16.mxu0 %v6460_v11  ;;  %v6479_v11 = vld [vmem:[#allocation2 + $0x158] sm:$0xff]  }
 0x22d   : > { %2385 = vmatpush1.bf16.msra.mxu1 %v1745_v7 }
 0x22e   : > { %5774 = vmatprep.subr.bf16.mxu1 %v6462_v37 }
 0x22f   : > { %5749 = vmatpush3.bf16.msra.mxu0 %v6461_v51 }
 0x230   : > { %5511 = vmatmul.mubr.msk.bf16.vlgmr.msra.gmra.mxu1 %vm997_vm0, %v6618_v58  ;;  %5814 = vmatprep.subr.bf16.mxu0 %v6463_v12  ;;  %v6481_v12 = vld [vmem:[#allocation2 + $0x118] sm:$0xff]   ;;  %v7985_v58 = vpop.permute.xlu0 %1824 }
 0x231   : > { %2412 = vmatprep.mubr.bf16.mxu1 %v8744_v59  ;;  %5775 = vmatpush3.bf16.msra.mxu1 %v6464_v34  ;;  %v7983_v34 = vpop.permute.xlu1 %1820 }
 0x232   : > { %5776 = vmatprep.subr.bf16.mxu1 %v6466_v14 }
 0x235   : > { %5777 = vmatpush3.bf16.msra.mxu1 %v6468_v18  ;;  %v6483_v18 = vld [vmem:[#allocation2 + $0x150] sm:$0xff]  }
 0x236   : > { %5778 = vmatprep.subr.bf16.mxu1 %v6470_v19 }
 0x238   : > { %5512 = vmatmul.mubr.msk.bf16.gmra.mxu1 %vm997_vm0, %v6619_v5  ;;  %v6485_v5 = vld [vmem:[#allocation2 + $0x110] sm:$0xff]  }
 0x239   : > { %2422 = vmatprep.mubr.bf16.mxu1 %v8744_v59  ;;  %5779 = vmatpush3.bf16.msra.mxu1 %v6472_v2 }
 0x23a   : > { %5780 = vmatprep.subr.bf16.mxu1 %v6474_v60 }
 0x23d   : > { %5781 = vmatpush3.bf16.msra.mxu1 %v6476_v36 }
 0x23e   : > { %5782 = vmatprep.subr.bf16.mxu1 %v6478_v10 }
 0x240   : > { %5513 = vmatmul.mubr.msk.bf16.gmra.mxu1 %vm997_vm0, %v7625_v46 }
 0x241   : > { %2432 = vmatprep.mubr.bf16.mxu1 %v8744_v59  ;;  %5783 = vmatpush3.bf16.msra.mxu1 %v6480_v30  ;;  %v6487_v30 = vld [vmem:[#allocation2 + $0x148] sm:$0xff]  }
 0x242   : > { %5784 = vmatprep.subr.bf16.mxu1 %v6482_v32 }
 0x245   : > { %5785 = vmatpush3.bf16.msra.mxu1 %v6484_v57 }
 0x246   : > { %5786 = vmatprep.subr.bf16.mxu1 %v6486_v22 }
 0x248   : > { %5514 = vmatmul.mubr.msk.bf16.gmra.mxu1 %vm997_vm0, %v7666_v53 }
 0x249   : > { %5787 = vmatpush3.bf16.msra.mxu1 %v6488_v16 }
 0x24a   : > { %5788 = vmatprep.subr.bf16.mxu1 %v6490_v15 }
 0x24d   : > { %5789 = vmatpush3.bf16.msra.mxu1 %v6492_v1 }
 0x24e   : > { %5854 = vmatprep.subr.bf16.mxu1 %v6494_v47  ;;  %v6489_v47 = vld [vmem:[#allocation2 + $0x108] sm:$0xff]  }
 0x26f   : > { %v1893_v46 = vpop.f32.mrf.mxu0 }
 0x270   : > { %v1894_v44 = vadd.f32 %v1893_v46, %v7959_v45 }
 0x271   : > { %v1895_v59 = vpop.f32.mrf.mxu0 }
 0x272   : > { %v1896_v49 = vadd.f32 %v1895_v59, %v7959_v45  ;;  %v6491_v59 = vld [vmem:[#allocation2 + $0x140] sm:$0xff]  }
 0x273   : > { %v1897_v33 = vpop.f32.mrf.mxu0 }
 0x274   : > { %v1898_v17 = vadd.f32 %v1897_v33, %v7961_v6 }
 0x275   : > { %v1899_v53 = vpop.f32.mrf.mxu0 }
 0x276   : > { %v1900_v3 = vadd.f32 %v1899_v53, %v7961_v6  ;;  %v2443_v24 = vpack.c.bf16 %v1898_v17, %v1894_v44  ;;  %v6493_v53 = vld [vmem:[#allocation2 + $0x100] sm:$0xff]  }
 0x277   : > { %v1903_v61 = vpop.f32.mrf.mxu0 }
 0x278   : > { %v2444_v13 = vpack.c.bf16 %v1900_v3, %v1896_v49  ;;  %v1904_v0 = vadd.f32 %v1903_v61, %v7967_v63 }
 0x279   : > { %v1905_v42 = vpop.f32.mrf.mxu0 }
 0x27a   : > { %3563 = vmatprep.mubr.bf16.mxu0 %v2444_v13  ;;  %v1906_v9 = vadd.f32 %v1905_v42, %v7967_v63  ;;  %v6495_v42 = vld [vmem:[#allocation2 + $0x278] sm:$0xff]  }
 0x27b   : > { %v1907_v52 = vpop.f32.mrf.mxu0  ;;  %3564 = vmatmul.mubr.bf16.vlgmr.msra.gmra.mxu0 %v2443_v24 }
 0x27c   : > { %5815 = vmatpush3.bf16.msra.mxu0 %v6465_v62  ;;  %v1908_v29 = vadd.f32 %v1907_v52, %v7969_v41 }
 0x27d   : > { %v1909_v56 = vpop.f32.mrf.mxu0  ;;  %5816 = vmatprep.subr.bf16.mxu0 %v6467_v28 }
 0x27e   : > { %v1910_v21 = vadd.f32 %v1909_v56, %v7969_v41  ;;  %v2459_v25 = vpack.c.bf16 %v1908_v29, %v1904_v0  ;;  %v6496_v56 = vld [vmem:[#allocation2 + $0x1b8] sm:$0xff]  }
 0x280   : > { %v1913_v27 = vpop.f32.mrf.mxu0  ;;  %v2460_v8 = vpack.c.bf16 %v1910_v21, %v1906_v9  ;;  %5817 = vmatpush3.bf16.msra.mxu0 %v6469_v55 }
 0x281   : > { %5818 = vmatprep.subr.bf16.mxu0 %v6471_v50  ;;  %v1914_v40 = vadd.f32 %v1913_v27, %v7975_v23 }
 0x282   : > { %v1915_v35 = vpop.f32.mrf.mxu0  ;;  %3571 = vmatprep.mubr.bf16.mxu0 %v2460_v8  ;;  %v6498_v8 = vld [vmem:[#allocation2 + $0x1f0] sm:$0xff]  }
 0x283   : > { %3572 = vmatmul.mubr.bf16.gmra.mxu0 %v2459_v25  ;;  %v1916_v31 = vadd.f32 %v1915_v35, %v7975_v23  ;;  %v6497_v25 = vld [vmem:[#allocation2 + $0x238] sm:$0xff]  }
 0x284   : > { %v1917_v38 = vpop.f32.mrf.mxu0  ;;  %5819 = vmatpush3.bf16.msra.mxu0 %v6473_v4 }
 0x285   : > { %v1918_v43 = vadd.f32 %v1917_v38, %v7977_v54  ;;  %5820 = vmatprep.subr.bf16.mxu0 %v6475_v26  ;;  %v6499_v26 = vld [vmem:[#allocation2 + $0x270] sm:$0xff]  }
 0x286   : > { %v1919_v48 = vpop.f32.mrf.mxu0 }
 0x287   : > { %v1920_v39 = vadd.f32 %v1919_v48, %v7977_v54  ;;  %v2475_v7 = vpack.c.bf16 %v1918_v43, %v1914_v40  ;;  %v6501_v48 = vld [vmem:[#allocation2 + $0x230] sm:$0xff]  }
 0x288   : > { %v1923_v37 = vpop.f32.mrf.mxu0  ;;  %5821 = vmatpush3.bf16.msra.mxu0 %v6477_v20 }
 0x289   : > { %v2476_v51 = vpack.c.bf16 %v1920_v39, %v1916_v31  ;;  %5822 = vmatprep.subr.bf16.mxu0 %v6479_v11  ;;  %v1924_v2 = vadd.f32 %v1923_v37, %v7983_v34  ;;  %v6500_v31 = vld [vmem:[#allocation2 + $0x1b0] sm:$0xff]   ;;  %v6502_v11 = vld [vmem:[#allocation2 + $0x1e8] sm:$0xff]  }
 0x28a   : > { %v1925_v14 = vpop.f32.mrf.mxu0 }
 0x28b   : > { %3579 = vmatprep.mubr.bf16.mxu0 %v2476_v51  ;;  %v1926_v60 = vadd.f32 %v1925_v14, %v7983_v34 }
 0x28c   : > { %v1927_v19 = vpop.f32.mrf.mxu0  ;;  %3580 = vmatmul.mubr.bf16.gmra.mxu0 %v2475_v7 }
 0x28d   : > { %5823 = vmatpush3.bf16.msra.mxu0 %v6481_v12  ;;  %v1928_v36 = vadd.f32 %v1927_v19, %v7985_v58  ;;  %v6503_v12 = vld [vmem:[#allocation2 + $0x268] sm:$0xff]  }
 0x28e   : > { %v1929_v10 = vpop.f32.mrf.mxu0  ;;  %5824 = vmatprep.subr.bf16.mxu0 %v6483_v18 }
 0x28f   : > { %v1930_v32 = vadd.f32 %v1929_v10, %v7985_v58  ;;  %v1966_v57 = vpop.f32.mrf.mxu1  ;;  %v2491_v16 = vpack.c.bf16 %v1928_v36, %v1924_v2  ;;  %v6504_v10 = vld [vmem:[#allocation2 + $0x1a8] sm:$0xff]  }
 0x290   : > { %v2039_v22 = vpop.f32.mrf.mxu0  ;;  %v1967_v28 = vadd.f32 %v1966_v57, %v7959_v45 }
 0x291   : > { %v2492_v15 = vpack.c.bf16 %v1930_v32, %v1926_v60  ;;  %5825 = vmatpush3.bf16.msra.mxu0 %v6485_v5  ;;  %v1968_v1 = vpop.f32.mrf.mxu1  ;;  %v2040_v3 = vadd.f32 %v2039_v22, %v7959_v45  ;;  %v6505_v22 = vld [vmem:[#allocation2 + $0x228] sm:$0xff]  }
 0x292   : > { %v2041_v46 = vpop.f32.mrf.mxu0  ;;  %5826 = vmatprep.subr.bf16.mxu0 %v6487_v30  ;;  %v1969_v61 = vadd.f32 %v1968_v1, %v7959_v45 }
 0x293   : > { %3587 = vmatprep.mubr.bf16.mxu0 %v2492_v15  ;;  %v1970_v33 = vpop.f32.mrf.mxu1  ;;  %v2042_v52 = vadd.f32 %v2041_v46, %v7959_v45 }
 0x294   : > { %v2043_v44 = vpop.f32.mrf.mxu0  ;;  %3588 = vmatmul.mubr.bf16.gmra.mxu0 %v2491_v16  ;;  %v1971_v49 = vadd.f32 %v1970_v33, %v7961_v6  ;;  %v6506_v16 = vld [vmem:[#allocation2 + $0x1e0] sm:$0xff]  }
 0x295   : > { %5827 = vmatpush3.bf16.msra.mxu0 %v6489_v47  ;;  %v1972_v17 = vpop.f32.mrf.mxu1  ;;  %v2044_v24 = vadd.f32 %v2043_v44, %v7961_v6  ;;  %v6507_v47 = vld [vmem:[#allocation2 + $0x260] sm:$0xff]  }
 0x296   : > { %v1973_v13 = vadd.f32 %v1972_v17, %v7961_v6  ;;  %v2045_v62 = vpop.f32.mrf.mxu0  ;;  %5828 = vmatprep.subr.bf16.mxu0 %v6491_v59  ;;  %v2445_v50 = vpack.c.bf16 %v1971_v49, %v1967_v28  ;;  %v6508_v33 = vld [vmem:[#allocation2 + $0x1a0] sm:$0xff]  }
 0x297   : > { %v2046_v0 = vadd.f32 %v2045_v62, %v7961_v6  ;;  %v1976_v9 = vpop.f32.mrf.mxu1  ;;  %v2447_v4 = vpack.c.bf16 %v2044_v24, %v2040_v3  ;;  %v6509_v17 = vld [vmem:[#allocation2 + $0x220] sm:$0xff]   ;;  %v6511_v62 = vld [vmem:[#allocation2 + $0x258] sm:$0xff]  }
 0x298   : > { %v2446_v55 = vpack.c.bf16 %v1973_v13, %v1969_v61  ;;  %v2049_v29 = vpop.f32.mrf.mxu0  ;;  %v1977_v14 = vadd.f32 %v1976_v9, %v7967_v63 }
 0x299   : > { %v2448_v21 = vpack.c.bf16 %v2046_v0, %v2042_v52  ;;  %5829 = vmatpush3.bf16.msra.mxu0 %v6493_v53  ;;  %v1978_v27 = vpop.f32.mrf.mxu1  ;;  %v2050_v60 = vadd.f32 %v2049_v29, %v7967_v63  ;;  %v6510_v53 = vld [vmem:[#allocation2 + $0x1d8] sm:$0xff]  }
 0x29a   : > { %v2051_v35 = vpop.f32.mrf.mxu0  ;;  %3628 = vmatprep.mubr.bf16.mxu1 %v2446_v55  ;;  %5894 = vmatprep.subr.bf16.mxu0 %v6495_v42  ;;  %v1979_v39 = vadd.f32 %v1978_v27, %v7967_v63 }
 0x29b   : > { %3693 = vmatprep.mubr.bf16.mxu0 %v2448_v21  ;;  %v1980_v38 = vpop.f32.mrf.mxu1  ;;  %3629 = vmatmul.mubr.bf16.vlgmr.msra.gmra.mxu1 %v2445_v50  ;;  %v2052_v18 = vadd.f32 %v2051_v35, %v7967_v63 }
 0x29c   : > { %v2053_v40 = vpop.f32.mrf.mxu0  ;;  %3694 = vmatmul.mubr.bf16.vlgmr.msra.gmra.mxu0 %v2447_v4  ;;  %5855 = vmatpush3.bf16.msra.mxu1 %v6496_v56  ;;  %v1981_v20 = vadd.f32 %v1980_v38, %v7969_v41  ;;  %v6512_v56 = vld [vmem:[#allocation2 + $0x198] sm:$0xff]  }
 0x29d   : > { %5895 = vmatpush3.bf16.msra.mxu0 %v6497_v25  ;;  %v1982_v43 = vpop.f32.mrf.mxu1  ;;  %5856 = vmatprep.subr.bf16.mxu1 %v6498_v8  ;;  %v2054_v37 = vadd.f32 %v2053_v40, %v7969_v41  ;;  %v6513_v25 = vld [vmem:[#allocation2 + $0x218] sm:$0xff]   ;;  %v6514_v8 = vld [vmem:[#allocation2 + $0x1d0] sm:$0xff]  }
 0x29e   : > { %v1983_v7 = vadd.f32 %v1982_v43, %v7969_v41  ;;  %v2055_v51 = vpop.f32.mrf.mxu0  ;;  %5896 = vmatprep.subr.bf16.mxu0 %v6499_v26  ;;  %v2461_v30 = vpack.c.bf16 %v1981_v20, %v1977_v14  ;;  %v6515_v26 = vld [vmem:[#allocation2 + $0x250] sm:$0xff]  }
 0x29f   : > { %v2056_v19 = vadd.f32 %v2055_v51, %v7969_v41  ;;  %v1986_v2 = vpop.f32.mrf.mxu1  ;;  %v2463_v15 = vpack.c.bf16 %v2054_v37, %v2050_v60 }
 0x2a0   : > { %v2462_v5 = vpack.c.bf16 %v1983_v7, %v1979_v39  ;;  %v2059_v36 = vpop.f32.mrf.mxu0  ;;  %5857 = vmatpush3.bf16.msra.mxu1 %v6500_v31  ;;  %v1987_v42 = vadd.f32 %v1986_v2, %v7975_v23  ;;  %v6516_v31 = vld [vmem:[#allocation2 + $0x190] sm:$0xff]  }
 0x2a1   : > { %v2464_v32 = vpack.c.bf16 %v2056_v19, %v2052_v18  ;;  %5897 = vmatpush3.bf16.msra.mxu0 %v6501_v48  ;;  %v1988_v57 = vpop.f32.mrf.mxu1  ;;  %5858 = vmatprep.subr.bf16.mxu1 %v6502_v11  ;;  %v2060_v9 = vadd.f32 %v2059_v36, %v7975_v23  ;;  %v6517_v48 = vld [vmem:[#allocation2 + $0x210] sm:$0xff]   ;;  %v6518_v11 = vld [vmem:[#allocation2 + $0x1c8] sm:$0xff]  }
 0x2a2   : > { %v2061_v1 = vpop.f32.mrf.mxu0  ;;  %3636 = vmatprep.mubr.bf16.mxu1 %v2462_v5  ;;  %5898 = vmatprep.subr.bf16.mxu0 %v6503_v12  ;;  %v1989_v3 = vadd.f32 %v1988_v57, %v7975_v23  ;;  %v6519_v12 = vld [vmem:[#allocation2 + $0x248] sm:$0xff]  }
 0x2a3   : > { %3701 = vmatprep.mubr.bf16.mxu0 %v2464_v32  ;;  %v1990_v46 = vpop.f32.mrf.mxu1  ;;  %3637 = vmatmul.mubr.bf16.gmra.mxu1 %v2461_v30  ;;  %v2062_v28 = vadd.f32 %v2061_v1, %v7975_v23  ;;  %v6521_v57 = vld [vmem:[#allocation2 + $0x208] sm:$0xff]  }
 0x2a4   : > { %v2063_v59 = vpop.f32.mrf.mxu0  ;;  %3702 = vmatmul.mubr.bf16.gmra.mxu0 %v2463_v15  ;;  %5859 = vmatpush3.bf16.msra.mxu1 %v6504_v10  ;;  %v1991_v44 = vadd.f32 %v1990_v46, %v7977_v54  ;;  %v6520_v10 = vld [vmem:[#allocation2 + $0x188] sm:$0xff]  }
 0x2a5   : > { %5899 = vmatpush3.bf16.msra.mxu0 %v6505_v22  ;;  %v1992_v49 = vpop.f32.mrf.mxu1  ;;  %5860 = vmatprep.subr.bf16.mxu1 %v6506_v16  ;;  %v2064_v61 = vadd.f32 %v2063_v59, %v7977_v54  ;;  %v6522_v22 = vld [vmem:[#allocation2 + $0x1c0] sm:$0xff]  }
 0x2a6   : > { %v1993_v24 = vadd.f32 %v1992_v49, %v7977_v54  ;;  %v2065_v13 = vpop.f32.mrf.mxu0  ;;  %5900 = vmatprep.subr.bf16.mxu0 %v6507_v47  ;;  %v2477_v50 = vpack.c.bf16 %v1991_v44, %v1987_v42  ;;  %v6523_v47 = vld [vmem:[#allocation2 + $0x240] sm:$0xff]  }
 0x2a7   : > { %v2066_v52 = vadd.f32 %v2065_v13, %v7977_v54  ;;  %v1996_v0 = vpop.f32.mrf.mxu1  ;;  %v2479_v4 = vpack.c.bf16 %v2064_v61, %v2060_v9  ;;  %v6525_v44 = vld [vmem:[#allocation2 + $0x200] sm:$0xff]   ;;  %v6526_v61 = vld [vmem:[#allocation2 + $0x2f8] sm:$0xff]  }
 0x2a8   : > { %v2478_v55 = vpack.c.bf16 %v1993_v24, %v1989_v3  ;;  %v2069_v29 = vpop.f32.mrf.mxu0  ;;  %5861 = vmatpush3.bf16.msra.mxu1 %v6508_v33  ;;  %v1997_v14 = vadd.f32 %v1996_v0, %v7983_v34  ;;  %v6524_v33 = vld [vmem:[#allocation2 + $0x180] sm:$0xff]   ;;  %v6527_v24 = vld [vmem:[#allocation2 + $0x378] sm:$0xff]  }
 0x2a9   : > { %v2480_v21 = vpack.c.bf16 %v2066_v52, %v2062_v28  ;;  %5901 = vmatpush3.bf16.msra.mxu0 %v6509_v17  ;;  %v1998_v27 = vpop.f32.mrf.mxu1  ;;  %5862 = vmatprep.subr.bf16.mxu1 %v6510_v53  ;;  %v2070_v2 = vadd.f32 %v2069_v29, %v7983_v34 }
 0x2aa   : > { %v2071_v35 = vpop.f32.mrf.mxu0  ;;  %3644 = vmatprep.mubr.bf16.mxu1 %v2478_v55  ;;  %5902 = vmatprep.subr.bf16.mxu0 %v6511_v62  ;;  %v1999_v39 = vadd.f32 %v1998_v27, %v7983_v34 }
 0x2ab   : > { %3709 = vmatprep.mubr.bf16.mxu0 %v2480_v21  ;;  %v2000_v38 = vpop.f32.mrf.mxu1  ;;  %3645 = vmatmul.mubr.bf16.gmra.mxu1 %v2477_v50  ;;  %v2072_v18 = vadd.f32 %v2071_v35, %v7983_v34  ;;  %v6528_v50 = vld [vmem:[#allocation2 + $0x2b8] sm:$0xff]   ;;  %v6530_v35 = vld [vmem:[#allocation2 + $0x2f0] sm:$0xff]  }
 0x2ac   : > { %v2073_v40 = vpop.f32.mrf.mxu0  ;;  %3710 = vmatmul.mubr.bf16.gmra.mxu0 %v2479_v4  ;;  %5863 = vmatpush3.bf16.msra.mxu1 %v6512_v56  ;;  %v2001_v20 = vadd.f32 %v2000_v38, %v7985_v58  ;;  %v6529_v21 = vld [vmem:[#allocation2 + $0x338] sm:$0xff]  }
 0x2ad   : > { %5903 = vmatpush3.bf16.msra.mxu0 %v6513_v25  ;;  %v2002_v43 = vpop.f32.mrf.mxu1  ;;  %5864 = vmatprep.subr.bf16.mxu1 %v6514_v8  ;;  %v2074_v37 = vadd.f32 %v2073_v40, %v7985_v58 }
 0x2ae   : > { %v2003_v7 = vadd.f32 %v2002_v43, %v7985_v58  ;;  %v2075_v51 = vpop.f32.mrf.mxu0  ;;  %5904 = vmatprep.subr.bf16.mxu0 %v6515_v26  ;;  %v2493_v30 = vpack.c.bf16 %v2001_v20, %v1997_v14  ;;  %v6531_v26 = vld [vmem:[#allocation2 + $0x370] sm:$0xff]  }
 0x2af   : > { %v2076_v19 = vadd.f32 %v2075_v51, %v7985_v58  ;;  %v2495_v16 = vpack.c.bf16 %v2074_v37, %v2070_v2  ;;  %v6534_v37 = vld [vmem:[#allocation2 + $0x2e8] sm:$0xff]  }
 0x2b0   : > { %v2494_v60 = vpack.c.bf16 %v2003_v7, %v1999_v39  ;;  %v2112_v5 = vpop.f32.mrf.mxu1  ;;  %v2185_v36 = vpop.f32.mrf.mxu0  ;;  %5865 = vmatpush3.bf16.msra.mxu1 %v6516_v31  ;;  %v6532_v31 = vld [vmem:[#allocation2 + $0x2b0] sm:$0xff]  }
 0x2b1   : > { %v2496_v32 = vpack.c.bf16 %v2076_v19, %v2072_v18  ;;  %5905 = vmatpush3.bf16.msra.mxu0 %v6517_v48  ;;  %5866 = vmatprep.subr.bf16.mxu1 %v6518_v11  ;;  %v2113_v52 = vadd.f32 %v2112_v5, %v7959_v45  ;;  %v2186_v0 = vadd.f32 %v2185_v36, %v7959_v45  ;;  %v6533_v39 = vld [vmem:[#allocation2 + $0x330] sm:$0xff]  }
 0x2b2   : > { %v2114_v15 = vpop.f32.mrf.mxu1  ;;  %v2187_v1 = vpop.f32.mrf.mxu0  ;;  %3652 = vmatprep.mubr.bf16.mxu1 %v2494_v60  ;;  %5906 = vmatprep.subr.bf16.mxu0 %v6519_v12 }
 0x2b3   : > { %3717 = vmatprep.mubr.bf16.mxu0 %v2496_v32  ;;  %3653 = vmatmul.mubr.bf16.gmra.mxu1 %v2493_v30  ;;  %v2115_v13 = vadd.f32 %v2114_v15, %v7959_v45  ;;  %v2188_v62 = vadd.f32 %v2187_v1, %v7959_v45  ;;  %v6536_v30 = vld [vmem:[#allocation2 + $0x2a8] sm:$0xff]   ;;  %v6538_v1 = vld [vmem:[#allocation2 + $0x2e0] sm:$0xff]  }
 0x2b4   : > { %v2116_v46 = vpop.f32.mrf.mxu1  ;;  %v2189_v59 = vpop.f32.mrf.mxu0  ;;  %3718 = vmatmul.mubr.bf16.gmra.mxu0 %v2495_v16  ;;  %5867 = vmatpush3.bf16.msra.mxu1 %v6520_v10  ;;  %v6535_v10 = vld [vmem:[#allocation2 + $0x368] sm:$0xff]  }
 0x2b5   : > { %5907 = vmatpush3.bf16.msra.mxu0 %v6521_v57  ;;  %5868 = vmatprep.subr.bf16.mxu1 %v6522_v22  ;;  %v2117_v49 = vadd.f32 %v2116_v46, %v7961_v6  ;;  %v2190_v17 = vadd.f32 %v2189_v59, %v7961_v6  ;;  %v6537_v15 = vld [vmem:[#allocation2 + $0x328] sm:$0xff]  }
 0x2b6   : > { %v2118_v53 = vpop.f32.mrf.mxu1  ;;  %v2191_v3 = vpop.f32.mrf.mxu0  ;;  %5908 = vmatprep.subr.bf16.mxu0 %v6523_v47  ;;  %v6539_v47 = vld [vmem:[#allocation2 + $0x360] sm:$0xff]  }
 0x2b7   : > { %v2119_v42 = vadd.f32 %v2118_v53, %v7961_v6  ;;  %v2192_v28 = vadd.f32 %v2191_v3, %v7961_v6  ;;  %v2449_v27 = vpack.c.bf16 %v2117_v49, %v2113_v52  ;;  %v2451_v25 = vpack.c.bf16 %v2190_v17, %v2186_v0  ;;  %v6541_v3 = vld [vmem:[#allocation2 + $0x320] sm:$0xff]  }
 0x2b8   : > { %v2122_v9 = vpop.f32.mrf.mxu1  ;;  %v2195_v55 = vpop.f32.mrf.mxu0  ;;  %5869 = vmatpush3.bf16.msra.mxu1 %v6524_v33  ;;  %v6540_v33 = vld [vmem:[#allocation2 + $0x2a0] sm:$0xff]  }
 0x2b9   : > { %v2450_v29 = vpack.c.bf16 %v2119_v42, %v2115_v13  ;;  %v2452_v56 = vpack.c.bf16 %v2192_v28, %v2188_v62  ;;  %5909 = vmatpush3.bf16.msra.mxu0 %v6525_v44  ;;  %5934 = vmatprep.subr.bf16.mxu1 %v6526_v61  ;;  %v2123_v18 = vadd.f32 %v2122_v9, %v7967_v63  ;;  %v6542_v61 = vld [vmem:[#allocation2 + $0x2d8] sm:$0xff]  }
 0x2ba   : > { %v2124_v8 = vpop.f32.mrf.mxu1  ;;  %v2197_v4 = vpop.f32.mrf.mxu0  ;;  %5974 = vmatprep.subr.bf16.mxu0 %v6527_v24  ;;  %v2196_v19 = vadd.f32 %v2195_v55, %v7967_v63 }
 0x2bb   : > { %3758 = vmatprep.mubr.bf16.mxu1 %v2450_v29  ;;  %3823 = vmatprep.mubr.bf16.mxu0 %v2452_v56  ;;  %v2125_v7 = vadd.f32 %v2124_v8, %v7967_v63  ;;  %v2198_v51 = vadd.f32 %v2197_v4, %v7967_v63  ;;  %v6543_v56 = vld [vmem:[#allocation2 + $0x358] sm:$0xff]  }
 0x2bc   : > { %v2126_v38 = vpop.f32.mrf.mxu1  ;;  %v2199_v40 = vpop.f32.mrf.mxu0  ;;  %3759 = vmatmul.mubr.bf16.vlgmr.msra.gmra.mxu1 %v2449_v27  ;;  %3824 = vmatmul.mubr.bf16.vlgmr.msra.gmra.mxu0 %v2451_v25  ;;  %v6545_v4 = vld [vmem:[#allocation2 + $0x318] sm:$0xff]  }
 0x2bd   : > { %5935 = vmatpush3.bf16.msra.mxu1 %v6528_v50  ;;  %5975 = vmatpush3.bf16.msra.mxu0 %v6529_v21  ;;  %v2127_v20 = vadd.f32 %v2126_v38, %v7969_v41  ;;  %v2200_v43 = vadd.f32 %v2199_v40, %v7969_v41  ;;  %v6544_v50 = vld [vmem:[#allocation2 + $0x298] sm:$0xff]  }
 0x2be   : > { %v2128_v48 = vpop.f32.mrf.mxu1  ;;  %v2201_v11 = vpop.f32.mrf.mxu0  ;;  %5936 = vmatprep.subr.bf16.mxu1 %v6530_v35  ;;  %5976 = vmatprep.subr.bf16.mxu0 %v6531_v26  ;;  %v6546_v35 = vld [vmem:[#allocation2 + $0x2d0] sm:$0xff]  }
 0x2bf   : > { %v2129_v12 = vadd.f32 %v2128_v48, %v7969_v41  ;;  %v2202_v14 = vadd.f32 %v2201_v11, %v7969_v41  ;;  %v2465_v32 = vpack.c.bf16 %v2127_v20, %v2123_v18  ;;  %v2467_v57 = vpack.c.bf16 %v2200_v43, %v2196_v19  ;;  %v6547_v26 = vld [vmem:[#allocation2 + $0x350] sm:$0xff]  }
 0x2c0   : > { %v2132_v2 = vpop.f32.mrf.mxu1  ;;  %v2205_v60 = vpop.f32.mrf.mxu0 }
 0x2c1   : > { %v2466_v5 = vpack.c.bf16 %v2129_v12, %v2125_v7  ;;  %v2468_v36 = vpack.c.bf16 %v2202_v14, %v2198_v51  ;;  %5937 = vmatpush3.bf16.msra.mxu1 %v6532_v31  ;;  %5977 = vmatpush3.bf16.msra.mxu0 %v6533_v39  ;;  %v2133_v28 = vadd.f32 %v2132_v2, %v7975_v23  ;;  %v6548_v31 = vld [vmem:[#allocation2 + $0x290] sm:$0xff]  }
 0x2c2   : > { %v2134_v22 = vpop.f32.mrf.mxu1  ;;  %v2207_v16 = vpop.f32.mrf.mxu0  ;;  %5938 = vmatprep.subr.bf16.mxu1 %v6534_v37  ;;  %5978 = vmatprep.subr.bf16.mxu0 %v6535_v10  ;;  %v2206_v52 = vadd.f32 %v2205_v60, %v7975_v23  ;;  %v6549_v39 = vld [vmem:[#allocation2 + $0x310] sm:$0xff]   ;;  %v6550_v37 = vld [vmem:[#allocation2 + $0x2c8] sm:$0xff]  }
 0x2c3   : > { %3766 = vmatprep.mubr.bf16.mxu1 %v2466_v5  ;;  %3831 = vmatprep.mubr.bf16.mxu0 %v2468_v36  ;;  %v2135_v24 = vadd.f32 %v2134_v22, %v7975_v23  ;;  %v2208_v13 = vadd.f32 %v2207_v16, %v7975_v23  ;;  %v6551_v10 = vld [vmem:[#allocation2 + $0x348] sm:$0xff]  }
 0x2c4   : > { %v2136_v46 = vpop.f32.mrf.mxu1  ;;  %v2209_v59 = vpop.f32.mrf.mxu0  ;;  %3767 = vmatmul.mubr.bf16.gmra.mxu1 %v2465_v32  ;;  %3832 = vmatmul.mubr.bf16.gmra.mxu0 %v2467_v57 }
 0x2c5   : > { %5939 = vmatpush3.bf16.msra.mxu1 %v6536_v30  ;;  %v2137_v44 = vadd.f32 %v2136_v46, %v7977_v54  ;;  %v2210_v49 = vadd.f32 %v2209_v59, %v7977_v54  ;;  %5979 = vmatpush3.bf16.msra.mxu0 %v6537_v15  ;;  %v6552_v30 = vld [vmem:[#allocation2 + $0x288] sm:$0xff]  }
 0x2c6   : > { %v2138_v17 = vpop.f32.mrf.mxu1  ;;  %v2211_v53 = vpop.f32.mrf.mxu0  ;;  %5940 = vmatprep.subr.bf16.mxu1 %v6538_v1  ;;  %5980 = vmatprep.subr.bf16.mxu0 %v6539_v47  ;;  %v6553_v15 = vld [vmem:[#allocation2 + $0x308] sm:$0xff]   ;;  %v6554_v1 = vld [vmem:[#allocation2 + $0x2c0] sm:$0xff]  }
 0x2c7   : > { %v2139_v62 = vadd.f32 %v2138_v17, %v7977_v54  ;;  %v2212_v42 = vadd.f32 %v2211_v53, %v7977_v54  ;;  %v2481_v21 = vpack.c.bf16 %v2137_v44, %v2133_v28  ;;  %v2483_v27 = vpack.c.bf16 %v2210_v49, %v2206_v52  ;;  %v6555_v47 = vld [vmem:[#allocation2 + $0x340] sm:$0xff]  }
 0x2c8   : > { %v2142_v0 = vpop.f32.mrf.mxu1  ;;  %v2215_v9 = vpop.f32.mrf.mxu0 }
 0x2c9   : > { %v2482_v55 = vpack.c.bf16 %v2139_v62, %v2135_v24  ;;  %v2484_v29 = vpack.c.bf16 %v2212_v42, %v2208_v13  ;;  %5941 = vmatpush3.bf16.msra.mxu1 %v6540_v33  ;;  %5981 = vmatpush3.bf16.msra.mxu0 %v6541_v3  ;;  %v2143_v18 = vadd.f32 %v2142_v0, %v7983_v34  ;;  %v6556_v33 = vld [vmem:[#allocation2 + $0x280] sm:$0xff]  }
 0x2ca   : > { %v2144_v25 = vpop.f32.mrf.mxu1  ;;  %v2217_v8 = vpop.f32.mrf.mxu0  ;;  %5942 = vmatprep.subr.bf16.mxu1 %v6542_v61  ;;  %5982 = vmatprep.subr.bf16.mxu0 %v6543_v56  ;;  %v2216_v19 = vadd.f32 %v2215_v9, %v7983_v34  ;;  %v6557_v3 = vld [vmem:[#allocation2 + $0x300] sm:$0xff]   ;;  %v6558_v61 = vld [vmem:[#allocation2 + $0x3f8] sm:$0xff]  }
 0x2cb   : > { %3774 = vmatprep.mubr.bf16.mxu1 %v2482_v55  ;;  %3839 = vmatprep.mubr.bf16.mxu0 %v2484_v29  ;;  %v2145_v7 = vadd.f32 %v2144_v25, %v7983_v34  ;;  %v2218_v51 = vadd.f32 %v2217_v8, %v7983_v34  ;;  %v6559_v56 = vld [vmem:[#allocation2 + $0x3b8] sm:$0xff]   ;;  %v6560_v25 = vld [vmem:[#allocation2 + $0x3f0] sm:$0xff]  }
 0x2cc   : > { %v2146_v38 = vpop.f32.mrf.mxu1  ;;  %v2219_v40 = vpop.f32.mrf.mxu0  ;;  %3775 = vmatmul.mubr.bf16.gmra.mxu1 %v2481_v21  ;;  %3840 = vmatmul.mubr.bf16.gmra.mxu0 %v2483_v27 }
 0x2cd   : > { %5943 = vmatpush3.bf16.msra.mxu1 %v6544_v50  ;;  %v2147_v20 = vadd.f32 %v2146_v38, %v7985_v58  ;;  %v2220_v43 = vadd.f32 %v2219_v40, %v7985_v58  ;;  %5983 = vmatpush3.bf16.msra.mxu0 %v6545_v4 }
 0x2ce   : > { %v2148_v48 = vpop.f32.mrf.mxu1  ;;  %v2221_v11 = vpop.f32.mrf.mxu0  ;;  %5944 = vmatprep.subr.bf16.mxu1 %v6546_v35  ;;  %5984 = vmatprep.subr.bf16.mxu0 %v6547_v26  ;;  %v6561_v26 = vld [vmem:[#allocation2 + $0x3b0] sm:$0xff]  }
 0x2cf   : > { %v2149_v12 = vadd.f32 %v2148_v48, %v7985_v58  ;;  %v2222_v14 = vadd.f32 %v2221_v11, %v7985_v58  ;;  %v2497_v32 = vpack.c.bf16 %v2147_v20, %v2143_v18  ;;  %v2499_v57 = vpack.c.bf16 %v2220_v43, %v2216_v19  ;;  %v6562_v43 = vld [vmem:[#allocation2 + $0x3e8] sm:$0xff]  }
 0x2d0   : > { %v2258_v2 = vpop.f32.mrf.mxu1  ;;  %v2331_v60 = vpop.f32.mrf.mxu0 }
 0x2d1   : > { %v2498_v5 = vpack.c.bf16 %v2149_v12, %v2145_v7  ;;  %v2500_v36 = vpack.c.bf16 %v2222_v14, %v2218_v51  ;;  %5945 = vmatpush3.bf16.msra.mxu1 %v6548_v31  ;;  %5985 = vmatpush3.bf16.msra.mxu0 %v6549_v39  ;;  %v2259_v28 = vadd.f32 %v2258_v2, %v7959_v45  ;;  %v6563_v2 = vld [vmem:[#allocation2 + $0x3a8] sm:$0xff]  }
 0x2d2   : > { %v2260_v22 = vpop.f32.mrf.mxu1  ;;  %v2333_v16 = vpop.f32.mrf.mxu0  ;;  %5946 = vmatprep.subr.bf16.mxu1 %v6550_v37  ;;  %5986 = vmatprep.subr.bf16.mxu0 %v6551_v10  ;;  %v2332_v9 = vadd.f32 %v2331_v60, %v7959_v45  ;;  %v6564_v10 = vld [vmem:[#allocation2 + $0x3e0] sm:$0xff]  }
 0x2d3   : > { %3782 = vmatprep.mubr.bf16.mxu1 %v2498_v5  ;;  %3847 = vmatprep.mubr.bf16.mxu0 %v2500_v36  ;;  %v2261_v44 = vadd.f32 %v2260_v22, %v7959_v45  ;;  %v2334_v24 = vadd.f32 %v2333_v16, %v7959_v45  ;;  %v6565_v22 = vld [vmem:[#allocation2 + $0x3a0] sm:$0xff]  }
 0x2d4   : > { %v2262_v46 = vpop.f32.mrf.mxu1  ;;  %v2335_v59 = vpop.f32.mrf.mxu0  ;;  %3783 = vmatmul.mubr.bf16.gmra.mxu1 %v2497_v32  ;;  %3848 = vmatmul.mubr.bf16.gmra.mxu0 %v2499_v57 }
 0x2d5   : > { %5947 = vmatpush3.bf16.msra.mxu1 %v6552_v30  ;;  %v2263_v49 = vadd.f32 %v2262_v46, %v7961_v6  ;;  %5987 = vmatpush3.bf16.msra.mxu0 %v6553_v15  ;;  %v2336_v13 = vadd.f32 %v2335_v59, %v7961_v6  ;;  %v6566_v46 = vld [vmem:[#allocation2 + $0x3d8] sm:$0xff]  }
 0x2d6   : > { %v2264_v17 = vpop.f32.mrf.mxu1  ;;  %v2337_v53 = vpop.f32.mrf.mxu0  ;;  %5948 = vmatprep.subr.bf16.mxu1 %v6554_v1  ;;  %5988 = vmatprep.subr.bf16.mxu0 %v6555_v47 }
 0x2d7   : > { %v2265_v62 = vadd.f32 %v2264_v17, %v7961_v6  ;;  %v2338_v42 = vadd.f32 %v2337_v53, %v7961_v6  ;;  %v2453_v50 = vpack.c.bf16 %v2263_v49, %v2259_v28  ;;  %v2455_v8 = vpack.c.bf16 %v2336_v13, %v2332_v9 }
 0x2d8   : > { %v2268_v52 = vpop.f32.mrf.mxu1  ;;  %v2341_v0 = vpop.f32.mrf.mxu0 }
 0x2d9   : > { %v2454_v55 = vpack.c.bf16 %v2265_v62, %v2261_v44  ;;  %v2456_v29 = vpack.c.bf16 %v2338_v42, %v2334_v24  ;;  %5949 = vmatpush3.bf16.msra.mxu1 %v6556_v33  ;;  %5989 = vmatpush3.bf16.msra.mxu0 %v6557_v3  ;;  %v2269_v7 = vadd.f32 %v2268_v52, %v7967_v63  ;;  %v6567_v62 = vld [vmem:[#allocation2 + $0x398] sm:$0xff]  }
 0x2da   : > { %v2270_v21 = vpop.f32.mrf.mxu1  ;;  %v2343_v27 = vpop.f32.mrf.mxu0  ;;  %6014 = vmatprep.subr.bf16.mxu1 %v6558_v61  ;;  %v2342_v14 = vadd.f32 %v2341_v0, %v7967_v63  ;;  %v6568_v0 = vld [vmem:[#allocation2 + $0x3d0] sm:$0xff]  }
 0x2db   : > { %3888 = vmatprep.mubr.bf16.mxu1 %v2454_v55  ;;  %3953 = vmatprep.mubr.bf16.mxu0 %v2456_v29  ;;  %v2271_v38 = vadd.f32 %v2270_v21, %v7967_v63  ;;  %v2344_v48 = vadd.f32 %v2343_v27, %v7967_v63 }
 0x2dc   : > { %v2272_v4 = vpop.f32.mrf.mxu1  ;;  %v2345_v35 = vpop.f32.mrf.mxu0  ;;  %3889 = vmatmul.mubr.bf16.vlgmr.msra.gmra.mxu1 %v2453_v50  ;;  %3954 = vmatmul.mubr.bf16.vlgmr.msra.gmra.mxu0 %v2455_v8  ;;  %v6570_v8 = vld [vmem:[#allocation2 + $0x3c8] sm:$0xff]  }
 0x2dd   : > { %6015 = vmatpush3.bf16.msra.mxu1 %v6559_v56  ;;  %v2273_v40 = vadd.f32 %v2272_v4, %v7969_v41  ;;  %v2346_v11 = vadd.f32 %v2345_v35, %v7969_v41  ;;  %v6569_v56 = vld [vmem:[#allocation2 + $0x390] sm:$0xff]  }
 0x2de   : > { %v2274_v31 = vpop.f32.mrf.mxu1  ;;  %v2347_v20 = vpop.f32.mrf.mxu0  ;;  %6016 = vmatprep.subr.bf16.mxu1 %v6560_v25 }
 0x2df   : > { %v2275_v39 = vadd.f32 %v2274_v31, %v7969_v41  ;;  %v2348_v37 = vadd.f32 %v2347_v20, %v7969_v41  ;;  %v2469_v60 = vpack.c.bf16 %v2273_v40, %v2269_v7  ;;  %v2471_v30 = vpack.c.bf16 %v2346_v11, %v2342_v14  ;;  %v6571_v11 = vld [vmem:[#allocation2 + $0x388] sm:$0xff]   ;;  %v6572_v7 = vld [vmem:[#allocation2 + $0x3c0] sm:$0xff]  }
 0x2e0   : > { %v2278_v51 = vpop.f32.mrf.mxu1  ;;  %v2351_v12 = vpop.f32.mrf.mxu0  ;;  %v6573_v14 = vld [vmem:[#allocation2 + $0x380] sm:$0xff]  }
 0x2e1   : > { %v2470_v18 = vpack.c.bf16 %v2275_v39, %v2271_v38  ;;  %v2472_v19 = vpack.c.bf16 %v2348_v37, %v2344_v48  ;;  %6017 = vmatpush3.bf16.msra.mxu1 %v6561_v26  ;;  %v2279_v17 = vadd.f32 %v2278_v51, %v7975_v23  ;;  %v2352_v61 = vadd.f32 %v2351_v12, %v7975_v23 }
 0x2e2   : > { %v2280_v5 = vpop.f32.mrf.mxu1  ;;  %v2353_v36 = vpop.f32.mrf.mxu0  ;;  %6018 = vmatprep.subr.bf16.mxu1 %v6562_v43 }
 0x2e3   : > { %3896 = vmatprep.mubr.bf16.mxu1 %v2470_v18  ;;  %3961 = vmatprep.mubr.bf16.mxu0 %v2472_v19  ;;  %v2281_v16 = vadd.f32 %v2280_v5, %v7975_v23  ;;  %v2354_v59 = vadd.f32 %v2353_v36, %v7975_v23 }
 0x2e4   : > { %v2282_v32 = vpop.f32.mrf.mxu1  ;;  %v2355_v57 = vpop.f32.mrf.mxu0  ;;  %3897 = vmatmul.mubr.bf16.gmra.mxu1 %v2469_v60  ;;  %3962 = vmatmul.mubr.bf16.gmra.mxu0 %v2471_v30 }
 0x2e5   : > { %6019 = vmatpush3.bf16.msra.mxu1 %v6563_v2  ;;  %v2283_v15 = vadd.f32 %v2282_v32, %v7977_v54  ;;  %v2356_v33 = vadd.f32 %v2355_v57, %v7977_v54 }
 0x2e6   : > { %v2284_v1 = vpop.f32.mrf.mxu1  ;;  %v2357_v47 = vpop.f32.mrf.mxu0  ;;  %6020 = vmatprep.subr.bf16.mxu1 %v6564_v10 }
 0x2e7   : > { %v2285_v44 = vadd.f32 %v2284_v1, %v7977_v54  ;;  %v2358_v49 = vadd.f32 %v2357_v47, %v7977_v54  ;;  %v2485_v42 = vpack.c.bf16 %v2283_v15, %v2279_v17  ;;  %v2487_v9 = vpack.c.bf16 %v2356_v33, %v2352_v61 }
 0x2e8   : > { %v2288_v53 = vpop.f32.mrf.mxu1  ;;  %v2361_v3 = vpop.f32.mrf.mxu0 }
 0x2e9   : > { %v2486_v24 = vpack.c.bf16 %v2285_v44, %v2281_v16  ;;  %v2488_v13 = vpack.c.bf16 %v2358_v49, %v2354_v59  ;;  %6021 = vmatpush3.bf16.msra.mxu1 %v6565_v22  ;;  %v2289_v40 = vadd.f32 %v2288_v53, %v7983_v34  ;;  %v2362_v20 = vadd.f32 %v2361_v3, %v7983_v34 }
 0x2ea   : > { %v2290_v28 = vpop.f32.mrf.mxu1  ;;  %v2363_v52 = vpop.f32.mrf.mxu0  ;;  %6022 = vmatprep.subr.bf16.mxu1 %v6566_v46 }
 0x2eb   : > { %3904 = vmatprep.mubr.bf16.mxu1 %v2486_v24  ;;  %3969 = vmatprep.mubr.bf16.mxu0 %v2488_v13  ;;  %v2291_v50 = vadd.f32 %v2290_v28, %v7983_v34  ;;  %v2364_v4 = vadd.f32 %v2363_v52, %v7983_v34 }
 0x2ec   : > { %v2292_v55 = vpop.f32.mrf.mxu1  ;;  %v2365_v29 = vpop.f32.mrf.mxu0  ;;  %3905 = vmatmul.mubr.bf16.gmra.mxu1 %v2485_v42  ;;  %3970 = vmatmul.mubr.bf16.gmra.mxu0 %v2487_v9 }
 0x2ed   : > { %6023 = vmatpush3.bf16.msra.mxu1 %v6567_v62  ;;  %v2293_v21 = vadd.f32 %v2292_v55, %v7985_v58  ;;  %v2366_v35 = vadd.f32 %v2365_v29, %v7985_v58 }
 0x2ee   : > { %v2294_v27 = vpop.f32.mrf.mxu1  ;;  %v2367_v25 = vpop.f32.mrf.mxu0  ;;  %6024 = vmatprep.subr.bf16.mxu1 %v6568_v0 }
 0x2ef   : > { %v2295_v26 = vadd.f32 %v2294_v27, %v7985_v58  ;;  %v2368_v38 = vadd.f32 %v2367_v25, %v7985_v58  ;;  %v2501_v39 = vpack.c.bf16 %v2293_v21, %v2289_v40  ;;  %v2503_v51 = vpack.c.bf16 %v2366_v35, %v2362_v20 }
 0x2f0   : > { %v2404_v31 = vpop.f32.mrf.mxu1 }
 0x2f1   : > { %v2502_v43 = vpack.c.bf16 %v2295_v26, %v2291_v50  ;;  %v2504_v48 = vpack.c.bf16 %v2368_v38, %v2364_v4  ;;  %6025 = vmatpush3.bf16.msra.mxu1 %v6569_v56  ;;  %v2405_v5 = vadd.f32 %v2404_v31, %v7959_v45 }
 0x2f2   : > { %v2406_v37 = vpop.f32.mrf.mxu1  ;;  %6026 = vmatprep.subr.bf16.mxu1 %v6570_v8 }
 0x2f3   : > { %3912 = vmatprep.mubr.bf16.mxu1 %v2502_v43  ;;  %3977 = vmatprep.mubr.bf16.mxu0 %v2504_v48  ;;  %v2407_v2 = vadd.f32 %v2406_v37, %v7959_v45 }
 0x2f4   : > { %v2408_v12 = vpop.f32.mrf.mxu1  ;;  %3913 = vmatmul.mubr.bf16.gmra.mxu1 %v2501_v39  ;;  %3978 = vmatmul.mubr.bf16.gmra.mxu0 %v2503_v51 }
 0x2f5   : > { %6027 = vmatpush3.bf16.msra.mxu1 %v6571_v11  ;;  %v2409_v18 = vadd.f32 %v2408_v12, %v7961_v6 }
 0x2f6   : > { %v2410_v19 = vpop.f32.mrf.mxu1  ;;  %6028 = vmatprep.subr.bf16.mxu1 %v6572_v7 }
 0x2f7   : > { %v2411_v60 = vadd.f32 %v2410_v19, %v7961_v6  ;;  %v2457_v30 = vpack.c.bf16 %v2409_v18, %v2405_v5 }
 0x2f8   : > { %v2414_v36 = vpop.f32.mrf.mxu1 }
 0x2f9   : > { %v2458_v10 = vpack.c.bf16 %v2411_v60, %v2407_v2  ;;  %6029 = vmatpush3.bf16.msra.mxu1 %v6573_v14  ;;  %v2415_v47 = vadd.f32 %v2414_v36, %v7967_v63 }
 0x2fa   : > { %v2416_v32 = vpop.f32.mrf.mxu1 }
 0x2fb   : > { %4018 = vmatprep.mubr.bf16.mxu1 %v2458_v10  ;;  %v2417_v15 = vadd.f32 %v2416_v32, %v7967_v63 }
 0x2fc   : > { %v2418_v57 = vpop.f32.mrf.mxu1  ;;  %4019 = vmatmul.mubr.bf16.vlgmr.msra.gmra.mxu1 %v2457_v30 }
 0x2fd   : > { %v2419_v22 = vadd.f32 %v2418_v57, %v7969_v41 }
 0x2fe   : > { %v2420_v16 = vpop.f32.mrf.mxu1 }
 0x2ff   : > { %v2421_v1 = vadd.f32 %v2420_v16, %v7969_v41  ;;  %v2473_v45 = vpack.c.bf16 %v2419_v22, %v2415_v47 }
 0x300   : > { %v2424_v6 = vpop.f32.mrf.mxu1 }
 0x301   : > { %v2474_v46 = vpack.c.bf16 %v2421_v1, %v2417_v15  ;;  %v2425_v3 = vadd.f32 %v2424_v6, %v7975_v23 }
 0x302   : > { %v2426_v59 = vpop.f32.mrf.mxu1 }
 0x303   : > { %4026 = vmatprep.mubr.bf16.mxu1 %v2474_v46  ;;  %v2427_v17 = vadd.f32 %v2426_v59, %v7975_v23 }
 0x304   : > { %v2428_v33 = vpop.f32.mrf.mxu1  ;;  %4027 = vmatmul.mubr.bf16.gmra.mxu1 %v2473_v45 }
 0x305   : > { %v2429_v44 = vadd.f32 %v2428_v33, %v7977_v54 }
 0x306   : > { %v2430_v49 = vpop.f32.mrf.mxu1 }
 0x307   : > { %v2431_v53 = vadd.f32 %v2430_v49, %v7977_v54  ;;  %v2489_v24 = vpack.c.bf16 %v2429_v44, %v2425_v3 }
 0x308   : > { %v2434_v61 = vpop.f32.mrf.mxu1 }
 0x309   : > { %v2490_v41 = vpack.c.bf16 %v2431_v53, %v2427_v17  ;;  %v2435_v0 = vadd.f32 %v2434_v61, %v7983_v34 }
 0x30a   : > { %v2436_v63 = vpop.f32.mrf.mxu1 }
 0x30b   : > { %4034 = vmatprep.mubr.bf16.mxu1 %v2490_v41  ;;  %v2437_v28 = vadd.f32 %v2436_v63, %v7983_v34 }
 0x30c   : > { %v2438_v13 = vpop.f32.mrf.mxu1  ;;  %4035 = vmatmul.mubr.bf16.gmra.mxu1 %v2489_v24 }
 0x30d   : > { %v2439_v62 = vadd.f32 %v2438_v13, %v7985_v58 }
 0x30e   : > { %v2440_v42 = vpop.f32.mrf.mxu1 }
 0x30f   : > { %v2441_v52 = vadd.f32 %v2440_v42, %v7985_v58  ;;  %v2505_v54 = vpack.c.bf16 %v2439_v62, %v2435_v0  ;;  %v6574_v0 = vld [vmem:[%s8678_s2] sm:$0xff]  }
 0x310   : > { %6168 = vmatprep.mubr.msk.bf16.mxu0 %vm997_vm0, %v6574_v0 }
 0x311   : > { %v2506_v9 = vpack.c.bf16 %v2441_v52, %v2437_v28 }
 0x313   : > { %4042 = vmatprep.mubr.bf16.mxu1 %v2506_v9 }
 0x314   : > { %4043 = vmatmul.mubr.bf16.gmra.mxu1 %v2505_v54 }
 0x33b   : > { %v5750_v23 = vpop.f32.mrf.mxu0 }
 0x33d   : > { %v5751_v55 = vpop.f32.mrf.mxu0 }
 0x33e   : > { %v5752_v29 = vadd.f32 %v5751_v55, %v5750_v23 }
 0x33f   : > { %v5753_v56 = vpop.f32.mrf.mxu0 }
 0x341   : > { %v5754_v50 = vpop.f32.mrf.mxu0 }
 0x342   : > { %v5755_v21 = vadd.f32 %v5754_v50, %v5753_v56 }
 0x343   : > { %v5756_v27 = vpop.f32.mrf.mxu0 }
 0x345   : > { %v5757_v25 = vpop.f32.mrf.mxu0 }
 0x346   : > { %v5758_v8 = vadd.f32 %v5757_v25, %v5756_v27 }
 0x347   : > { %v5759_v4 = vpop.f32.mrf.mxu0 }
 0x349   : > { %v5760_v35 = vpop.f32.mrf.mxu0 }
 0x34a   : > { %v5761_v26 = vadd.f32 %v5760_v35, %v5759_v4 }
 0x34c   : > { %v5762_v38 = vpop.f32.mrf.mxu0 }
 0x34e   : > { %v5763_v58 = vpop.f32.mrf.mxu0 }
 0x34f   : > { %v5764_v40 = vadd.f32 %v5763_v58, %v5762_v38 }
 0x350   : > { %v5765_v34 = vpop.f32.mrf.mxu0 }
 0x352   : > { %v5766_v31 = vpop.f32.mrf.mxu0 }
 0x353   : > { %v5767_v20 = vadd.f32 %v5766_v31, %v5765_v34 }
 0x354   : > { %v5768_v43 = vpop.f32.mrf.mxu0 }
 0x356   : > { %v5769_v48 = vpop.f32.mrf.mxu0 }
 0x357   : > { %v5770_v11 = vadd.f32 %v5769_v48, %v5768_v43 }
 0x358   : > { %v5771_v39 = vpop.f32.mrf.mxu0 }
 0x35a   : > { %v5772_v37 = vpop.f32.mrf.mxu0 }
 0x35b   : > { %v5773_v7 = vadd.f32 %v5772_v37, %v5771_v39  ;;  %v5790_v51 = vpop.f32.mrf.mxu1 }
 0x35c   : > { %v5830_v12 = vpop.f32.mrf.mxu0 }
 0x35d   : > { %v5791_v14 = vpop.f32.mrf.mxu1 }
 0x35e   : > { %v5792_v18 = vadd.f32 %v5791_v14, %v5790_v51  ;;  %v5831_v19 = vpop.f32.mrf.mxu0 }
 0x35f   : > { %v5832_v2 = vadd.f32 %v5831_v19, %v5830_v12  ;;  %v5793_v60 = vpop.f32.mrf.mxu1 }
 0x360   : > { %v3631_v5 = vadd.f32 %v5792_v18, %v5752_v29  ;;  %v5833_v36 = vpop.f32.mrf.mxu0 }
 0x361   : > { %v5794_v10 = vpop.f32.mrf.mxu1 }
 0x362   : > { %v3696_v30 = vadd.f32 %v5832_v2, %v3631_v5  ;;  %v5795_v32 = vadd.f32 %v5794_v10, %v5793_v60  ;;  %v5834_v57 = vpop.f32.mrf.mxu0 }
 0x363   : > { %v5835_v22 = vadd.f32 %v5834_v57, %v5833_v36  ;;  %v5796_v16 = vpop.f32.mrf.mxu1 }
 0x364   : > { %v3634_v15 = vadd.f32 %v5795_v32, %v5755_v21  ;;  %v5836_v1 = vpop.f32.mrf.mxu0 }
 0x365   : > { %v5797_v47 = vpop.f32.mrf.mxu1 }
 0x366   : > { %v3699_v6 = vadd.f32 %v5835_v22, %v3634_v15  ;;  %v5798_v46 = vadd.f32 %v5797_v47, %v5796_v16  ;;  %v5837_v45 = vpop.f32.mrf.mxu0 }
 0x367   : > { %v5838_v59 = vadd.f32 %v5837_v45, %v5836_v1  ;;  %v5799_v33 = vpop.f32.mrf.mxu1 }
 0x368   : > { %v3639_v44 = vadd.f32 %v5798_v46, %v5758_v8  ;;  %v5839_v49 = vpop.f32.mrf.mxu0 }
 0x369   : > { %v5800_v17 = vpop.f32.mrf.mxu1 }
 0x36a   : > { %v3704_v53 = vadd.f32 %v5838_v59, %v3639_v44  ;;  %v5801_v3 = vadd.f32 %v5800_v17, %v5799_v33  ;;  %v5840_v61 = vpop.f32.mrf.mxu0  ;;  %v8140_v33 = vld [vmem:[%s8681_s5 + $0x70] sm:$0xff]  ;;  %v6674_v17 = vmov 4  }
 0x36b   : > { %v5841_v41 = vadd.f32 %v5840_v61, %v5839_v49  ;;  %v5802_v24 = vpop.f32.mrf.mxu1  ;;  %8757 = vst [vmem:[#allocation9_spill] sm:$0xff] %v8140_v33  ;;  %6426 = vset.pattern.permute.xlu1 %v6674_v17  ;;  %6427 = vset.pattern.permute.xlu0 %v6674_v17 }
 0x36c   : > { %v3642_v63 = vadd.f32 %v5801_v3, %v5761_v26  ;;  %v5842_v13 = vpop.f32.mrf.mxu0  ;;  %4135 = vperm.xlu1 %6426, %v8140_v33  }
 0x36d   : > { %v5803_v62 = vpop.f32.mrf.mxu1 }
 0x36e   : > { %v8103_v42 = vadd.f32 %v5841_v41, %v3642_v63  ;;  %v5804_v28 = vadd.f32 %v5803_v62, %v5802_v24  ;;  %v5843_v52 = vpop.f32.mrf.mxu0  ;;  %v8156_v41 = vld [vmem:[%s8681_s5 + $0x60] sm:$0xff]  ;;  %v8161_v24 = vld [vmem:[%s8681_s5 + $0x50] sm:$0xff] }
 0x36f   : > { %v5844_v9 = vadd.f32 %v5843_v52, %v5842_v13  ;;  %v5805_v54 = vpop.f32.mrf.mxu1  ;;  %8759 = vst [vmem:[#allocation15_spill] sm:$0xff] %v8156_v41  ;;  %8760 = vst [vmem:[#allocation11_spill] sm:$0xff] %v8161_v24 }
 0x370   : > { %v3647_v23 = vadd.f32 %v5804_v28, %v5764_v40  ;;  %v5845_v55 = vpop.f32.mrf.mxu0  ;;  %4125 = vperm.xlu1 %6426, %v8156_v41  }
 0x371   : > { %v5806_v29 = vpop.f32.mrf.mxu1 }
 0x372   : > { %v8109_v56 = vadd.f32 %v5844_v9, %v3647_v23  ;;  %v5807_v50 = vadd.f32 %v5806_v29, %v5805_v54  ;;  %v5846_v21 = vpop.f32.mrf.mxu0  ;;  %v8175_v9 = vld [vmem:[%s8681_s5 + $0x68] sm:$0xff] }
 0x373   : > { %v5847_v27 = vadd.f32 %v5846_v21, %v5845_v55  ;;  %v5808_v25 = vpop.f32.mrf.mxu1  ;;  %8761 = vst [vmem:[#allocation12_spill] sm:$0xff] %v8175_v9 }
 0x374   : > { %v3650_v8 = vadd.f32 %v5807_v50, %v5767_v20  ;;  %v8111_v4 = vpop.f32.mrf.mxu0  ;;  %4130 = vperm.xlu1 %6426, %v8175_v9  }
 0x375   : > { %v5809_v35 = vpop.f32.mrf.mxu1 }
 0x376   : > { %v8113_v26 = vadd.f32 %v5847_v27, %v3650_v8  ;;  %v5810_v38 = vadd.f32 %v5809_v35, %v5808_v25  ;;  %v8115_v58 = vpop.f32.mrf.mxu0  ;;  %v8196_v27 = vld [vmem:[%s8681_s5 + $0x58] sm:$0xff]  ;;  %v8209_v35 = vld [vmem:[%s8681_s5 + $0x30] sm:$0xff] }
 0x377   : > { %v5811_v40 = vpop.f32.mrf.mxu1  ;;  %8763 = vst [vmem:[#allocation8_spill] sm:$0xff] %v8196_v27  ;;  %8764 = vst [vmem:[#allocation5_spill] sm:$0xff] %v8209_v35 }
 0x378   : > { %v8117_v34 = vadd.f32 %v5810_v38, %v5770_v11  ;;  %v8119_v31 = vpop.f32.mrf.mxu0  ;;  %4120 = vperm.xlu1 %6426, %v8196_v27  }
 0x379   : > { %v5812_v43 = vpop.f32.mrf.mxu1 }
 0x37a   : > { %v5813_v48 = vadd.f32 %v5812_v43, %v5811_v40  ;;  %v8121_v39 = vpop.f32.mrf.mxu0 }
 0x37c   : > { %v8123_v37 = vadd.f32 %v5813_v48, %v5773_v7  ;;  %v5870_v20 = vpop.f32.mrf.mxu1  ;;  %v5910_v51 = vpop.f32.mrf.mxu0 }
 0x37e   : > { %v5871_v12 = vpop.f32.mrf.mxu1  ;;  %v5911_v14 = vpop.f32.mrf.mxu0 }
 0x37f   : > { %v5872_v18 = vadd.f32 %v5871_v12, %v5870_v20  ;;  %v5912_v19 = vadd.f32 %v5911_v14, %v5910_v51  ;;  %v8229_v20 = vld [vmem:[%s8681_s5 + $0x20] sm:$0xff] }
 0x380   : > { %v5873_v2 = vpop.f32.mrf.mxu1  ;;  %v5913_v60 = vpop.f32.mrf.mxu0  ;;  %8766 = vst [vmem:[#allocation10_spill] sm:$0xff] %v8229_v20 }
 0x381   : > { %v3761_v5 = vadd.f32 %v5872_v18, %v3696_v30 }
 0x382   : > { %v5874_v36 = vpop.f32.mrf.mxu1  ;;  %v5914_v11 = vpop.f32.mrf.mxu0 }
 0x383   : > { %v8125_v10 = vadd.f32 %v5912_v19, %v3761_v5  ;;  %v5875_v32 = vadd.f32 %v5874_v36, %v5873_v2  ;;  %v5915_v7 = vadd.f32 %v5914_v11, %v5913_v60  ;;  %v8235_v2 = vld [vmem:[%s8681_s5 + $0x38] sm:$0xff]  ;;  %v8241_v60 = vld [vmem:[%s8681_s5 + $0x10] sm:$0xff] }
 0x384   : > { %v5876_v57 = vpop.f32.mrf.mxu1  ;;  %v8127_v22 = vpop.f32.mrf.mxu0  ;;  %8767 = vst [vmem:[#allocation13_spill] sm:$0xff] %v8235_v2  ;;  %8768 = vst [vmem:[#allocation16_spill] sm:$0xff] %v8241_v60 }
 0x385   : > { %v3764_v16 = vadd.f32 %v5875_v32, %v3699_v6  ;;  %v8145_v6 = vld [vmem:[%s8681_s5 + $0x78] sm:$0xff] }
 0x386   : > { %v5877_v15 = vpop.f32.mrf.mxu1  ;;  %v8129_v1 = vpop.f32.mrf.mxu0  ;;  %8758 = vst [vmem:[#allocation14_spill] sm:$0xff] %v8145_v6  ;;  %4140 = vperm.xlu0 %6427, %v8145_v6  }
 0x387   : > { %v8131_v47 = vadd.f32 %v5915_v7, %v3764_v16  ;;  %v5878_v46 = vadd.f32 %v5877_v15, %v5876_v57  ;;  %v8248_v16 = vld [vmem:[%s8681_s5 + $0x28] sm:$0xff]  ;;  %v8254_v7 = vld [vmem:[%s8681_s5] sm:$0xff] }
 0x388   : > { %v5879_v45 = vpop.f32.mrf.mxu1  ;;  %v8133_v59 = vpop.f32.mrf.mxu0  ;;  %8769 = vst [vmem:[#allocation17_spill] sm:$0xff] %v8248_v16  ;;  %8770 = vst [vmem:[#allocation18_spill] sm:$0xff] %v8254_v7 }
 0x389   : > { %v8135_v30 = vadd.f32 %v5878_v46, %v3704_v53 }
 0x38a   : > { %v5880_v44 = vpop.f32.mrf.mxu1  ;;  %v8147_v49 = vpop.f32.mrf.mxu0  ;;  %4115 = vperm.xlu0 %6427, %v8161_v24  }
 0x38b   : > { %v5881_v3 = vadd.f32 %v5880_v44, %v5879_v45  ;;  %v8261_v44 = vld [vmem:[%s8681_s5 + $0x18] sm:$0xff] }
 0x38c   : > { %v5882_v53 = vpop.f32.mrf.mxu1  ;;  %v8151_v61 = vpop.f32.mrf.mxu0  ;;  %8771 = vst [vmem:[#allocation19_spill] sm:$0xff] %v8261_v44 }
 0x38d   : > { %v8164_v63 = vadd.f32 %v5881_v3, %v8103_v42  ;;  %v8180_v42 = vld [vmem:[%s8681_s5 + $0x40] sm:$0xff] }
 0x38e   : > { %v5883_v13 = vpop.f32.mrf.mxu1  ;;  %v8166_v62 = vpop.f32.mrf.mxu0  ;;  %8762 = vst [vmem:[#allocation7_spill] sm:$0xff] %v8180_v42  ;;  %4105 = vperm.xlu0 %6427, %v8180_v42   ;;  %v5921_v42 = vadd.f32 %v8147_v49, %v8133_v59 }
 0x38f   : > { %v5884_v28 = vadd.f32 %v5883_v13, %v5882_v53  ;;  %v8267_v13 = vld [vmem:[%s8681_s5 + $0x8] sm:$0xff] }
 0x390   : > { %v5885_v52 = vpop.f32.mrf.mxu1  ;;  %v8170_v0 = vpop.f32.mrf.mxu0  ;;  %8772 = vst [vmem:[#allocation20_spill] sm:$0xff] %v8267_v13 }
 0x391   : > { %v8183_v54 = vadd.f32 %v5884_v28, %v8109_v56 }
 0x392   : > { %v5886_v23 = vpop.f32.mrf.mxu1  ;;  %v8185_v55 = vpop.f32.mrf.mxu0  ;;  %4096 = vperm.xlu0 %6427, %v8209_v35  }
 0x393   : > { %v5887_v29 = vadd.f32 %v5886_v23, %v5885_v52 }
 0x394   : > { %v8189_v50 = vpop.f32.mrf.mxu1  ;;  %v8191_v21 = vpop.f32.mrf.mxu0 }
 0x395   : > { %v8199_v56 = vadd.f32 %v5887_v29, %v8113_v26  ;;  %v8219_v26 = vld [vmem:[%s8681_s5 + $0x48] sm:$0xff] }
 0x396   : > { %v8201_v25 = vpop.f32.mrf.mxu1  ;;  %v8203_v8 = vpop.f32.mrf.mxu0  ;;  %8765 = vst [vmem:[#allocation6_spill] sm:$0xff] %v8219_v26  ;;  %4110 = vperm.xlu1 %6426, %v8219_v26   ;;  %4088 = vperm.xlu0 %6427, %v8229_v20   ;;  %v5918_v26 = vadd.f32 %v8129_v1, %v8127_v22 }
 0x398   : > { %v8212_v38 = vpop.f32.mrf.mxu1  ;;  %v8214_v40 = vpop.f32.mrf.mxu0 }
 0x39a   : > { %v8221_v43 = vpop.f32.mrf.mxu1  ;;  %v8223_v48 = vpop.f32.mrf.mxu0  ;;  %4100 = vperm.xlu1 %6426, %v8235_v2   ;;  %4080 = vperm.xlu0 %6427, %v8241_v60  }
 0x39c   : > { %v5950_v51 = vpop.f32.mrf.mxu1  ;;  %v5990_v12 = vpop.f32.mrf.mxu0 }
 0x39e   : > { %v5951_v14 = vpop.f32.mrf.mxu1  ;;  %v5991_v19 = vpop.f32.mrf.mxu0  ;;  %4092 = vperm.xlu1 %6426, %v8248_v16   ;;  %4072 = vperm.xlu0 %6427, %v8254_v7  }
 0x39f   : > { %v5952_v18 = vadd.f32 %v5951_v14, %v5950_v51  ;;  %v5992_v20 = vadd.f32 %v5991_v19, %v5990_v12  ;;  %v3837_v12 = vadd.f32 %v5921_v42, %v8164_v63 }
 0x3a0   : > { %v5953_v5 = vpop.f32.mrf.mxu1  ;;  %v5993_v11 = vpop.f32.mrf.mxu0 }
 0x3a1   : > { %v3891_v36 = vadd.f32 %v5952_v18, %v8125_v10 }
 0x3a2   : > { %v5954_v32 = vpop.f32.mrf.mxu1  ;;  %v5994_v46 = vpop.f32.mrf.mxu0  ;;  %4084 = vperm.xlu1 %6426, %v8261_v44  }
 0x3a3   : > { %v5955_v57 = vadd.f32 %v5954_v32, %v5953_v5  ;;  %v3956_v27 = vadd.f32 %v5992_v20, %v3891_v36 }
 0x3a4   : > { %v5956_v15 = vpop.f32.mrf.mxu1  ;;  %v5996_v3 = vpop.f32.mrf.mxu0 }
 0x3a5   : > { %v3894_v10 = vadd.f32 %v5955_v57, %v8131_v47 }
 0x3a6   : > { %v5957_v45 = vpop.f32.mrf.mxu1  ;;  %4076 = vperm.xlu1 %6426, %v8267_v13   ;;  %v5997_v28 = vpop.f32.mrf.mxu0  ;;  %v5995_v13 = vadd.f32 %v5994_v46, %v5993_v11 }
 0x3a7   : > { %v5958_v33 = vadd.f32 %v5957_v45, %v5956_v15  ;;  %v5998_v49 = vadd.f32 %v5997_v28, %v5996_v3 }
 0x3a8   : > { %v5959_v17 = vpop.f32.mrf.mxu1  ;;  %v5999_v29 = vpop.f32.mrf.mxu0  ;;  %v3959_v41 = vadd.f32 %v5995_v13, %v3894_v10 }
 0x3aa   : > { %v5960_v53 = vpop.f32.mrf.mxu1  ;;  %v6000_v18 = vpop.f32.mrf.mxu0 }
 0x3ab   : > { %v5961_v6 = vadd.f32 %v5960_v53, %v5959_v17  ;;  %v6001_v20 = vadd.f32 %v6000_v18, %v5999_v29 }
 0x3ac   : > { %v5962_v47 = vpop.f32.mrf.mxu1  ;;  %v6002_v57 = vpop.f32.mrf.mxu0 }
 0x3ad   : > { %v3902_v1 = vadd.f32 %v5961_v6, %v3837_v12  ;;  %v5850_v6 = vadd.f32 %v8115_v58, %v8111_v4 }
 0x3ae   : > { %v5963_v52 = vpop.f32.mrf.mxu1  ;;  %v6003_v35 = vpop.f32.mrf.mxu0 }
 0x3af   : > { %v3720_v4 = vadd.f32 %v5850_v6, %v8117_v34  ;;  %v8779_v6 = vld [vmem:[#allocation14_spill] sm:$0xff] }
 0x3b0   : > { %v5965_v23 = vpop.f32.mrf.mxu1  ;;  %v6005_v24 = vpop.f32.mrf.mxu0 }
 0x3b2   : > { %v5966_v51 = vpop.f32.mrf.mxu1 }
 0x3b4   : > { %v8270_v14 = vpop.f32.mrf.mxu1 }
 0x3b6   : > { %v8272_v5 = vpop.f32.mrf.mxu1 }
 0x3b7   : > { %8773 = vst [vmem:[#allocation21_spill] sm:$0xff] %v8272_v5  ;;  %v3834_v5 = vadd.f32 %v5918_v26, %v8135_v30  ;;  %v5927_v30 = vadd.f32 %v8185_v55, %v8170_v0  ;;  %v5964_v26 = vadd.f32 %v5963_v52, %v5962_v47  ;;  %v5890_v0 = vadd.f32 %v8201_v25, %v8189_v50 }
 0x3b8   : > { %v8274_v32 = vpop.f32.mrf.mxu1  ;;  %v5893_v55 = vadd.f32 %v8221_v43, %v8212_v38  ;;  %v5930_v25 = vadd.f32 %v8203_v8, %v8191_v21  ;;  %v5933_v38 = vadd.f32 %v8223_v48, %v8214_v40 }
 0x3b9   : > { %8774 = vst [vmem:[#allocation22_spill] sm:$0xff] %v8274_v32  ;;  %v3899_v22 = vadd.f32 %v5958_v33, %v3834_v5  ;;  %v3785_v53 = vadd.f32 %v5890_v0, %v3720_v4  ;;  %v8784_v0 = vld [vmem:[#allocation8_spill] sm:$0xff]  ;;  %v8790_v4 = vld [vmem:[#allocation10_spill] sm:$0xff] }
 0x3ba   : > { %v8276_v2 = vpop.f32.mrf.mxu1 }
 0x3bb   : > { %8775 = vst [vmem:[#allocation23_spill] sm:$0xff] %v8276_v2 }
 0x3bc   : > { %v6030_v16 = vpop.f32.mrf.mxu1 }
 0x3be   : > { %v6031_v44 = vpop.f32.mrf.mxu1 }
 0x3bf   : > { %v6032_v7 = vadd.f32 %v6031_v44, %v6030_v16  ;;  %v6006_v16 = vpop.f32.mrf.mxu0 }
 0x3c0   : > { %v6033_v60 = vpop.f32.mrf.mxu1  ;;  %v6007_v47 = vadd.f32 %v6006_v16, %v6005_v24  ;;  %v8777_v29 = vld [vmem:[#allocation22_spill] sm:$0xff]  ;;  %v3850_v24 = vadd.f32 %v5930_v25, %v3785_v53 }
 0x3c1   : > { %v4021_v19 = vadd.f32 %v6032_v7, %v3956_v27  ;;  %v6008_v63 = vpop.f32.mrf.mxu0  ;;  %v3967_v27 = vadd.f32 %v6001_v20, %v3902_v1 }
 0x3c2   : > { %v6034_v9 = vpop.f32.mrf.mxu1 }
 0x3c3   : > { %v6035_v2 = vadd.f32 %v6034_v9, %v6033_v60  ;;  %v5924_v9 = vadd.f32 %v8166_v62, %v8151_v61  ;;  %v5853_v60 = vadd.f32 %v8121_v39, %v8119_v31  ;;  %v3845_v61 = vadd.f32 %v5927_v30, %v8199_v56  ;;  %v6009_v17 = vpop.f32.mrf.mxu0  ;;  %v6575_v30 = vld [vmem:[%s8678_s2 + $0x8] sm:$0xff]  }
 0x3c4   : > { %v6036_v32 = vpop.f32.mrf.mxu1  ;;  %v6010_v16 = vadd.f32 %v6009_v17, %v6008_v63  ;;  %v6577_v63 = vld [vmem:[%s8678_s2 + $0x18] sm:$0xff]  }
 0x3c5   : > { %v4024_v11 = vadd.f32 %v6035_v2, %v3959_v41  ;;  %v3964_v41 = vadd.f32 %v5998_v49, %v3899_v22  ;;  %v5967_v2 = vadd.f32 %v5966_v51, %v5965_v23  ;;  %v3842_v7 = vadd.f32 %v5924_v9, %v8183_v54  ;;  %v6011_v28 = vpop.f32.mrf.mxu0  ;;  %v8788_v17 = vld [vmem:[#allocation20_spill] sm:$0xff] }
 0x3c6   : > { %v6037_v46 = vpop.f32.mrf.mxu1  ;;  %v3723_v58 = vadd.f32 %v5853_v60, %v8123_v37  ;;  %v6004_v54 = vadd.f32 %v6003_v35, %v6002_v57  ;;  %v8776_v37 = vld [vmem:[#allocation21_spill] sm:$0xff]  ;;  %v8778_v35 = vld [vmem:[#allocation23_spill] sm:$0xff] }
 0x3c7   : > { %v8284_v44 = vpack.c.bf16 %v4024_v11, %v4021_v19  ;;  %v6038_v36 = vadd.f32 %v6037_v46, %v6036_v32  ;;  %v3907_v45 = vadd.f32 %v5964_v26, %v3842_v7  ;;  %v3910_v31 = vadd.f32 %v5967_v2, %v3845_v61  ;;  %v6012_v21 = vpop.f32.mrf.mxu0  ;;  %v6576_v26 = vld [vmem:[%s8678_s2 + $0x10] sm:$0xff]   ;;  %v6582_v2 = vld [vmem:[%s8679_s3] sm:$0xff]   ;;  %v8782_v61 = vld [vmem:[#allocation12_spill] sm:$0xff] }
 0x3c8   : > { %v6039_v59 = vpop.f32.mrf.mxu1  ;;  %v3788_v13 = vadd.f32 %v5893_v55, %v3723_v58  ;;  %v5970_v23 = vadd.f32 %v8776_v37, %v8270_v14  ;;  %v5973_v51 = vadd.f32 %v8778_v35, %v8777_v29  ;;  %v6013_v46 = vadd.f32 %v6012_v21, %v6011_v28  ;;  %6200 = vmatprep.mubr.bf16.mxu1 %v6582_v2  ;;  %v8780_v60 = vld [vmem:[#allocation9_spill] sm:$0xff]  ;;  %v8781_v7 = vld [vmem:[#allocation15_spill] sm:$0xff] }
 0x3c9   : > { %v4029_v15 = vadd.f32 %v6038_v36, %v3964_v41  ;;  %v3972_v43 = vadd.f32 %v6004_v54, %v3907_v45  ;;  %v3975_v34 = vadd.f32 %v6007_v47, %v3910_v31  ;;  %v6580_v41 = vld [vmem:[%s8678_s2 + $0x30] sm:$0xff]   ;;  %v8787_v45 = vld [vmem:[#allocation18_spill] sm:$0xff]  ;;  %v8792_v31 = vld [vmem:[#allocation5_spill] sm:$0xff] }
 0x3ca   : > { %v6040_v42 = vpop.f32.mrf.mxu1  ;;  %v3853_v32 = vadd.f32 %v5933_v38, %v3788_v13  ;;  %v3915_v19 = vadd.f32 %v5970_v23, %v3850_v24  ;;  %v8785_v55 = vld [vmem:[#allocation7_spill] sm:$0xff]  ;;  %v8794_v54 = vld [vmem:[#allocation13_spill] sm:$0xff] }
 0x3cb   : > { %v6041_v33 = vadd.f32 %v6040_v42, %v6039_v59  ;;  %v6578_v42 = vld [vmem:[%s8678_s2 + $0x20] sm:$0xff]   ;;  %v8791_v58 = vld [vmem:[#allocation19_spill] sm:$0xff] }
 0x3cc   : > { %v6042_v62 = vpop.f32.mrf.mxu1  ;;  %v3918_v40 = vadd.f32 %v5973_v51, %v3853_v32  ;;  %v3980_v14 = vadd.f32 %v6010_v16, %v3915_v19 }
 0x3cd   : > { %v4032_v10 = vadd.f32 %v6041_v33, %v3967_v27  ;;  %v6581_v27 = vld [vmem:[%s8678_s2 + $0x38] sm:$0xff]   ;;  %v6675_v33 = vmov 5  }
 0x3ce   : > { %v6043_v3 = vpop.f32.mrf.mxu1  ;;  %v3983_v59 = vadd.f32 %v6013_v46, %v3918_v40  ;;  %6429 = vset.pattern.permute.xlu1 %v6675_v33  ;;  %6428 = vset.pattern.permute.xlu0 %v6675_v33 }
 0x3cf   : > { %v4068_v39 = vpack.c.bf16 %v4032_v10, %v4029_v15  ;;  %v6044_v50 = vadd.f32 %v6043_v3, %v6042_v62  ;;  %4405 = vperm.xlu1 %6429, %v8779_v6   ;;  %4401 = vperm.xlu0 %6428, %v8780_v60   ;;  %v8783_v62 = vld [vmem:[#allocation11_spill] sm:$0xff]  ;;  %v8786_v15 = vld [vmem:[#allocation6_spill] sm:$0xff]  ;;  %v6676_v10 = vmov 6   ;;  %v8789_v3 = vld [vmem:[#allocation16_spill] sm:$0xff] }
 0x3d0   : > { %v6045_v56 = vpop.f32.mrf.mxu1 }
 0x3d1   : > { %v4037_v57 = vadd.f32 %v6044_v50, %v3972_v43 }
 0x3d2   : > { %v6046_v52 = vpop.f32.mrf.mxu1 }
 0x3d3   : > { %v6047_v18 = vadd.f32 %v6046_v52, %v6045_v56  ;;  %4393 = vperm.xlu1 %6429, %v8781_v7   ;;  %4397 = vperm.xlu0 %6428, %v8782_v61  }
 0x3d4   : > { %v6048_v5 = vpop.f32.mrf.mxu1 }
 0x3d5   : > { %v4040_v12 = vadd.f32 %v6047_v18, %v3975_v34 }
 0x3d6   : > { %v6049_v8 = vpop.f32.mrf.mxu1 }
 0x3d7   : > { %v4069_v48 = vpack.c.bf16 %v4040_v12, %v4037_v57  ;;  %v6050_v22 = vadd.f32 %v6049_v8, %v6048_v5  ;;  %4385 = vperm.xlu1 %6429, %v8783_v62   ;;  %4389 = vperm.xlu0 %6428, %v8784_v0  }
 0x3d8   : > { %v6051_v11 = vpop.f32.mrf.mxu1 }
 0x3d9   : > { %v4045_v20 = vadd.f32 %v6050_v22, %v3980_v14 }
 0x3da   : > { %v6052_v1 = vpop.f32.mrf.mxu1 }
 0x3db   : > { %v6053_v49 = vadd.f32 %v6052_v1, %v6051_v11  ;;  %4377 = vperm.xlu1 %6429, %v8785_v55   ;;  %4381 = vperm.xlu0 %6428, %v8786_v15  }
 0x3dd   : > { %v4048_v36 = vadd.f32 %v6053_v49, %v3983_v59 }
 0x3df   : > { %v4070_v9 = vpack.c.bf16 %v4048_v36, %v4045_v20  ;;  %6430 = vset.pattern.permute.xlu1 %v6676_v10  ;;  %6431 = vset.pattern.permute.xlu0 %v6676_v10 }
 0x3e0   : > { %4575 = vperm.xlu1 %6430, %v8787_v45   ;;  %4579 = vperm.xlu0 %6431, %v8788_v17  }
 0x3e1   : > { %6160 = vmatprep.subr.bf16.mxu0 %v4070_v9 }
 0x3e2   : > { %6161 = vmatpush3.bf16.msra.mxu0 %v4070_v9 }
 0x3e3   : > { %6162 = vmatprep.subr.bf16.mxu0 %v4069_v48 }
 0x3e4   : > { %4583 = vperm.xlu1 %6430, %v8789_v3   ;;  %4591 = vperm.xlu0 %6431, %v8790_v4  }
 0x3e6   : > { %6163 = vmatpush3.bf16.msra.mxu0 %v4069_v48 }
 0x3e7   : > { %6164 = vmatprep.subr.bf16.mxu0 %v4068_v39  ;;  %v4136_v56 = vpop.permute.xlu1 %4135 }
 0x3e8   : > { %4587 = vperm.xlu1 %6430, %v8791_v58   ;;  %4599 = vperm.xlu0 %6431, %v8792_v31  }
 0x3ea   : > { %6165 = vmatpush3.bf16.msra.mxu0 %v4068_v39  ;;  %v8793_v39 = vld [vmem:[#allocation17_spill] sm:$0xff] }
 0x3eb   : > { %6166 = vmatprep.subr.bf16.mxu0 %v8284_v44  ;;  %v4126_v50 = vpop.permute.xlu1 %4125 }
 0x3ec   : > { %4595 = vperm.xlu1 %6430, %v8793_v39   ;;  %6432 = vset.pattern.permute.xlu0 %v6675_v33 }
 0x3ed   : > { %4369 = vperm.xlu0 %6432, %v8792_v31  }
 0x3ee   : > { %6167 = vmatpush3.bf16.msra.mxu0 %v8284_v44  ;;  %v6579_v44 = vld [vmem:[%s8678_s2 + $0x28] sm:$0xff]  }
 0x3ef   : > { %v4131_v28 = vpop.permute.xlu1 %4130 }
 0x3f0   : > { %4603 = vperm.xlu1 %6430, %v8794_v54  }
 0x3f1   : > { %6169 = vmatmul.mubr.msk.bf16.vlgmr.msra.gmra.mxu0 %vm997_vm0, %v6575_v30  ;;  %4365 = vperm.xlu0 %6432, %v8793_v39  }
 0x3f2   : > { %6172 = vmatprep.mubr.msk.bf16.mxu0 %vm997_vm0, %v6576_v26 }
 0x3f3   : > { %v4121_v29 = vpop.permute.xlu1 %4120 }
 0x3f4   : > { %6433 = vset.pattern.permute.xlu1 %v6675_v33 }
 0x3f5   : > { %4373 = vperm.xlu1 %6433, %v8794_v54   ;;  %4357 = vperm.xlu0 %6432, %v8791_v58  }
 0x3f9   : > { %6173 = vmatmul.mubr.msk.bf16.gmra.mxu0 %vm997_vm0, %v6577_v63  ;;  %4361 = vperm.xlu1 %6433, %v8790_v4  }
 0x3fa   : > { %6176 = vmatprep.mubr.msk.bf16.mxu0 %vm997_vm0, %v6578_v42  ;;  %4349 = vperm.xlu0 %6432, %v8788_v17  }
 0x3fd   : > { %4353 = vperm.xlu1 %6433, %v8789_v3  }
 0x401   : > { %6177 = vmatmul.mubr.msk.bf16.gmra.mxu0 %vm997_vm0, %v6579_v44  ;;  %4345 = vperm.xlu1 %6433, %v8787_v45   ;;  %v4141_v34 = vpop.permute.xlu0 %4140 }
 0x402   : > { %6180 = vmatprep.mubr.msk.bf16.mxu0 %vm997_vm0, %v6580_v41 }
 0x405   : > { %v4116_v51 = vpop.permute.xlu0 %4115 }
 0x409   : > { %6181 = vmatmul.mubr.msk.bf16.gmra.mxu0 %vm997_vm0, %v6581_v27  ;;  %v4106_v57 = vpop.permute.xlu0 %4105 }
 0x40d   : > { %v4097_v14 = vpop.permute.xlu0 %4096 }
 0x411   : > { %v4111_v24 = vpop.permute.xlu1 %4110  ;;  %v4089_v41 = vpop.permute.xlu0 %4088 }
 0x415   : > { %v4101_v48 = vpop.permute.xlu1 %4100  ;;  %v4081_v55 = vpop.permute.xlu0 %4080 }
 0x419   : > { %v4093_v63 = vpop.permute.xlu1 %4092 }
 0x41d   : > { %v4085_v7 = vpop.permute.xlu1 %4084 }
 0x4b1   : > { %v8365_v53 = vpop.f32.mrf.mxu0 }
 0x4b3   : > { %v8367_v13 = vpop.f32.mrf.mxu0 }
 0x4b5   : > { %v6171_v47 = vpop.f32.mrf.mxu0 }
 0x4b7   : > { %v8370_v25 = vpop.f32.mrf.mxu0 }
 0x4b9   : > { %v6174_v38 = vpop.f32.mrf.mxu0 }
 0x4ba   : > { %v4266_v6 = vadd.f32 %v6174_v38, %v4097_v14  ;;  %v4073_v38 = vpop.permute.xlu0 %4072  ;;  %v8463_v14 = vld [vmem:[%s8683_s7 + $0x30] sm:$0xff] }
 0x4bb   : > { %v4257_v43 = vpop.f32.mrf.mxu0 }
 0x4bc   : > { %v4310_v15 = vmax.f32 %v4266_v6, 0.0  ;;  %v4258_v10 = vadd.f32 %v4257_v43, %v4089_v41 }
 0x4bd   : > { %v6175_v52 = vpop.f32.mrf.mxu0 }
 0x4be   : > { %v4269_v27 = vadd.f32 %v6175_v52, %v4101_v48  ;;  %v4250_v52 = vadd.f32 %v8365_v53, %v4081_v55  ;;  %v8379_v53 = vld [vmem:[%s8683_s7 + $0x78] sm:$0xff]  ;;  %v8431_v48 = vld [vmem:[%s8683_s7 + $0x48] sm:$0xff]  ;;  %v4402_v41 = vpop.permute.xlu0 %4401 }
 0x4bf   : > { %v4260_v37 = vpop.f32.mrf.mxu0 }
 0x4c0   : > { %v4311_v61 = vmax.f32 %v4269_v27, 0.0  ;;  %v4261_v62 = vadd.f32 %v4260_v37, %v4093_v63 }
 0x4c1   : > { %v6178_v23 = vpop.f32.mrf.mxu0 }
 0x4c2   : > { %v4282_v59 = vadd.f32 %v6178_v23, %v4116_v51  ;;  %v4308_v23 = vmax.f32 %v4258_v10, 0.0  ;;  %v4306_v51 = vmax.f32 %v4250_v52, 0.0 }
 0x4c3   : > { %v4273_v35 = vpop.f32.mrf.mxu0 }
 0x4c4   : > { %v4314_v42 = vmax.f32 %v4282_v59, 0.0  ;;  %v4274_v44 = vadd.f32 %v4273_v35, %v4106_v57  ;;  %v8397_v57 = vld [vmem:[%s8683_s7 + $0x68] sm:$0xff] }
 0x4c5   : > { %v6179_v18 = vpop.f32.mrf.mxu0  ;;  %v8470_v59 = vld [vmem:[%s8683_s7 + $0x28] sm:$0xff] }
 0x4c6   : > { %v4285_v16 = vadd.f32 %v6179_v18, %v4121_v29  ;;  %v4312_v60 = vmax.f32 %v4274_v44, 0.0  ;;  %v4242_v18 = vadd.f32 %v8367_v13, %v4073_v38  ;;  %v6584_v13 = vld [vmem:[%s8679_s3 + $0x10] sm:$0xff]  }
 0x4c7   : > { %v4276_v5 = vpop.f32.mrf.mxu0 }
 0x4c8   : > { %v4315_v9 = vmax.f32 %v4285_v16, 0.0  ;;  %v4277_v30 = vadd.f32 %v4276_v5, %v4111_v24  ;;  %v4304_v5 = vmax.f32 %v4242_v18, 0.0  ;;  %v6587_v16 = vld [vmem:[%s8679_s3 + $0x28] sm:$0xff]  }
 0x4c9   : > { %v6182_v32 = vpop.f32.mrf.mxu0 }
 0x4ca   : > { %v4298_v21 = vadd.f32 %v6182_v32, %v4136_v56  ;;  %v4341_v2 = vpack.c.bf16 %v4315_v9, %v4314_v42  ;;  %v4313_v33 = vmax.f32 %v4277_v30, 0.0  ;;  %v4253_v56 = vadd.f32 %v6171_v47, %v4085_v7  ;;  %v8391_v32 = vld [vmem:[%s8683_s7 + $0x70] sm:$0xff]  ;;  %v8498_v9 = vld [vmem:[%s8683_s7 + $0x8] sm:$0xff]  ;;  %v8505_v30 = vld [vmem:[%s8683_s7] sm:$0xff] }
 0x4cb   : > { %v4289_v12 = vpop.f32.mrf.mxu0  ;;  %8798 = vst [vmem:[#allocation14_spill] sm:$0xff] %v8498_v9  ;;  %8799 = vst [vmem:[#allocation9_spill] sm:$0xff] %v8505_v30 }
 0x4cc   : > { %v4290_v19 = vadd.f32 %v4289_v12, %v4126_v50  ;;  %v4318_v46 = vmax.f32 %v4298_v21, 0.0  ;;  %v4340_v0 = vpack.c.bf16 %v4313_v33, %v4312_v60  ;;  %v4339_v50 = vpack.c.bf16 %v4311_v61, %v4310_v15  ;;  %v8404_v12 = vld [vmem:[%s8683_s7 + $0x60] sm:$0xff]  ;;  %v6585_v21 = vld [vmem:[%s8679_s3 + $0x18] sm:$0xff]  }
 0x4cd   : > { %v6183_v8 = vpop.f32.mrf.mxu0  ;;  %v4307_v29 = vmax.f32 %v4253_v56, 0.0 }
 0x4ce   : > { %v4301_v40 = vadd.f32 %v6183_v8, %v4141_v34  ;;  %v4316_v49 = vmax.f32 %v4290_v19, 0.0  ;;  %v4077_v34 = vpop.permute.xlu1 %4076  ;;  %v6586_v8 = vld [vmem:[%s8679_s3 + $0x20] sm:$0xff]   ;;  %v8417_v19 = vld [vmem:[%s8683_s7 + $0x58] sm:$0xff] }
 0x4cf   : > { %v4292_v11 = vpop.f32.mrf.mxu0  ;;  %v4245_v35 = vadd.f32 %v8370_v25, %v4077_v34  ;;  %v4337_v43 = vpack.c.bf16 %v4307_v29, %v4306_v51  ;;  %v6583_v25 = vld [vmem:[%s8679_s3 + $0x8] sm:$0xff]  }
 0x4d0   : > { %v4319_v22 = vmax.f32 %v4301_v40, 0.0  ;;  %v4293_v1 = vadd.f32 %v4292_v11, %v4131_v28  ;;  %v4309_v28 = vmax.f32 %v4261_v62, 0.0  ;;  %v8424_v40 = vld [vmem:[%s8683_s7 + $0x50] sm:$0xff]  ;;  %v8438_v11 = vld [vmem:[%s8683_s7 + $0x40] sm:$0xff] }
 0x4d1   : > { %v4305_v47 = vmax.f32 %v4245_v35, 0.0 }
 0x4d2   : > { %v4343_v20 = vpack.c.bf16 %v4319_v22, %v4318_v46  ;;  %v4317_v36 = vmax.f32 %v4293_v1, 0.0  ;;  %v4338_v37 = vpack.c.bf16 %v4309_v28, %v4308_v23  ;;  %v6588_v46 = vld [vmem:[%s8679_s3 + $0x30] sm:$0xff]   ;;  %v6589_v22 = vld [vmem:[%s8679_s3 + $0x38] sm:$0xff]   ;;  %v4406_v63 = vpop.permute.xlu1 %4405 }
 0x4d3   : > { %v4336_v24 = vpack.c.bf16 %v4305_v47, %v4304_v5  ;;  %v8456_v1 = vld [vmem:[%s8683_s7 + $0x38] sm:$0xff] }
 0x4d4   : > { %v4342_v26 = vpack.c.bf16 %v4317_v36, %v4316_v49  ;;  %6184 = vmatprep.subr.bf16.mxu1 %v4343_v20  ;;  %v8477_v49 = vld [vmem:[%s8683_s7 + $0x20] sm:$0xff]  ;;  %v8489_v36 = vld [vmem:[%s8683_s7 + $0x10] sm:$0xff] }
 0x4d5   : > { %6185 = vmatpush3.bf16.msra.mxu1 %v4343_v20  ;;  %8795 = vst [vmem:[#allocation21_spill] sm:$0xff] %v8477_v49  ;;  %v8482_v20 = vld [vmem:[%s8683_s7 + $0x18] sm:$0xff]  ;;  %8797 = vst [vmem:[#allocation23_spill] sm:$0xff] %v8489_v36 }
 0x4d6   : > { %6186 = vmatprep.subr.bf16.mxu1 %v4342_v26  ;;  %8796 = vst [vmem:[#allocation22_spill] sm:$0xff] %v8482_v20  ;;  %v4394_v42 = vpop.permute.xlu1 %4393 }
 0x4d9   : > { %6187 = vmatpush3.bf16.msra.mxu1 %v4342_v26  ;;  %v6590_v26 = vld [vmem:[%s8677_s1 + $0x40] sm:$0xff]  }
 0x4da   : > { %6188 = vmatprep.subr.bf16.mxu1 %v4341_v2  ;;  %6224 = vmatprep.mubr.msk.bf16.mxu0 %vm997_vm0, %v6590_v26  ;;  %v4386_v44 = vpop.permute.xlu1 %4385 }
 0x4dd   : > { %6189 = vmatpush3.bf16.msra.mxu1 %v4341_v2  ;;  %v4398_v2 = vpop.permute.xlu0 %4397 }
 0x4de   : > { %6190 = vmatprep.subr.bf16.mxu1 %v4340_v0  ;;  %v8513_v27 = vpop.permute.xlu1 %4377 }
 0x4e1   : > { %6191 = vmatpush3.bf16.msra.mxu1 %v4340_v0  ;;  %v4390_v6 = vpop.permute.xlu0 %4389 }
 0x4e2   : > { %6192 = vmatprep.subr.bf16.mxu1 %v4339_v50  ;;  %v8515_v33 = vpop.permute.xlu1 %4575 }
 0x4e5   : > { %6193 = vmatpush3.bf16.msra.mxu1 %v4339_v50  ;;  %v4382_v7 = vpop.permute.xlu0 %4381 }
 0x4e6   : > { %6194 = vmatprep.subr.bf16.mxu1 %v4338_v37  ;;  %v8517_v60 = vpop.permute.xlu1 %4583 }
 0x4e9   : > { %6195 = vmatpush3.bf16.msra.mxu1 %v4338_v37  ;;  %v8521_v62 = vpop.permute.xlu0 %4579 }
 0x4ea   : > { %6196 = vmatprep.subr.bf16.mxu1 %v4337_v43  ;;  %v8519_v61 = vpop.permute.xlu1 %4587 }
 0x4ed   : > { %6197 = vmatpush3.bf16.msra.mxu1 %v4337_v43  ;;  %v8525_v55 = vpop.permute.xlu0 %4591 }
 0x4ee   : > { %6198 = vmatprep.subr.bf16.mxu1 %v4336_v24  ;;  %v8523_v0 = vpop.permute.xlu1 %4595 }
 0x4f1   : > { %6199 = vmatpush3.bf16.msra.mxu1 %v4336_v24  ;;  %v8529_v10 = vpop.permute.xlu0 %4599 }
 0x4f2   : > { %6232 = vmatprep.subr.mxu1 %v8379_v53  ;;  %v8527_v15 = vpop.permute.xlu1 %4603 }
 0x4f4   : > { %6201 = vmatmul.mubr.bf16.vlgmr.msra.gmra.mxu1 %v6583_v25 }
 0x4f5   : > { %6204 = vmatprep.mubr.bf16.mxu1 %v6584_v13  ;;  %6233 = vmatpush3.msra.mxu1 %v8379_v53  ;;  %v4370_v50 = vpop.permute.xlu0 %4369 }
 0x4f6   : > { %6234 = vmatprep.subr.mxu1 %v8391_v32  ;;  %v4374_v56 = vpop.permute.xlu1 %4373 }
 0x4f7   : > { %6235 = vmatpush3.msra.mxu1 %v8391_v32 }
 0x4f8   : > { %6236 = vmatprep.subr.mxu1 %v8397_v57 }
 0x4f9   : > { %6237 = vmatpush3.msra.mxu1 %v8397_v57  ;;  %v4366_v34 = vpop.permute.xlu0 %4365 }
 0x4fa   : > { %6238 = vmatprep.subr.mxu1 %v8404_v12  ;;  %v4362_v28 = vpop.permute.xlu1 %4361 }
 0x4fb   : > { %6239 = vmatpush3.msra.mxu1 %v8404_v12 }
 0x4fc   : > { %6205 = vmatmul.mubr.bf16.gmra.mxu1 %v6585_v21  ;;  %6240 = vmatprep.subr.mxu1 %v8417_v19 }
 0x4fd   : > { %6208 = vmatprep.mubr.bf16.mxu1 %v6586_v8  ;;  %6241 = vmatpush3.msra.mxu1 %v8417_v19  ;;  %v4358_v23 = vpop.permute.xlu0 %4357 }
 0x4fe   : > { %6242 = vmatprep.subr.mxu1 %v8424_v40  ;;  %v4354_v52 = vpop.permute.xlu1 %4353 }
 0x4ff   : > { %6243 = vmatpush3.msra.mxu1 %v8424_v40 }
 0x500   : > { %6244 = vmatprep.subr.mxu1 %v8431_v48 }
 0x501   : > { %6245 = vmatpush3.msra.mxu1 %v8431_v48  ;;  %v4350_v51 = vpop.permute.xlu0 %4349 }
 0x502   : > { %6246 = vmatprep.subr.mxu1 %v8438_v11  ;;  %v4346_v35 = vpop.permute.xlu1 %4345 }
 0x503   : > { %6247 = vmatpush3.msra.mxu1 %v8438_v11 }
 0x504   : > { %6209 = vmatmul.mubr.bf16.gmra.mxu1 %v6587_v16  ;;  %6248 = vmatprep.subr.mxu1 %v8456_v1 }
 0x505   : > { %6212 = vmatprep.mubr.bf16.mxu1 %v6588_v46  ;;  %6249 = vmatpush3.msra.mxu1 %v8456_v1 }
 0x506   : > { %6250 = vmatprep.subr.mxu1 %v8463_v14 }
 0x507   : > { %6251 = vmatpush3.msra.mxu1 %v8463_v14 }
 0x508   : > { %6252 = vmatprep.subr.mxu1 %v8470_v59 }
 0x509   : > { %6253 = vmatpush3.msra.mxu1 %v8470_v59 }
 0x50a   : > { %6254 = vmatprep.subr.mxu1 %v8477_v49 }
 0x50b   : > { %6255 = vmatpush3.msra.mxu1 %v8477_v49 }
 0x50c   : > { %6213 = vmatmul.mubr.bf16.gmra.mxu1 %v6589_v22  ;;  %6256 = vmatprep.subr.mxu1 %v8482_v20 }
 0x50d   : > { %6257 = vmatpush3.msra.mxu1 %v8482_v20 }
 0x50e   : > { %6258 = vmatprep.subr.mxu1 %v8489_v36 }
 0x50f   : > { %6259 = vmatpush3.msra.mxu1 %v8489_v36 }
 0x510   : > { %6260 = vmatprep.subr.mxu1 %v8498_v9 }
 0x511   : > { %6261 = vmatpush3.msra.mxu1 %v8498_v9 }
 0x512   : > { %6262 = vmatprep.subr.mxu1 %v8505_v30 }
 0x513   : > { %6263 = vmatpush3.msra.mxu1 %v8505_v30 }
 0x5b4   : > { %v6202_v38 = vpop.f32.mrf.mxu1 }
 0x5b5   : > { %v4499_v18 = vadd.f32 %v6202_v38, %v4354_v52 }
 0x5b6   : > { %v4490_v29 = vpop.f32.mrf.mxu1 }
 0x5b7   : > { %v4491_v5 = vadd.f32 %v4490_v29, %v4346_v35 }
 0x5b8   : > { %v6203_v37 = vpop.f32.mrf.mxu1 }
 0x5b9   : > { %v4502_v43 = vadd.f32 %v6203_v37, %v4358_v23 }
 0x5ba   : > { %v4493_v47 = vpop.f32.mrf.mxu1 }
 0x5bb   : > { %v8531_v24 = vpack.c.bf16 %v4502_v43, %v4499_v18  ;;  %v4494_v25 = vadd.f32 %v4493_v47, %v4350_v51 }
 0x5bc   : > { %v6206_v13 = vpop.f32.mrf.mxu1 }
 0x5bd   : > { %v8533_v21 = vpack.c.bf16 %v4494_v25, %v4491_v5  ;;  %v4515_v46 = vadd.f32 %v6206_v13, %v4370_v50 }
 0x5be   : > { %v4506_v8 = vpop.f32.mrf.mxu1 }
 0x5bf   : > { %v4507_v30 = vadd.f32 %v4506_v8, %v4362_v28 }
 0x5c0   : > { %v6207_v16 = vpop.f32.mrf.mxu1 }
 0x5c1   : > { %v4518_v22 = vadd.f32 %v6207_v16, %v4374_v56 }
 0x5c2   : > { %v4509_v26 = vpop.f32.mrf.mxu1 }
 0x5c3   : > { %v4836_v9 = vpack.c.bf16 %v4518_v22, %v4515_v46  ;;  %v4510_v36 = vadd.f32 %v4509_v26, %v4366_v34 }
 0x5c4   : > { %v6210_v20 = vpop.f32.mrf.mxu1 }
 0x5c5   : > { %v4835_v49 = vpack.c.bf16 %v4510_v36, %v4507_v30  ;;  %6292 = vmatprep.subr.bf16.mxu1 %v4836_v9  ;;  %v4531_v28 = vadd.f32 %v6210_v20, %v4386_v44  ;;  %v6591_v20 = vld [vmem:[%s8677_s1 + $0x48] sm:$0xff]   ;;  %v6592_v44 = vld [vmem:[%s8677_s1 + $0x50] sm:$0xff]  }
 0x5c6   : > { %v4522_v52 = vpop.f32.mrf.mxu1 }
 0x5c7   : > { %v4555_v46 = vmax.f32 %v4531_v28, 0.0 }
 0x5c8   : > { %v6211_v23 = vpop.f32.mrf.mxu1 }
 0x5c9   : > { %v4534_v5 = vadd.f32 %v6211_v23, %v4390_v6 }
 0x5ca   : > { %v4525_v38 = vpop.f32.mrf.mxu1 }
 0x5cb   : > { %v4556_v36 = vmax.f32 %v4534_v5, 0.0  ;;  %v4526_v30 = vadd.f32 %v4525_v38, %v4382_v7 }
 0x5cc   : > { %v6214_v29 = vpop.f32.mrf.mxu1 }
 0x5cd   : > { %v4547_v37 = vadd.f32 %v6214_v29, %v4402_v41  ;;  %v4523_v41 = vadd.f32 %v4522_v52, %v8513_v27  ;;  %v6593_v27 = vld [vmem:[%s8677_s1 + $0x58] sm:$0xff]  }
 0x5ce   : > { %v4538_v35 = vpop.f32.mrf.mxu1 }
 0x5cf   : > { %v4539_v18 = vadd.f32 %v4538_v35, %v4394_v42  ;;  %v4559_v50 = vmax.f32 %v4547_v37, 0.0  ;;  %v4571_v42 = vpack.c.bf16 %v4556_v36, %v4555_v46  ;;  %v4553_v6 = vmax.f32 %v4523_v41, 0.0  ;;  %v6596_v36 = vld [vmem:[%s8677_s1 + $0x88] sm:$0xff]   ;;  %v6602_v46 = vld [vmem:[%s8677_s1 + $0xa0] sm:$0xff]  }
 0x5d0   : > { %v6215_v51 = vpop.f32.mrf.mxu1  ;;  %v6678_v41 = vmov 8  }
 0x5d1   : > { %v4550_v43 = vadd.f32 %v6215_v51, %v4406_v63  ;;  %v4557_v13 = vmax.f32 %v4539_v18, 0.0  ;;  %v4554_v63 = vmax.f32 %v4526_v30, 0.0  ;;  %v6598_v30 = vld [vmem:[%s8677_s1 + $0x90] sm:$0xff]  }
 0x5d2   : > { %v4541_v47 = vpop.f32.mrf.mxu1 }
 0x5d3   : > { %v4560_v56 = vmax.f32 %v4550_v43, 0.0  ;;  %v4542_v25 = vadd.f32 %v4541_v47, %v4398_v2  ;;  %v4570_v22 = vpack.c.bf16 %v4554_v63, %v4553_v6 }
 0x5d5   : > { %v4573_v34 = vpack.c.bf16 %v4560_v56, %v4559_v50  ;;  %v4558_v8 = vmax.f32 %v4542_v25, 0.0 }
 0x5d7   : > { %v4572_v16 = vpack.c.bf16 %v4558_v8, %v4557_v13  ;;  %6216 = vmatprep.subr.bf16.mxu0 %v4573_v34 }
 0x5d8   : > { %6217 = vmatpush3.bf16.msra.mxu0 %v4573_v34 }
 0x5d9   : > { %6218 = vmatprep.subr.bf16.mxu0 %v4572_v16 }
 0x5dc   : > { %6219 = vmatpush3.bf16.msra.mxu0 %v4572_v16  ;;  %v6600_v16 = vld [vmem:[%s8677_s1 + $0x98] sm:$0xff]  }
 0x5dd   : > { %6220 = vmatprep.subr.bf16.mxu0 %v4571_v42 }
 0x5e0   : > { %6221 = vmatpush3.bf16.msra.mxu0 %v4571_v42  ;;  %v6628_v42 = vld [vmem:[%s8681_s5 + $0x30] sm:$0xff] }
 0x5e1   : > { %6222 = vmatprep.subr.bf16.mxu0 %v4570_v22 }
 0x5e4   : > { %6223 = vmatpush3.bf16.msra.mxu0 %v4570_v22 }
 0x5e7   : > { %6225 = vmatmul.mubr.msk.bf16.vlgmr.msra.gmra.mxu0 %vm997_vm0, %v6591_v20 }
 0x5e8   : > { %6228 = vmatprep.mubr.msk.bf16.mxu0 %vm997_vm0, %v6592_v44 }
 0x5ef   : > { %6229 = vmatmul.mubr.msk.bf16.gmra.mxu0 %vm997_vm0, %v6593_v27 }
 0x6a7   : > { %v6226_v2 = vpop.f32.mrf.mxu0 }
 0x6a8   : > { %v4681_v29 = vadd.f32 %v6226_v2, %v8517_v60 }
 0x6a9   : > { %v4672_v7 = vpop.f32.mrf.mxu0 }
 0x6aa   : > { %v4673_v26 = vadd.f32 %v4672_v7, %v8515_v33 }
 0x6ab   : > { %v6227_v52 = vpop.f32.mrf.mxu0 }
 0x6ac   : > { %6264 = vmatprep.mubr.f32.mxu1 %v4673_v26  ;;  %v4684_v51 = vadd.f32 %v6227_v52, %v8519_v61  ;;  %v6595_v61 = vld [vmem:[%s8677_s1 + $0x60] sm:$0xff]  }
 0x6ad   : > { %v4675_v23 = vpop.f32.mrf.mxu0 }
 0x6ae   : > { %v4676_v38 = vadd.f32 %v4675_v23, %v8521_v62  ;;  %v6597_v62 = vld [vmem:[%s8677_s1 + $0x68] sm:$0xff]  }
 0x6af   : > { %v6230_v35 = vpop.f32.mrf.mxu0 }
 0x6b0   : > { %6265 = vmatmul.mubr.f32.vlgmr.msra.gmra.mxu1 %v4676_v38  ;;  %v4697_v60 = vadd.f32 %v6230_v35, %v8529_v10 }
 0x6b1   : > { %6293 = vmatpush3.bf16.msra.mxu1 %v4836_v9  ;;  %v4688_v37 = vpop.f32.mrf.mxu0  ;;  %6267 = vmatprep.mubr.f32.mxu1 %v4681_v29 }
 0x6b2   : > { %v4689_v18 = vadd.f32 %v4688_v37, %v8525_v55  ;;  %6294 = vmatprep.subr.bf16.mxu1 %v4835_v49  ;;  %v6601_v55 = vld [vmem:[%s8677_s1 + $0x78] sm:$0xff]  }
 0x6b3   : > { %v6231_v43 = vpop.f32.mrf.mxu0 }
 0x6b4   : > { %6268 = vmatmul.mubr.f32.gmra.mxu1 %v4684_v51  ;;  %v4700_v9 = vadd.f32 %v6231_v43, %v8527_v15  ;;  %v6677_v15 = vmov 7  }
 0x6b5   : > { %6295 = vmatpush3.bf16.msra.mxu1 %v4835_v49  ;;  %v4691_v33 = vpop.f32.mrf.mxu0  ;;  %6270 = vmatprep.mubr.f32.mxu1 %v4689_v18  ;;  %v6594_v49 = vld [vmem:[%s8677_s1 + $0x80] sm:$0xff]  }
 0x6b6   : > { %v4692_v47 = vadd.f32 %v4691_v33, %v8523_v0  ;;  %6296 = vmatprep.subr.bf16.mxu1 %v8531_v24  ;;  %6284 = vmatprep.mubr.msk.bf16.mxu0 %vm997_vm0, %v6594_v49  ;;  %v6599_v0 = vld [vmem:[%s8677_s1 + $0x70] sm:$0xff]  }
 0x6b7   : > { %6434 = vset.pattern.permute.xlu1 %v6677_v15  ;;  %6435 = vset.pattern.permute.xlu0 %v6677_v15 }
 0x6b8   : > { %6271 = vmatmul.mubr.f32.gmra.mxu1 %v4692_v47  ;;  %5069 = vperm.xlu1 %6434, %v8792_v31  }
 0x6b9   : > { %6297 = vmatpush3.bf16.msra.mxu1 %v8531_v24  ;;  %6273 = vmatprep.mubr.f32.mxu1 %v4697_v60 }
 0x6ba   : > { %6298 = vmatprep.subr.bf16.mxu1 %v8533_v21  ;;  %5073 = vperm.xlu0 %6435, %v8794_v54  }
 0x6bc   : > { %6274 = vmatmul.mubr.f32.gmra.mxu1 %v4700_v9  ;;  %5061 = vperm.xlu1 %6434, %v8790_v4  }
 0x6bd   : > { %6299 = vmatpush3.bf16.msra.mxu1 %v8533_v21  ;;  %6300 = vmatprep.mubr.msk.bf16.mxu1 %vm997_vm0, %v6595_v61 }
 0x6be   : > { %5053 = vperm.xlu0 %6435, %v8789_v3  }
 0x6c0   : > { %6301 = vmatmul.mubr.msk.bf16.vlgmr.msra.gmra.mxu1 %vm997_vm0, %v6597_v62  ;;  %5065 = vperm.xlu1 %6434, %v8793_v39  }
 0x6c1   : > { %6304 = vmatprep.mubr.msk.bf16.mxu1 %vm997_vm0, %v6599_v0 }
 0x6c2   : > { %5045 = vperm.xlu0 %6435, %v8787_v45  }
 0x6c4   : > { %5057 = vperm.xlu1 %6434, %v8791_v58  }
 0x6c6   : > { %6436 = vset.pattern.permute.xlu0 %v6678_v41 }
 0x6c7   : > { %5130 = vperm.xlu0 %6436, %v6628_v42   ;;  %v6603_v42 = vld [vmem:[%s8677_s1 + $0xa8] sm:$0xff]  }
 0x6c8   : > { %6305 = vmatmul.mubr.msk.bf16.gmra.mxu1 %vm997_vm0, %v6601_v55  ;;  %5049 = vperm.xlu1 %6434, %v8788_v17  }
 0x6cb   : > { %5126 = vperm.xlu0 %6436, %v8793_v39  }
 0x6cc   : > { %6437 = vset.pattern.permute.xlu1 %v6678_v41 }
 0x6cd   : > { %5134 = vperm.xlu1 %6437, %v8794_v54  }
 0x6cf   : > { %5118 = vperm.xlu0 %6436, %v8791_v58  }
 0x6d1   : > { %5122 = vperm.xlu1 %6437, %v8790_v4  }
 0x6d3   : > { %5110 = vperm.xlu0 %6436, %v8788_v17  }
 0x6d5   : > { %5114 = vperm.xlu1 %6437, %v8789_v3  }
 0x6d9   : > { %5106 = vperm.xlu1 %6437, %v8787_v45  }
 0x733   : > { %v5070_v54 = vpop.permute.xlu1 %5069 }
 0x735   : > { %v5074_v3 = vpop.permute.xlu0 %5073 }
 0x737   : > { %v5062_v44 = vpop.permute.xlu1 %5061 }
 0x739   : > { %v5054_v43 = vpop.permute.xlu0 %5053 }
 0x73b   : > { %v5066_v26 = vpop.permute.xlu1 %5065 }
 0x73f   : > { %v5058_v35 = vpop.permute.xlu1 %5057 }
 0x770   : > { %v6266_v10 = vpop.f32.mrf.mxu1 }
 0x772   : > { %v4785_v24 = vpop.f32.mrf.mxu1 }
 0x773   : > { %v4846_v8 = vpack.c.bf16 %v6266_v10, %v4785_v24 }
 0x774   : > { %v6269_v21 = vpop.f32.mrf.mxu1 }
 0x776   : > { %v4795_v5 = vpop.f32.mrf.mxu1 }
 0x777   : > { %v4847_v34 = vpack.c.bf16 %v6269_v21, %v4795_v5  ;;  %v5050_v21 = vpop.permute.xlu1 %5049 }
 0x778   : > { %v6272_v50 = vpop.f32.mrf.mxu1 }
 0x77a   : > { %v4805_v31 = vpop.f32.mrf.mxu1 }
 0x77b   : > { %v4848_v13 = vpack.c.bf16 %v6272_v50, %v4805_v31 }
 0x77c   : > { %v6275_v56 = vpop.f32.mrf.mxu1 }
 0x77e   : > { %v4815_v25 = vpop.f32.mrf.mxu1 }
 0x77f   : > { %v4849_v28 = vpack.c.bf16 %v6275_v56, %v4815_v25  ;;  %v5046_v25 = vpop.permute.xlu0 %5045 }
 0x780   : > { %v6302_v63 = vpop.f32.mrf.mxu1 }
 0x781   : > { %6276 = vmatprep.subr.bf16.mxu0 %v4849_v28 }
 0x782   : > { %6277 = vmatpush3.bf16.msra.mxu0 %v4849_v28  ;;  %v5013_v6 = vpop.f32.mrf.mxu1 }
 0x783   : > { %6278 = vmatprep.subr.bf16.mxu0 %v4848_v13 }
 0x784   : > { %v6303_v22 = vpop.f32.mrf.mxu1 }
 0x786   : > { %6279 = vmatpush3.bf16.msra.mxu0 %v4848_v13  ;;  %v5016_v20 = vpop.f32.mrf.mxu1 }
 0x787   : > { %6280 = vmatprep.subr.bf16.mxu0 %v4847_v34 }
 0x788   : > { %v6306_v7 = vpop.f32.mrf.mxu1 }
 0x78a   : > { %6281 = vmatpush3.bf16.msra.mxu0 %v4847_v34  ;;  %v5029_v52 = vpop.f32.mrf.mxu1 }
 0x78b   : > { %6282 = vmatprep.subr.bf16.mxu0 %v4846_v8 }
 0x78c   : > { %v6307_v45 = vpop.f32.mrf.mxu1 }
 0x78e   : > { %6283 = vmatpush3.bf16.msra.mxu0 %v4846_v8  ;;  %v5032_v47 = vpop.f32.mrf.mxu1 }
 0x791   : > { %6285 = vmatmul.mubr.msk.bf16.vlgmr.msra.gmra.mxu0 %vm997_vm0, %v6596_v36 }
 0x792   : > { %6288 = vmatprep.mubr.msk.bf16.mxu0 %vm997_vm0, %v6598_v30 }
 0x799   : > { %6289 = vmatmul.mubr.msk.bf16.gmra.mxu0 %vm997_vm0, %v6600_v16 }
 0x79a   : > { %6316 = vmatprep.mubr.msk.bf16.mxu0 %vm997_vm0, %v6602_v46 }
 0x851   : > { %v6286_v27 = vpop.f32.mrf.mxu0 }
 0x852   : > { %v5022_v60 = vadd.f32 %v6302_v63, %v6286_v27  ;;  %v6604_v63 = vld [vmem:[%s8677_s1 + $0xb0] sm:$0xff]  }
 0x853   : > { %v4916_v2 = vpop.f32.mrf.mxu0 }
 0x854   : > { %v5014_v24 = vadd.f32 %v5013_v6, %v4916_v2  ;;  %v5078_v50 = vadd.f32 %v5054_v43, %v5022_v60  ;;  %v6605_v6 = vld [vmem:[%s8677_s1 + $0xb8] sm:$0xff]  }
 0x855   : > { %v6287_v4 = vpop.f32.mrf.mxu0 }
 0x856   : > { %v5025_v37 = vadd.f32 %v6303_v22, %v6287_v4  ;;  %v5086_v8 = vmax.f32 %v5078_v50, 0.0  ;;  %v5076_v36 = vadd.f32 %v5046_v25, %v5014_v24 }
 0x857   : > { %v4919_v39 = vpop.f32.mrf.mxu0 }
 0x858   : > { %v5017_v62 = vadd.f32 %v5016_v20, %v4919_v39  ;;  %v5079_v15 = vadd.f32 %v5058_v35, %v5025_v37  ;;  %v5084_v46 = vmax.f32 %v5076_v36, 0.0 }
 0x859   : > { %v6290_v23 = vpop.f32.mrf.mxu0 }
 0x85a   : > { %v5038_v58 = vadd.f32 %v6306_v7, %v6290_v23  ;;  %v5087_v28 = vmax.f32 %v5079_v15, 0.0  ;;  %v5077_v13 = vadd.f32 %v5050_v21, %v5017_v62 }
 0x85b   : > { %v4932_v38 = vpop.f32.mrf.mxu0 }
 0x85c   : > { %v5030_v29 = vadd.f32 %v5029_v52, %v4932_v38  ;;  %v5082_v51 = vadd.f32 %v5070_v54, %v5038_v58  ;;  %v5102_v30 = vpack.c.bf16 %v5087_v28, %v5086_v8  ;;  %v5085_v16 = vmax.f32 %v5077_v13, 0.0 }
 0x85d   : > { %v6291_v17 = vpop.f32.mrf.mxu0  ;;  %v6679_v54 = vmov 0.0  }
 0x85e   : > { %v5041_v18 = vadd.f32 %v6307_v45, %v6291_v17  ;;  %v5080_v9 = vadd.f32 %v5062_v44, %v5030_v29  ;;  %v5090_v0 = vmax.f32 %v5082_v51, 0.0  ;;  %v5101_v41 = vpack.c.bf16 %v5085_v16, %v5084_v46  ;;  %6324 = vmatprep.subr.bf16.mxu1 %v6679_v54  ;;  %6332 = vmatprep.mubr.msk.bf16.mxu1 %vm6680_vm1, %v6679_v54 }
 0x85f   : > { %v4935_v33 = vpop.f32.mrf.mxu0 }
 0x860   : > { %v5083_v49 = vadd.f32 %v5074_v3, %v5041_v18  ;;  %v5033_v61 = vadd.f32 %v5032_v47, %v4935_v33  ;;  %v5088_v5 = vmax.f32 %v5080_v9, 0.0 }
 0x862   : > { %v5091_v55 = vmax.f32 %v5083_v49, 0.0  ;;  %v5081_v10 = vadd.f32 %v5066_v26, %v5033_v61 }
 0x864   : > { %v5089_v31 = vmax.f32 %v5081_v10, 0.0  ;;  %v5104_v56 = vpack.c.bf16 %v5091_v55, %v5090_v0  ;;  %v5242_v55 = vld [vmem:[%s8680_s4] sm:$0xf] }
 0x866   : > { %6308 = vmatprep.subr.bf16.mxu0 %v5104_v56  ;;  %v5103_v34 = vpack.c.bf16 %v5089_v31, %v5088_v5 }
 0x867   : > { %6309 = vmatpush3.bf16.msra.mxu0 %v5104_v56 }
 0x868   : > { %6310 = vmatprep.subr.bf16.mxu0 %v5103_v34 }
 0x86b   : > { %6311 = vmatpush3.bf16.msra.mxu0 %v5103_v34 }
 0x86c   : > { %6312 = vmatprep.subr.bf16.mxu0 %v5102_v30 }
 0x86f   : > { %6313 = vmatpush3.bf16.msra.mxu0 %v5102_v30 }
 0x870   : > { %6314 = vmatprep.subr.bf16.mxu0 %v5101_v41 }
 0x873   : > { %6315 = vmatpush3.bf16.msra.mxu0 %v5101_v41 }
 0x874   : > { %6336 = vmatprep.subr.mxu0 %v6679_v54 }
 0x876   : > { %6317 = vmatmul.mubr.msk.bf16.vlgmr.msra.gmra.mxu0 %vm997_vm0, %v6603_v42 }
 0x877   : > { %6320 = vmatprep.mubr.msk.bf16.mxu0 %vm997_vm0, %v6604_v63  ;;  %6337 = vmatpush3.msra.mxu0 %v8379_v53  ;;  %v8800_v53 = vld [vmem:[#allocation21_spill] sm:$0xff] }
 0x878   : > { %6338 = vmatprep.subr.mxu0 %v6679_v54 }
 0x879   : > { %6339 = vmatpush3.msra.mxu0 %v8391_v32  ;;  %v8801_v32 = vld [vmem:[#allocation22_spill] sm:$0xff] }
 0x87a   : > { %6340 = vmatprep.subr.mxu0 %v6679_v54 }
 0x87b   : > { %6341 = vmatpush3.msra.mxu0 %v8397_v57  ;;  %v8802_v57 = vld [vmem:[#allocation23_spill] sm:$0xff] }
 0x87c   : > { %6342 = vmatprep.subr.mxu0 %v6679_v54 }
 0x87d   : > { %6343 = vmatpush3.msra.mxu0 %v8404_v12  ;;  %v8803_v12 = vld [vmem:[#allocation14_spill] sm:$0xff] }
 0x87e   : > { %6321 = vmatmul.mubr.msk.bf16.gmra.mxu0 %vm997_vm0, %v6605_v6  ;;  %6344 = vmatprep.subr.mxu0 %v6679_v54 }
 0x87f   : > { %6345 = vmatpush3.msra.mxu0 %v8417_v19  ;;  %6368 = vmatprep.mubr.msk.f32.mxu0 %vm6680_vm1, %v6679_v54  ;;  %v8804_v19 = vld [vmem:[#allocation9_spill] sm:$0xff] }
 0x880   : > { %6346 = vmatprep.subr.mxu0 %v6679_v54 }
 0x881   : > { %6347 = vmatpush3.msra.mxu0 %v8424_v40 }
 0x882   : > { %6348 = vmatprep.subr.mxu0 %v6679_v54 }
 0x883   : > { %6349 = vmatpush3.msra.mxu0 %v8431_v48  ;;  %v5131_v48 = vpop.permute.xlu0 %5130 }
 0x884   : > { %6350 = vmatprep.subr.mxu0 %v6679_v54 }
 0x885   : > { %6351 = vmatpush3.msra.mxu0 %v8438_v11 }
 0x886   : > { %6352 = vmatprep.subr.mxu0 %v6679_v54 }
 0x887   : > { %6353 = vmatpush3.msra.mxu0 %v8456_v1  ;;  %v5135_v1 = vpop.permute.xlu1 %5134  ;;  %v5127_v22 = vpop.permute.xlu0 %5126 }
 0x888   : > { %6354 = vmatprep.subr.mxu0 %v6679_v54 }
 0x889   : > { %6355 = vmatpush3.msra.mxu0 %v8463_v14 }
 0x88a   : > { %6356 = vmatprep.subr.mxu0 %v6679_v54 }
 0x88b   : > { %6357 = vmatpush3.msra.mxu0 %v8470_v59  ;;  %v5123_v20 = vpop.permute.xlu1 %5122  ;;  %v5119_v7 = vpop.permute.xlu0 %5118 }
 0x88c   : > { %6358 = vmatprep.subr.mxu0 %v6679_v54 }
 0x88d   : > { %6359 = vmatpush3.msra.mxu0 %v8800_v53 }
 0x88e   : > { %6360 = vmatprep.subr.mxu0 %v6679_v54 }
 0x88f   : > { %6361 = vmatpush3.msra.mxu0 %v8801_v32  ;;  %v5115_v39 = vpop.permute.xlu1 %5114  ;;  %v5111_v35 = vpop.permute.xlu0 %5110 }
 0x890   : > { %6362 = vmatprep.subr.mxu0 %v6679_v54 }
 0x891   : > { %6363 = vmatpush3.msra.mxu0 %v8802_v57 }
 0x892   : > { %6364 = vmatprep.subr.mxu0 %v6679_v54 }
 0x893   : > { %6365 = vmatpush3.msra.mxu0 %v8803_v12  ;;  %v5107_v18 = vpop.permute.xlu1 %5106 }
 0x894   : > { %6366 = vmatprep.subr.mxu0 %v6679_v54 }
 0x895   : > { %6367 = vmatpush3.msra.mxu0 %v8804_v19 }
 0x936   : > { %v6318_v40 = vpop.f32.mrf.mxu0 }
 0x937   : > { %v5212_v51 = vadd.f32 %v6318_v40, %v5115_v39 }
 0x938   : > { %v5203_v11 = vpop.f32.mrf.mxu0 }
 0x939   : > { %v5236_v60 = vmax.f32 %v5212_v51, 0.0  ;;  %v5204_v9 = vadd.f32 %v5203_v11, %v5107_v18 }
 0x93a   : > { %v6319_v14 = vpop.f32.mrf.mxu0 }
 0x93b   : > { %v5215_v45 = vadd.f32 %v6319_v14, %v5119_v7  ;;  %v5234_v62 = vmax.f32 %v5204_v9, 0.0 }
 0x93c   : > { %v5206_v59 = vpop.f32.mrf.mxu0 }
 0x93d   : > { %v5237_v43 = vmax.f32 %v5215_v45, 0.0  ;;  %v5207_v33 = vadd.f32 %v5206_v59, %v5111_v35 }
 0x93e   : > { %v6322_v44 = vpop.f32.mrf.mxu0 }
 0x93f   : > { %v5228_v2 = vadd.f32 %v6322_v44, %v5131_v48  ;;  %v5244_v49 = vpack.c.bf16 %v5237_v43, %v5236_v60  ;;  %v5235_v61 = vmax.f32 %v5207_v33, 0.0 }
 0x940   : > { %v5219_v27 = vpop.f32.mrf.mxu0 }
 0x941   : > { %v5240_v3 = vmax.f32 %v5228_v2, 0.0  ;;  %v5220_v23 = vadd.f32 %v5219_v27, %v5123_v20  ;;  %v5243_v0 = vpack.c.bf16 %v5235_v61, %v5234_v62 }
 0x942   : > { %v6323_v4 = vpop.f32.mrf.mxu0 }
 0x943   : > { %v5231_v26 = vadd.f32 %v6323_v4, %v5135_v1  ;;  %v5238_v37 = vmax.f32 %v5220_v23, 0.0 }
 0x944   : > { %v5222_v52 = vpop.f32.mrf.mxu0 }
 0x945   : > { %v5241_v58 = vmax.f32 %v5231_v26, 0.0  ;;  %v5223_v38 = vadd.f32 %v5222_v52, %v5127_v22 }
 0x947   : > { %v5246_v29 = vpack.c.bf16 %v5241_v58, %v5240_v3  ;;  %v5239_v17 = vmax.f32 %v5223_v38, 0.0 }
 0x949   : > { %6325 = vmatpush3.bf16.msra.mxu1 %v5246_v29  ;;  %v5245_v47 = vpack.c.bf16 %v5239_v17, %v5238_v37 }
 0x94a   : > { %6326 = vmatprep.subr.bf16.mxu1 %v6679_v54 }
 0x94d   : > { %6327 = vmatpush3.bf16.msra.mxu1 %v5245_v47 }
 0x94e   : > { %6328 = vmatprep.subr.bf16.mxu1 %v6679_v54 }
 0x951   : > { %6329 = vmatpush3.bf16.msra.mxu1 %v5244_v49 }
 0x952   : > { %6330 = vmatprep.subr.bf16.mxu1 %v6679_v54 }
 0x955   : > { %6331 = vmatpush3.bf16.msra.mxu1 %v5243_v0 }
 0x958   : > { %6333 = vmatmul.mubr.msk.bf16.vlgmr.msra.gmra.mxu1 %vm997_vm0, %v5242_v55 }
 0xa18   : > { %v5284_v15 = vpop.f32.mrf.mxu1 }
 0xa19   : > { %v5291_v10 = vsel %vm5290_vm2, %v5284_v15, -inf }
 0xa1a   : > { %5292 = vmax.xlane.f32.xlu1 %v5291_v10  ;;  %v6334_v24 = vpop.f32.mrf.mxu1 }
 0xa1c   : > { %v5287_v21 = vpop.f32.mrf.mxu1 }
 0xa1e   : > { %v6335_v5 = vpop.f32.mrf.mxu1 }
 0xaa3   : > { %v5293_v50 = vpop.xlane.xlu1 %5292 }
 0xaa4   : > { %v5294_v31 = vsub.f32 %v5284_v15, %v5293_v50 }
 0xaa6   : > { %v5295_v56 = vmul.f32 1.442695, %v5294_v31 }
 0xaa8   : > { %6606 = vpow2.f32 %v5295_v56 }
 0xab5   : > { %v6607_v25 = vpop.eup %6606 }
 0xab6   : > { %6369 = vmatmul.mubr.f32.vlgmr.msra.gmra.mxu0 %v6607_v25 }
 0xb76   : > { %v5363_v28 = vpop.f32.mrf.mxu0 }
 0xb77   : > { %v5367_v13 = vmul.f32 16.0, %v5363_v28 }
 0xb78   : > { %v6370_v34 = vpop.f32.mrf.mxu0 }
 0xb79   : > { %6608 = vrcp.f32 %v5367_v13 }
 0xb86   : > { %v6609_v8 = vpop.eup %6608 }
 0xb87   : > { %v5369_v36 = vmul.f32 %v6609_v8, %v6607_v25 }
 0xb89   : > { %5370 = vst [vmem:[%s315_s25] sm:$0x1] %v5369_v36 }
 0xb8a PF: > { %s19_s27 = sadd.s32 1, %s6665_s27  }
 0xb8b   : > { %p16_p2 = scmp.ge.s32.totalorder %s19_s27, 4  }
 0xb8d   :  { %18 = sbr.rel (!%p16_p2) target bundleno = 1 (0x1), region = 92 }
 0xb92   :  { %5388 = vsyncpa [#allocation3], 1 }
 0xb93   :  { %5390 = vsyncpa [#allocation3 + $0x1], 1 }

</bundles_post_ra>
